<compile_context>
chip_gen: v6e
topology: v6e:2x2x1
jax: 0.10.0
libtpu: 0.0.40
codegen_flags: <defaults>
</compile_context>

<pallas_src>
import functools

import jax
import jax.numpy as jnp
import numpy as np
from jax import lax
from jax.experimental import pallas as pl
from jax.experimental.pallas import tpu as pltpu


def _silu(x):
    return x * jax.nn.sigmoid(x)


def bottleneck_kernel(x_ref, w1_ref, b1_ref, w2_ref, b2_ref, m_ref,
                      o_ref, y1_ref, im_ref, *, H, W, c1, c_mid, c2, add):
    HW = H * W
    x2d = x_ref[0].reshape(HW, c1)                         # (HW, c1) f32

    # ---- cv1: 1x1 conv as a matmul (BN scale pre-folded into w1) + bias + SiLU
    y1 = jnp.dot(x2d.astype(jnp.bfloat16), w1_ref[...],
                 preferred_element_type=jnp.float32)       # (HW, c_mid) f32
    y1 = _silu(y1 + b1_ref[...])
    y1_ref[...] = y1                                       # stage once in VMEM

    # ---- cv2: 3x3 conv (pad 1) as ONE fat-K matmul over an im2col scratch ----
    # Column block k of im_ref holds y1 shifted by (dy, dx) in flat (y*W+x)
    # order; boundary-invalid rows are zero (mask / never-written small edges).
    k = 0
    for dy in (-1, 0, 1):
        for dx in (-1, 0, 1):
            s = dy * W + dx                                # flat shift (static)
            r0 = max(0, -s)
            r1 = min(HW, HW - s)
            kc = k * c_mid
            if r1 > r0:
                col = y1_ref[r0 + s:r1 + s, :] * m_ref[r0:r1, k:k + 1]
                im_ref[r0:r1, kc:kc + c_mid] = col.astype(jnp.bfloat16)
            # Rows outside [r0, r1) never receive data for this tap: zero the
            # (tiny) edges every step so no cross-iteration scratch state is
            # needed (safe under "parallel" grid partitioning).
            if r0 > 0:
                im_ref[0:r0, kc:kc + c_mid] = jnp.zeros((r0, c_mid),
                                                        jnp.bfloat16)
            if r1 < HW:
                im_ref[r1:HW, kc:kc + c_mid] = jnp.zeros((HW - r1, c_mid),
                                                         jnp.bfloat16)
            k += 1

    y2 = jnp.dot(im_ref[...], w2_ref[...],
                 preferred_element_type=jnp.float32)       # (HW, c2) f32
    y2 = _silu(y2 + b2_ref[...])

    if add:
        y2 = y2 + x2d                                      # shortcut (c1 == c2)

    o_ref[0] = y2.reshape(H, W, c2).astype(o_ref.dtype)


def _boundary_masks(H, W):
    """(H*W, 9) f32 0/1 masks: tap k=(dy+1)*3+(dx+1) valid at flat pos y*W+x."""
    yy, xx = np.meshgrid(np.arange(H), np.arange(W), indexing="ij")
    yy = yy.reshape(-1)
    xx = xx.reshape(-1)
    cols = []
    for dy in (-1, 0, 1):
        for dx in (-1, 0, 1):
            ok = ((yy + dy >= 0) & (yy + dy < H) &
                  (xx + dx >= 0) & (xx + dx < W))
            cols.append(ok.astype(np.float32))
    return np.stack(cols, axis=1)


def bottleneck_pallas_nhwc(x_nhwc, w1, b1, w2, b2, *, shortcut=True):
    """NHWC Bottleneck.

    x_nhwc: (N, H, W, c1) f32
    w1: (c1, c_) bf16   (1x1 conv weight, BN scale folded in)
    b1: (1, c_)  f32    (folded BN bias)
    w2: (9*c_, c2) bf16 (3x3 conv weight, HWIO raster order, BN scale folded)
    b2: (1, c2)  f32
    """
    N, H, W, c1 = x_nhwc.shape
    c_mid = w1.shape[1]
    c2 = w2.shape[1]
    add = bool(shortcut and c1 == c2)

    masks = jnp.asarray(_boundary_masks(H, W))             # (H*W, 9) f32

    kern = functools.partial(bottleneck_kernel, H=H, W=W, c1=c1,
                             c_mid=c_mid, c2=c2, add=add)

    const = lambda shape: pl.BlockSpec(shape, lambda b: (0,) * len(shape))

    # Explicit VMEM budget: double-buffered in/out blocks + resident weights /
    # masks + scratch + live f32 intermediates, with 2x headroom.
    f32b, bf16b = 4, 2
    blk_io = 2 * H * W * (c1 + c2) * f32b
    resident = 2 * (H * W * 9 * f32b
                    + (c1 * c_mid + 9 * c_mid * c2) * bf16b
                    + (c_mid + c2) * f32b)
    scratch = H * W * (9 * c_mid * bf16b + c_mid * f32b)
    live = H * W * (c1 + c_mid + 2 * c2) * f32b
    vmem_limit = int(min(64 * 2 ** 20,
                         max(16 * 2 ** 20,
                             2 * (blk_io + resident + scratch + live))))

    return pl.pallas_call(
        kern,
        out_shape=jax.ShapeDtypeStruct((N, H, W, c2), x_nhwc.dtype),
        grid_spec=pltpu.PrefetchScalarGridSpec(
            num_scalar_prefetch=0,
            grid=(N,),
            in_specs=[
                pl.BlockSpec((1, H, W, c1), lambda b: (b, 0, 0, 0)),
                const(w1.shape),
                const(b1.shape),
                const(w2.shape),
                const(b2.shape),
                const(masks.shape),
            ],
            out_specs=pl.BlockSpec((1, H, W, c2), lambda b: (b, 0, 0, 0)),
            scratch_shapes=[
                pltpu.VMEM((H * W, c_mid), jnp.float32),        # staged y1
                pltpu.VMEM((H * W, 9 * c_mid), jnp.bfloat16),   # im2col
            ],
        ),
        compiler_params=pltpu.CompilerParams(
            dimension_semantics=("parallel",),
            vmem_limit_bytes=vmem_limit),
    )(x_nhwc, w1, b1, w2, b2, masks)


def fold_bottleneck_params(w1_t, g1, be1, mu1, var1,
                           w2_t, g2, be2, mu2, var2, eps=1e-5):
    """Torch-layout raw params -> kernel params (BN folded, weights in bf16)."""
    c_mid, c1 = w1_t.shape[0], w1_t.shape[1]
    c2 = w2_t.shape[0]
    s1 = g1 / jnp.sqrt(var1 + eps)                         # (c_mid,)
    s2 = g2 / jnp.sqrt(var2 + eps)                         # (c2,)
    # cv1: torch (c_mid, c1, 1, 1) -> (c1, c_mid) matmul weight.
    w1 = jnp.transpose(w1_t[:, :, 0, 0], (1, 0)) * s1[None, :]
    b1 = (be1 - mu1 * s1).reshape(1, c_mid)
    # cv2: torch (c2, c_mid, 3, 3) -> HWIO (3, 3, c_mid, c2) -> (9*c_mid, c2).
    w2 = jnp.transpose(w2_t, (2, 3, 1, 0)) * s2[None, None, None, :]
    w2 = w2.reshape(9 * c_mid, c2)
    b2 = (be2 - mu2 * s2).reshape(1, c2)
    return (w1.astype(jnp.bfloat16), b1.astype(jnp.float32),
            w2.astype(jnp.bfloat16), b2.astype(jnp.float32))


# ----------------------- pure-JAX reference (for checking) ------------------
def _reference_nchw(x_nchw, w1_t, g1, be1, mu1, var1,
                    w2_t, g2, be2, mu2, var2, eps, add):
    x = jnp.transpose(x_nchw, (0, 2, 3, 1))                # NHWC

    def conv_bn_silu(h, w_t, g, be, mu, var):
        w_hwio = jnp.transpose(w_t, (2, 3, 1, 0))
        y = lax.conv_general_dilated(h, w_hwio, (1, 1), "SAME",
                                     dimension_numbers=("NHWC", "HWIO", "NHWC"))
        y = (y - mu) * (g / jnp.sqrt(var + eps)) + be
        return _silu(y)

    y = conv_bn_silu(x, w1_t, g1, be1, mu1, var1)
    y = conv_bn_silu(y, w2_t, g2, be2, mu2, var2)
    out = x + y if add else y
    return jnp.transpose(out, (0, 3, 1, 2))


if __name__ == "__main__":
    # Bottleneck(c1=4, c2=4, shortcut=True, e=0.5) -> c_ = 2, add = True
    N, c1, c2, H, W = 2, 4, 4, 16, 16
    c_mid = int(c2 * 0.5)
    eps = 1e-5

    key = jax.random.PRNGKey(0)
    ks = jax.random.split(key, 12)

    x_nchw = jax.random.normal(ks[0], (N, c1, H, W), dtype=jnp.float32)

    # Raw parameters in torch layout (conv weights, BN eval-mode stats).
    w1_t = jax.random.normal(ks[1], (c_mid, c1, 1, 1), dtype=jnp.float32) * 0.5
    g1 = 1.0 + 0.1 * jax.random.normal(ks[2], (c_mid,), dtype=jnp.float32)
    be1 = 0.1 * jax.random.normal(ks[3], (c_mid,), dtype=jnp.float32)
    mu1 = 0.1 * jax.random.normal(ks[4], (c_mid,), dtype=jnp.float32)
    var1 = jnp.abs(jax.random.normal(ks[5], (c_mid,), dtype=jnp.float32)) + 0.5

    w2_t = jax.random.normal(ks[6], (c2, c_mid, 3, 3), dtype=jnp.float32) * 0.3
    g2 = 1.0 + 0.1 * jax.random.normal(ks[7], (c2,), dtype=jnp.float32)
    be2 = 0.1 * jax.random.normal(ks[8], (c2,), dtype=jnp.float32)
    mu2 = 0.1 * jax.random.normal(ks[9], (c2,), dtype=jnp.float32)
    var2 = jnp.abs(jax.random.normal(ks[10], (c2,), dtype=jnp.float32)) + 0.5

    w1, b1, w2, b2 = fold_bottleneck_params(w1_t, g1, be1, mu1, var1,
                                            w2_t, g2, be2, mu2, var2, eps=eps)

    # Kernel works natively in NHWC (keep activations NHWC end-to-end in a real
    # pipeline); transposes here are only to match the NCHW PyTorch module.
    x_nhwc = jnp.transpose(x_nchw, (0, 2, 3, 1))
    out_nhwc = bottleneck_pallas_nhwc(x_nhwc, w1, b1, w2, b2, shortcut=True)
    out = jnp.transpose(out_nhwc, (0, 3, 1, 2))
    out = jax.block_until_ready(out)

    ref = _reference_nchw(x_nchw, w1_t, g1, be1, mu1, var1,
                          w2_t, g2, be2, mu2, var2, eps, add=True)
    # Tolerance relaxed for bf16 matmul operands (f32 accumulation).
    np.testing.assert_allclose(np.asarray(out), np.asarray(ref),
                               rtol=5e-2, atol=5e-2)

    print("KERNEL_OK")
</pallas_src>

<mosaic_0001>
module attributes {stable_mosaic.version = 11 : i64} {
  func.func @bottleneck_kernel(%arg0: i32, %arg1: memref<1x16x16x4xf32, #tpu.memory_space<vmem>>, %arg2: memref<4x2xbf16, #tpu.memory_space<vmem>>, %arg3: memref<1x2xf32, #tpu.memory_space<vmem>>, %arg4: memref<18x4xbf16, #tpu.memory_space<vmem>>, %arg5: memref<1x4xf32, #tpu.memory_space<vmem>>, %arg6: memref<256x9xf32, #tpu.memory_space<vmem>>, %arg7: memref<1x16x16x4xf32, #tpu.memory_space<vmem>>, %arg8: memref<256x2xf32, #tpu.memory_space<vmem>>, %arg9: memref<256x18xbf16, #tpu.memory_space<vmem>>) attributes {dimension_semantics = [#tpu.dimension_semantics<parallel>], iteration_bounds = array<i64: 2>, scalar_prefetch = 0 : i64, scratch_operands = 2 : i64, tpu.core_type = #tpu.core_type<tc>, window_params = [{transform_indices = @transform_0, window_bounds = array<i64: 1, 16, 16, 4>}, {pipeline_mode = #tpu.pipeline_mode<synchronous>, transform_indices = @transform_1, window_bounds = array<i64: 4, 2>}, {pipeline_mode = #tpu.pipeline_mode<synchronous>, transform_indices = @transform_2, window_bounds = array<i64: 1, 2>}, {pipeline_mode = #tpu.pipeline_mode<synchronous>, transform_indices = @transform_3, window_bounds = array<i64: 18, 4>}, {pipeline_mode = #tpu.pipeline_mode<synchronous>, transform_indices = @transform_4, window_bounds = array<i64: 1, 4>}, {pipeline_mode = #tpu.pipeline_mode<synchronous>, transform_indices = @transform_5, window_bounds = array<i64: 256, 9>}, {transform_indices = @transform_6, window_bounds = array<i64: 1, 16, 16, 4>}]} {
    %c0 = arith.constant 0 : index
    %c0_0 = arith.constant 0 : index
    %c0_1 = arith.constant 0 : index
    %c0_2 = arith.constant 0 : index
    %0 = vector.load %arg1[%c0, %c0_0, %c0_1, %c0_2] : memref<1x16x16x4xf32, #tpu.memory_space<vmem>>, vector<1x16x16x4xf32>
    %1 = vector.shape_cast %0 : vector<1x16x16x4xf32> to vector<16x16x4xf32>
    %2 = vector.shape_cast %1 : vector<16x16x4xf32> to vector<256x4xf32>
    %3 = arith.truncf %2 : vector<256x4xf32> to vector<256x4xbf16>
    %c0_3 = arith.constant 0 : index
    %c0_4 = arith.constant 0 : index
    %4 = vector.load %arg2[%c0_3, %c0_4] : memref<4x2xbf16, #tpu.memory_space<vmem>>, vector<4x2xbf16>
    %cst = arith.constant dense<0.000000e+00> : vector<256x2xf32>
    %5 = tpu.matmul %3, %4, %cst {dimension_numbers = #tpu.dot_dimension_numbers<[1], [0], [0], [1], [0, 0, 1, 1], [], []>} : vector<256x4xbf16>, vector<4x2xbf16>, vector<256x2xf32> -> vector<256x2xf32>
    %c0_5 = arith.constant 0 : index
    %c0_6 = arith.constant 0 : index
    %6 = vector.load %arg3[%c0_5, %c0_6] : memref<1x2xf32, #tpu.memory_space<vmem>>, vector<1x2xf32>
    %7 = vector.broadcast %6 : vector<1x2xf32> to vector<256x2xf32>
    %8 = arith.addf %5, %7 : vector<256x2xf32>
    %9 = arith.negf %8 : vector<256x2xf32>
    %10 = math.exp %9 : vector<256x2xf32>
    %cst_7 = arith.constant 1.000000e+00 : f32
    %11 = vector.broadcast %cst_7 : f32 to vector<256x2xf32>
    %12 = arith.addf %11, %10 : vector<256x2xf32>
    %13 = arith.divf %11, %12 : vector<256x2xf32>
    %14 = arith.mulf %8, %13 : vector<256x2xf32>
    %c0_8 = arith.constant 0 : index
    %c0_9 = arith.constant 0 : index
    %15 = vector.load %arg8[%c0_8, %c0_9] : memref<256x2xf32, #tpu.memory_space<vmem>>, vector<256x2xf32>
    tpu.vector_store %arg8[%c0_8, %c0_9], %14 {strides = array<i32>} : memref<256x2xf32, #tpu.memory_space<vmem>>, vector<256x2xf32>,
    %c0_10 = arith.constant 0 : index
    %c0_11 = arith.constant 0 : index
    %16 = vector.load %arg8[%c0_10, %c0_11] : memref<256x2xf32, #tpu.memory_space<vmem>>, vector<239x2xf32>
    %c17 = arith.constant 17 : index
    %c0_12 = arith.constant 0 : index
    %17 = vector.load %arg6[%c17, %c0_12] : memref<256x9xf32, #tpu.memory_space<vmem>>, vector<239x1xf32>
    %18 = vector.broadcast %17 : vector<239x1xf32> to vector<239x2xf32>
    %19 = arith.mulf %16, %18 : vector<239x2xf32>
    %20 = arith.truncf %19 : vector<239x2xf32> to vector<239x2xbf16>
    %c17_13 = arith.constant 17 : index
    %c0_14 = arith.constant 0 : index
    %21 = vector.load %arg9[%c17_13, %c0_14] : memref<256x18xbf16, #tpu.memory_space<vmem>>, vector<239x2xbf16>
    tpu.vector_store %arg9[%c17_13, %c0_14], %20 {strides = array<i32>} : memref<256x18xbf16, #tpu.memory_space<vmem>>, vector<239x2xbf16>,
    %cst_15 = arith.constant 0.000000e+00 : bf16
    %22 = vector.broadcast %cst_15 : bf16 to vector<17x2xbf16>
    %c0_16 = arith.constant 0 : index
    %c0_17 = arith.constant 0 : index
    %23 = vector.load %arg9[%c0_16, %c0_17] : memref<256x18xbf16, #tpu.memory_space<vmem>>, vector<17x2xbf16>
    tpu.vector_store %arg9[%c0_16, %c0_17], %22 {strides = array<i32>} : memref<256x18xbf16, #tpu.memory_space<vmem>>, vector<17x2xbf16>,
    %c0_18 = arith.constant 0 : index
    %c0_19 = arith.constant 0 : index
    %24 = vector.load %arg8[%c0_18, %c0_19] : memref<256x2xf32, #tpu.memory_space<vmem>>, vector<240x2xf32>
    %c16 = arith.constant 16 : index
    %c1 = arith.constant 1 : index
    %25 = vector.load %arg6[%c16, %c1] : memref<256x9xf32, #tpu.memory_space<vmem>>, vector<240x1xf32>
    %26 = vector.broadcast %25 : vector<240x1xf32> to vector<240x2xf32>
    %27 = arith.mulf %24, %26 : vector<240x2xf32>
    %28 = arith.truncf %27 : vector<240x2xf32> to vector<240x2xbf16>
    %c16_20 = arith.constant 16 : index
    %c2 = arith.constant 2 : index
    %29 = vector.load %arg9[%c16_20, %c2] : memref<256x18xbf16, #tpu.memory_space<vmem>>, vector<240x2xbf16>
    tpu.vector_store %arg9[%c16_20, %c2], %28 {strides = array<i32>} : memref<256x18xbf16, #tpu.memory_space<vmem>>, vector<240x2xbf16>,
    %cst_21 = arith.constant 0.000000e+00 : bf16
    %30 = vector.broadcast %cst_21 : bf16 to vector<16x2xbf16>
    %c0_22 = arith.constant 0 : index
    %c2_23 = arith.constant 2 : index
    %31 = vector.load %arg9[%c0_22, %c2_23] : memref<256x18xbf16, #tpu.memory_space<vmem>>, vector<16x2xbf16>
    tpu.vector_store %arg9[%c0_22, %c2_23], %30 {strides = array<i32>} : memref<256x18xbf16, #tpu.memory_space<vmem>>, vector<16x2xbf16>,
    %c0_24 = arith.constant 0 : index
    %c0_25 = arith.constant 0 : index
    %32 = vector.load %arg8[%c0_24, %c0_25] : memref<256x2xf32, #tpu.memory_space<vmem>>, vector<241x2xf32>
    %c15 = arith.constant 15 : index
    %c2_26 = arith.constant 2 : index
    %33 = vector.load %arg6[%c15, %c2_26] : memref<256x9xf32, #tpu.memory_space<vmem>>, vector<241x1xf32>
    %34 = vector.broadcast %33 : vector<241x1xf32> to vector<241x2xf32>
    %35 = arith.mulf %32, %34 : vector<241x2xf32>
    %36 = arith.truncf %35 : vector<241x2xf32> to vector<241x2xbf16>
    %c15_27 = arith.constant 15 : index
    %c4 = arith.constant 4 : index
    %37 = vector.load %arg9[%c15_27, %c4] : memref<256x18xbf16, #tpu.memory_space<vmem>>, vector<241x2xbf16>
    tpu.vector_store %arg9[%c15_27, %c4], %36 {strides = array<i32>} : memref<256x18xbf16, #tpu.memory_space<vmem>>, vector<241x2xbf16>,
    %cst_28 = arith.constant 0.000000e+00 : bf16
    %38 = vector.broadcast %cst_28 : bf16 to vector<15x2xbf16>
    %c0_29 = arith.constant 0 : index
    %c4_30 = arith.constant 4 : index
    %39 = vector.load %arg9[%c0_29, %c4_30] : memref<256x18xbf16, #tpu.memory_space<vmem>>, vector<15x2xbf16>
    tpu.vector_store %arg9[%c0_29, %c4_30], %38 {strides = array<i32>} : memref<256x18xbf16, #tpu.memory_space<vmem>>, vector<15x2xbf16>,
    %c0_31 = arith.constant 0 : index
    %c0_32 = arith.constant 0 : index
    %40 = vector.load %arg8[%c0_31, %c0_32] : memref<256x2xf32, #tpu.memory_space<vmem>>, vector<255x2xf32>
    %c1_33 = arith.constant 1 : index
    %c3 = arith.constant 3 : index
    %41 = vector.load %arg6[%c1_33, %c3] : memref<256x9xf32, #tpu.memory_space<vmem>>, vector<255x1xf32>
    %42 = vector.broadcast %41 : vector<255x1xf32> to vector<255x2xf32>
    %43 = arith.mulf %40, %42 : vector<255x2xf32>
    %44 = arith.truncf %43 : vector<255x2xf32> to vector<255x2xbf16>
    %c1_34 = arith.constant 1 : index
    %c6 = arith.constant 6 : index
    %45 = vector.load %arg9[%c1_34, %c6] : memref<256x18xbf16, #tpu.memory_space<vmem>>, vector<255x2xbf16>
    tpu.vector_store %arg9[%c1_34, %c6], %44 {strides = array<i32>} : memref<256x18xbf16, #tpu.memory_space<vmem>>, vector<255x2xbf16>,
    %cst_35 = arith.constant 0.000000e+00 : bf16
    %46 = vector.broadcast %cst_35 : bf16 to vector<1x2xbf16>
    %c0_36 = arith.constant 0 : index
    %c6_37 = arith.constant 6 : index
    %47 = vector.load %arg9[%c0_36, %c6_37] : memref<256x18xbf16, #tpu.memory_space<vmem>>, vector<1x2xbf16>
    tpu.vector_store %arg9[%c0_36, %c6_37], %46 {strides = array<i32>} : memref<256x18xbf16, #tpu.memory_space<vmem>>, vector<1x2xbf16>,
    %c0_38 = arith.constant 0 : index
    %c0_39 = arith.constant 0 : index
    %48 = vector.load %arg8[%c0_38, %c0_39] : memref<256x2xf32, #tpu.memory_space<vmem>>, vector<256x2xf32>
    %c0_40 = arith.constant 0 : index
    %c4_41 = arith.constant 4 : index
    %49 = vector.load %arg6[%c0_40, %c4_41] : memref<256x9xf32, #tpu.memory_space<vmem>>, vector<256x1xf32>
    %50 = vector.broadcast %49 : vector<256x1xf32> to vector<256x2xf32>
    %51 = arith.mulf %48, %50 : vector<256x2xf32>
    %52 = arith.truncf %51 : vector<256x2xf32> to vector<256x2xbf16>
    %c0_42 = arith.constant 0 : index
    %c8 = arith.constant 8 : index
    %53 = vector.load %arg9[%c0_42, %c8] : memref<256x18xbf16, #tpu.memory_space<vmem>>, vector<256x2xbf16>
    tpu.vector_store %arg9[%c0_42, %c8], %52 {strides = array<i32>} : memref<256x18xbf16, #tpu.memory_space<vmem>>, vector<256x2xbf16>,
    %c1_43 = arith.constant 1 : index
    %c0_44 = arith.constant 0 : index
    %54 = vector.load %arg8[%c1_43, %c0_44] : memref<256x2xf32, #tpu.memory_space<vmem>>, vector<255x2xf32>
    %c0_45 = arith.constant 0 : index
    %c5 = arith.constant 5 : index
    %55 = vector.load %arg6[%c0_45, %c5] : memref<256x9xf32, #tpu.memory_space<vmem>>, vector<255x1xf32>
    %56 = vector.broadcast %55 : vector<255x1xf32> to vector<255x2xf32>
    %57 = arith.mulf %54, %56 : vector<255x2xf32>
    %58 = arith.truncf %57 : vector<255x2xf32> to vector<255x2xbf16>
    %c0_46 = arith.constant 0 : index
    %c10 = arith.constant 10 : index
    %59 = vector.load %arg9[%c0_46, %c10] : memref<256x18xbf16, #tpu.memory_space<vmem>>, vector<255x2xbf16>
    tpu.vector_store %arg9[%c0_46, %c10], %58 {strides = array<i32>} : memref<256x18xbf16, #tpu.memory_space<vmem>>, vector<255x2xbf16>,
    %cst_47 = arith.constant 0.000000e+00 : bf16
    %60 = vector.broadcast %cst_47 : bf16 to vector<1x2xbf16>
    %c255 = arith.constant 255 : index
    %c10_48 = arith.constant 10 : index
    %61 = vector.load %arg9[%c255, %c10_48] : memref<256x18xbf16, #tpu.memory_space<vmem>>, vector<1x2xbf16>
    tpu.vector_store %arg9[%c255, %c10_48], %60 {strides = array<i32>} : memref<256x18xbf16, #tpu.memory_space<vmem>>, vector<1x2xbf16>,
    %c15_49 = arith.constant 15 : index
    %c0_50 = arith.constant 0 : index
    %62 = vector.load %arg8[%c15_49, %c0_50] : memref<256x2xf32, #tpu.memory_space<vmem>>, vector<241x2xf32>
    %c0_51 = arith.constant 0 : index
    %c6_52 = arith.constant 6 : index
    %63 = vector.load %arg6[%c0_51, %c6_52] : memref<256x9xf32, #tpu.memory_space<vmem>>, vector<241x1xf32>
    %64 = vector.broadcast %63 : vector<241x1xf32> to vector<241x2xf32>
    %65 = arith.mulf %62, %64 : vector<241x2xf32>
    %66 = arith.truncf %65 : vector<241x2xf32> to vector<241x2xbf16>
    %c0_53 = arith.constant 0 : index
    %c12 = arith.constant 12 : index
    %67 = vector.load %arg9[%c0_53, %c12] : memref<256x18xbf16, #tpu.memory_space<vmem>>, vector<241x2xbf16>
    tpu.vector_store %arg9[%c0_53, %c12], %66 {strides = array<i32>} : memref<256x18xbf16, #tpu.memory_space<vmem>>, vector<241x2xbf16>,
    %cst_54 = arith.constant 0.000000e+00 : bf16
    %68 = vector.broadcast %cst_54 : bf16 to vector<15x2xbf16>
    %c241 = arith.constant 241 : index
    %c12_55 = arith.constant 12 : index
    %69 = vector.load %arg9[%c241, %c12_55] : memref<256x18xbf16, #tpu.memory_space<vmem>>, vector<15x2xbf16>
    tpu.vector_store %arg9[%c241, %c12_55], %68 {strides = array<i32>} : memref<256x18xbf16, #tpu.memory_space<vmem>>, vector<15x2xbf16>,
    %c16_56 = arith.constant 16 : index
    %c0_57 = arith.constant 0 : index
    %70 = vector.load %arg8[%c16_56, %c0_57] : memref<256x2xf32, #tpu.memory_space<vmem>>, vector<240x2xf32>
    %c0_58 = arith.constant 0 : index
    %c7 = arith.constant 7 : index
    %71 = vector.load %arg6[%c0_58, %c7] : memref<256x9xf32, #tpu.memory_space<vmem>>, vector<240x1xf32>
    %72 = vector.broadcast %71 : vector<240x1xf32> to vector<240x2xf32>
    %73 = arith.mulf %70, %72 : vector<240x2xf32>
    %74 = arith.truncf %73 : vector<240x2xf32> to vector<240x2xbf16>
    %c0_59 = arith.constant 0 : index
    %c14 = arith.constant 14 : index
    %75 = vector.load %arg9[%c0_59, %c14] : memref<256x18xbf16, #tpu.memory_space<vmem>>, vector<240x2xbf16>
    tpu.vector_store %arg9[%c0_59, %c14], %74 {strides = array<i32>} : memref<256x18xbf16, #tpu.memory_space<vmem>>, vector<240x2xbf16>,
    %cst_60 = arith.constant 0.000000e+00 : bf16
    %76 = vector.broadcast %cst_60 : bf16 to vector<16x2xbf16>
    %c240 = arith.constant 240 : index
    %c14_61 = arith.constant 14 : index
    %77 = vector.load %arg9[%c240, %c14_61] : memref<256x18xbf16, #tpu.memory_space<vmem>>, vector<16x2xbf16>
    tpu.vector_store %arg9[%c240, %c14_61], %76 {strides = array<i32>} : memref<256x18xbf16, #tpu.memory_space<vmem>>, vector<16x2xbf16>,
    %c17_62 = arith.constant 17 : index
    %c0_63 = arith.constant 0 : index
    %78 = vector.load %arg8[%c17_62, %c0_63] : memref<256x2xf32, #tpu.memory_space<vmem>>, vector<239x2xf32>
    %c0_64 = arith.constant 0 : index
    %c8_65 = arith.constant 8 : index
    %79 = vector.load %arg6[%c0_64, %c8_65] : memref<256x9xf32, #tpu.memory_space<vmem>>, vector<239x1xf32>
    %80 = vector.broadcast %79 : vector<239x1xf32> to vector<239x2xf32>
    %81 = arith.mulf %78, %80 : vector<239x2xf32>
    %82 = arith.truncf %81 : vector<239x2xf32> to vector<239x2xbf16>
    %c0_66 = arith.constant 0 : index
    %c16_67 = arith.constant 16 : index
    %83 = vector.load %arg9[%c0_66, %c16_67] : memref<256x18xbf16, #tpu.memory_space<vmem>>, vector<239x2xbf16>
    tpu.vector_store %arg9[%c0_66, %c16_67], %82 {strides = array<i32>} : memref<256x18xbf16, #tpu.memory_space<vmem>>, vector<239x2xbf16>,
    %cst_68 = arith.constant 0.000000e+00 : bf16
    %84 = vector.broadcast %cst_68 : bf16 to vector<17x2xbf16>
    %c239 = arith.constant 239 : index
    %c16_69 = arith.constant 16 : index
    %85 = vector.load %arg9[%c239, %c16_69] : memref<256x18xbf16, #tpu.memory_space<vmem>>, vector<17x2xbf16>
    tpu.vector_store %arg9[%c239, %c16_69], %84 {strides = array<i32>} : memref<256x18xbf16, #tpu.memory_space<vmem>>, vector<17x2xbf16>,
    %c0_70 = arith.constant 0 : index
    %c0_71 = arith.constant 0 : index
    %86 = vector.load %arg9[%c0_70, %c0_71] : memref<256x18xbf16, #tpu.memory_space<vmem>>, vector<256x18xbf16>
    %c0_72 = arith.constant 0 : index
    %c0_73 = arith.constant 0 : index
    %87 = vector.load %arg4[%c0_72, %c0_73] : memref<18x4xbf16, #tpu.memory_space<vmem>>, vector<18x4xbf16>
    %cst_74 = arith.constant dense<0.000000e+00> : vector<256x4xf32>
    %88 = tpu.matmul %86, %87, %cst_74 {dimension_numbers = #tpu.dot_dimension_numbers<[1], [0], [0], [1], [0, 0, 1, 1], [], []>} : vector<256x18xbf16>, vector<18x4xbf16>, vector<256x4xf32> -> vector<256x4xf32>
    %c0_75 = arith.constant 0 : index
    %c0_76 = arith.constant 0 : index
    %89 = vector.load %arg5[%c0_75, %c0_76] : memref<1x4xf32, #tpu.memory_space<vmem>>, vector<1x4xf32>
    %90 = vector.broadcast %89 : vector<1x4xf32> to vector<256x4xf32>
    %91 = arith.addf %88, %90 : vector<256x4xf32>
    %92 = arith.negf %91 : vector<256x4xf32>
    %93 = math.exp %92 : vector<256x4xf32>
    %cst_77 = arith.constant 1.000000e+00 : f32
    %94 = vector.broadcast %cst_77 : f32 to vector<256x4xf32>
    %95 = arith.addf %94, %93 : vector<256x4xf32>
    %96 = arith.divf %94, %95 : vector<256x4xf32>
    %97 = arith.mulf %91, %96 : vector<256x4xf32>
    %98 = arith.addf %97, %2 : vector<256x4xf32>
    %99 = vector.shape_cast %98 : vector<256x4xf32> to vector<16x16x4xf32>
    %c0_78 = arith.constant 0 : index
    %c0_79 = arith.constant 0 : index
    %c0_80 = arith.constant 0 : index
    %c0_81 = arith.constant 0 : index
    %100 = vector.load %arg7[%c0_78, %c0_79, %c0_80, %c0_81] : memref<1x16x16x4xf32, #tpu.memory_space<vmem>>, vector<1x16x16x4xf32>
    %101 = vector.shape_cast %100 : vector<1x16x16x4xf32> to vector<16x16x4xf32>
    %102 = vector.shape_cast %99 : vector<16x16x4xf32> to vector<1x16x16x4xf32>
    tpu.vector_store %arg7[%c0_78, %c0_79, %c0_80, %c0_81], %102 {strides = array<i32>} : memref<1x16x16x4xf32, #tpu.memory_space<vmem>>, vector<1x16x16x4xf32>,
    return
  }
  func.func @transform_0(%arg0: i32) -> (i32, i32, i32, i32) {
    %c0_i32 = arith.constant 0 : i32
    %c0_i32_0 = arith.constant 0 : i32
    %c0_i32_1 = arith.constant 0 : i32
    %c0_i32_2 = arith.constant 0 : i32
    return %arg0, %c0_i32, %c0_i32_0, %c0_i32_1 : i32, i32, i32, i32
  }
  func.func @transform_1(%arg0: i32) -> (i32, i32) {
    %c0_i32 = arith.constant 0 : i32
    %c0_i32_0 = arith.constant 0 : i32
    %c0_i32_1 = arith.constant 0 : i32
    return %c0_i32, %c0_i32_0 : i32, i32
  }
  func.func @transform_2(%arg0: i32) -> (i32, i32) {
    %c0_i32 = arith.constant 0 : i32
    %c0_i32_0 = arith.constant 0 : i32
    %c0_i32_1 = arith.constant 0 : i32
    return %c0_i32, %c0_i32_0 : i32, i32
  }
  func.func @transform_3(%arg0: i32) -> (i32, i32) {
    %c0_i32 = arith.constant 0 : i32
    %c0_i32_0 = arith.constant 0 : i32
    %c0_i32_1 = arith.constant 0 : i32
    return %c0_i32, %c0_i32_0 : i32, i32
  }
  func.func @transform_4(%arg0: i32) -> (i32, i32) {
    %c0_i32 = arith.constant 0 : i32
    %c0_i32_0 = arith.constant 0 : i32
    %c0_i32_1 = arith.constant 0 : i32
    return %c0_i32, %c0_i32_0 : i32, i32
  }
  func.func @transform_5(%arg0: i32) -> (i32, i32) {
    %c0_i32 = arith.constant 0 : i32
    %c0_i32_0 = arith.constant 0 : i32
    %c0_i32_1 = arith.constant 0 : i32
    return %c0_i32, %c0_i32_0 : i32, i32
  }
  func.func @transform_6(%arg0: i32) -> (i32, i32, i32, i32) {
    %c0_i32 = arith.constant 0 : i32
    %c0_i32_0 = arith.constant 0 : i32
    %c0_i32_1 = arith.constant 0 : i32
    %c0_i32_2 = arith.constant 0 : i32
    return %arg0, %c0_i32, %c0_i32_0, %c0_i32_1 : i32, i32, i32, i32
  }
}

</mosaic_0001>

<bundles_post_ra>
// kernel: tpu_custom_call.1
= control target key start
LH: loop header
LB: loop body
LE: loop exit
PB: predicated region body
PF: predicated region fallthrough
CT: control target
= control target key end

     0   :  { %s7748_s21 = smov 0   ;;  %s10873_s0 = inlined_call_operand.vmem [shape: f32[2,16,16,4], index: 0, kind: input, shape index: {}]   ;;  %s10874_s1 = inlined_call_operand.vmem [shape: bf16[4,2], index: 1, kind: input, shape index: {}]   ;;  %s10875_s2 = inlined_call_operand.vmem [shape: f32[1,2], index: 2, kind: input, shape index: {}]   ;;  %s10876_s3 = inlined_call_operand.vmem [shape: bf16[18,4], index: 3, kind: input, shape index: {}]   ;;  %s10877_s4 = inlined_call_operand.vmem [shape: f32[1,4], index: 4, kind: input, shape index: {}]   ;;  %s10878_s5 = inlined_call_operand.vmem [shape: f32[256,9], index: 5, kind: input, shape index: {}]   ;;  %s10879_s6 = inlined_call_operand.vmem [shape: f32[2,16,16,4], index: 6, kind: output, shape index: {}]  }
   0x1 LB: > { %s6519_s22 = sadd.s32 4294967295, %s7694_s21   ;;  %p6523_p0 = scmp.ge.s32.totalorder %s7694_s21, 1  ;;  %s7694_s21 = sphi %s7748_s21, %s16_s21  }
   0x2   : > { %p212_p1 = scmp.lt.s32.totalorder %s7694_s21, 3 }
   0x4   : > { %p213_p2 = pnand %p6523_p0, %p212_p1 }
   0x6   : > { %216 = sbr.rel (%p213_p2) target bundleno = 1778 (0x6f2), region = 44 }
   0xb   : > { %v7759_v0 = vld [vmem:[%s10878_s5 + $0x21] sm:$0xff]  ;;  %v7764_v1 = vld [vmem:[%s10878_s5 + $0x11] sm:$0xff]  ;;  %vm358_vm0 = vcmask 1041408   ;;  %p242_p3 = scmp.lt.s32.totalorder %s6519_s22, 1  ;;  %v10880_v2 = vmov 0   ;;  %v813_v5 = vld [vmem:[%s10878_s5 + $0x29] sm:$0xff] }
   0xc   : > { %7337 = vset.pattern.permute.xlu1 %v10880_v2  ;;  %7336 = vset.pattern.permute.xlu0 %v10880_v2  ;;  %v301_v3 = vld [vmem:[%s10874_s1] sm:$0x3]  ;;  %v814_v8 = vld [vmem:[%s10878_s5 + $0x31] sm:$0xff]  ;;  %vm309_vm1 = vcmask 31744   ;;  %v817_v18 = vld [vmem:[%s10878_s5 + $0x49] sm:$0xff]  ;;  %vm1411_vm2 = vcmask 11264  }
   0xd   : > { %852 = vperm.xlu1 %7337, %v7759_v0   ;;  %842 = vperm.xlu0 %7336, %v7764_v1   ;;  %v360_v4 = vsel %vm358_vm0, %v301_v3, 0  ;;  %s11008_s22 = smov (!%p242_p3, %s6519_s22), 1  ;;  %v7781_v6 = vld [vmem:[%s10878_s5 + $0x19] sm:$0xff]  ;;  %v816_v19 = vld [vmem:[%s10878_s5 + $0x41] sm:$0xff]  ;;  %v818_v25 = vld [vmem:[%s10878_s5 + $0x51] sm:$0xff]  ;;  %vm747_vm3 = vcmask 15360  }
   0xe   : > { %7309 = vmatprep.subr.msk.bf16.mxu0 %vm358_vm0, %v301_v3  ;;  %s6924_s9 = sshll.u32 %s11008_s22, 8  ;;  %v815_v7 = vld [vmem:[%s10878_s5 + $0x39] sm:$0xff]  ;;  %v821_v28 = vld [vmem:[%s10878_s5 + $0x69] sm:$0xff]  ;;  %v820_v29 = vld [vmem:[%s10878_s5 + $0x61] sm:$0xff]  ;;  %1447 = vst.msk [vmem:[#allocation3] sm:$0xf] %vm1411_vm2, %v10880_v2 }
   0xf   : > { %7240 = vmatpush3.bf16.msra.mxu0 %v360_v4  ;;  %s7789_s12 = scalar_lea.vmem %s10873_s0, %s6924_s9  ;;  %v819_v24 = vld [vmem:[%s10878_s5 + $0x59] sm:$0xff]  ;;  %v822_v35 = vld [vmem:[%s10878_s5 + $0x71] sm:$0xff]  ;;  %v825_v38 = vld [vmem:[%s10878_s5 + $0x89] sm:$0xff]  ;;  %1448 = vst.msk [vmem:[#allocation3 + $0x4] sm:$0xf] %vm1411_vm2, %v10880_v2  ;;  %s7700_s13 = smov 2  }
  0x10   : > { %v253_v9 = vld [vmem:[%s7789_s12] sm:$0xff]  ;;  %v254_v10 = vld [vmem:[%s7789_s12 + $0x8] sm:$0xff]  ;;  %v255_v11 = vld [vmem:[%s7789_s12 + $0x10] sm:$0xff]  ;;  %vm2249_vm4 = vsmask.f32 3328  ;;  %s7701_s14 = smov 4  }
  0x11   : > { %857 = vperm.xlu1 %7337, %v813_v5   ;;  %847 = vperm.xlu0 %7336, %v7781_v6   ;;  %v285_v12 = vpack.c.bf16 %v254_v10, %v253_v9  ;;  %v256_v13 = vld [vmem:[%s7789_s12 + $0x18] sm:$0xff]  ;;  %v257_v14 = vld [vmem:[%s7789_s12 + $0x20] sm:$0xff]  ;;  %v258_v15 = vld [vmem:[%s7789_s12 + $0x28] sm:$0xff]  ;;  %vm2250_vm5 = vsmask.f32 7440  ;;  %vm1874_vm7 = vcmask 27664  }
  0x12   : > { %v286_v16 = vpack.c.bf16 %v256_v13, %v255_v11  ;;  %v287_v17 = vpack.c.bf16 %v258_v15, %v257_v14  ;;  %v259_v20 = vld [vmem:[%s7789_s12 + $0x30] sm:$0xff]  ;;  %v260_v21 = vld [vmem:[%s7789_s12 + $0x38] sm:$0xff]  ;;  %v261_v22 = vld [vmem:[%s7789_s12 + $0x40] sm:$0xff]  ;;  %vm1110_vm8 = vsmask.f32 256  ;;  %vm2655_vm11 = vcmask 44064  }
  0x13   : > { %7241 = vmatprep.mubr.msk.bf16.mxu0 %vm309_vm1, %v285_v12  ;;  %v262_v23 = vld [vmem:[%s7789_s12 + $0x48] sm:$0xff]  ;;  %v288_v26 = vpack.c.bf16 %v260_v21, %v259_v20  ;;  %v263_v30 = vld [vmem:[%s7789_s12 + $0x50] sm:$0xff]  ;;  %v264_v31 = vld [vmem:[%s7789_s12 + $0x58] sm:$0xff]  ;;  %vm1111_vm9 = vsmask.f32 4368  ;;  %vm1449_vm14 = vcmask 8192  }
  0x14   : > { %7242 = vmatmul.mubr.msk.bf16.vlgmr.msra.gmra.mxu0 %vm309_vm1, %v286_v16  ;;  %v289_v27 = vpack.c.bf16 %v262_v23, %v261_v22  ;;  %v265_v32 = vld [vmem:[%s7789_s12 + $0x60] sm:$0xff]  ;;  %v266_v33 = vld [vmem:[%s7789_s12 + $0x68] sm:$0xff]  ;;  %v290_v36 = vpack.c.bf16 %v264_v31, %v263_v30  ;;  %v267_v40 = vld [vmem:[%s7789_s12 + $0x70] sm:$0xff]  ;;  %v7697_v22 = vmov 1   ;;  %vm1412_vm10 = vsmask.f32 7938 }
  0x15   : > { %867 = vperm.xlu1 %7337, %v815_v7   ;;  %862 = vperm.xlu0 %7336, %v814_v8   ;;  %v823_v34 = vld [vmem:[%s10878_s5 + $0x79] sm:$0xff]  ;;  %v291_v37 = vpack.c.bf16 %v266_v33, %v265_v32  ;;  %v824_v39 = vld [vmem:[%s10878_s5 + $0x81] sm:$0xff]  ;;  %v826_v45 = vld [vmem:[%s10878_s5 + $0x91] sm:$0xff]  ;;  %vm2649_vm15 = vcmask 44067   ;;  %s7702_s7 = smov 6   ;;  %s7707_s17 = smov 10  }
  0x16   : > { %7245 = vmatprep.mubr.msk.bf16.mxu0 %vm309_vm1, %v287_v17  ;;  %v268_v41 = vld [vmem:[%s7789_s12 + $0x78] sm:$0xff]  ;;  %v269_v42 = vld [vmem:[%s7789_s12 + $0x80] sm:$0xff]  ;;  %v270_v43 = vld [vmem:[%s7789_s12 + $0x88] sm:$0xff]  ;;  %s7710_s20 = smov 12   ;;  %s7711_s23 = smov 14  }
  0x17   : > { %v827_v44 = vld [vmem:[%s10878_s5 + $0x99] sm:$0xff]  ;;  %v292_v46 = vpack.c.bf16 %v268_v41, %v267_v40  ;;  %v293_v47 = vpack.c.bf16 %v270_v43, %v269_v42  ;;  %v829_v48 = vld [vmem:[%s10878_s5 + $0xa9] sm:$0xff]  ;;  %v828_v49 = vld [vmem:[%s10878_s5 + $0xa1] sm:$0xff]  ;;  %s7712_s26 = smov 16  }
  0x18   : > { %v271_v50 = vld [vmem:[%s7789_s12 + $0x90] sm:$0xff]  ;;  %v272_v51 = vld [vmem:[%s7789_s12 + $0x98] sm:$0xff]  ;;  %v273_v52 = vld [vmem:[%s7789_s12 + $0xa0] sm:$0xff] }
  0x19   : > { %877 = vperm.xlu1 %7337, %v817_v18   ;;  %872 = vperm.xlu0 %7336, %v816_v19   ;;  %v274_v53 = vld [vmem:[%s7789_s12 + $0xa8] sm:$0xff]  ;;  %v831_v54 = vld [vmem:[%s10878_s5 + $0xb9] sm:$0xff]  ;;  %v830_v55 = vld [vmem:[%s10878_s5 + $0xb1] sm:$0xff]  ;;  %v294_v56 = vpack.c.bf16 %v272_v51, %v271_v50 }
  0x1a   : > { %v295_v57 = vpack.c.bf16 %v274_v53, %v273_v52  ;;  %v833_v58 = vld [vmem:[%s10878_s5 + $0xc9] sm:$0xff]  ;;  %v832_v59 = vld [vmem:[%s10878_s5 + $0xc1] sm:$0xff]  ;;  %v276_v61 = vld [vmem:[%s7789_s12 + $0xb8] sm:$0xff] }
  0x1b   : > { %v275_v60 = vld [vmem:[%s7789_s12 + $0xb0] sm:$0xff]  ;;  %v277_v62 = vld [vmem:[%s7789_s12 + $0xc0] sm:$0xff]  ;;  %v278_v63 = vld [vmem:[%s7789_s12 + $0xc8] sm:$0xff] }
  0x1c   : > { %7246 = vmatmul.mubr.msk.bf16.gmra.mxu0 %vm309_vm1, %v288_v26  ;;  %v835_v3 = vld [vmem:[%s10878_s5 + $0xd9] sm:$0xff]  ;;  %v834_v4 = vld [vmem:[%s10878_s5 + $0xd1] sm:$0xff]  ;;  %v296_v5 = vpack.c.bf16 %v276_v61, %v275_v60  ;;  %v297_v7 = vpack.c.bf16 %v278_v63, %v277_v62  ;;  %v837_v8 = vld [vmem:[%s10878_s5 + $0xe9] sm:$0xff] }
  0x1d   : > { %887 = vperm.xlu1 %7337, %v819_v24   ;;  %882 = vperm.xlu0 %7336, %v818_v25   ;;  %v836_v9 = vld [vmem:[%s10878_s5 + $0xe1] sm:$0xff]  ;;  %v279_v10 = vld [vmem:[%s7789_s12 + $0xd0] sm:$0xff]  ;;  %v280_v11 = vld [vmem:[%s7789_s12 + $0xd8] sm:$0xff] }
  0x1e   : > { %7249 = vmatprep.mubr.msk.bf16.mxu0 %vm309_vm1, %v289_v27  ;;  %v281_v12 = vld [vmem:[%s7789_s12 + $0xe0] sm:$0xff]  ;;  %v282_v13 = vld [vmem:[%s7789_s12 + $0xe8] sm:$0xff]  ;;  %v839_v14 = vld [vmem:[%s10878_s5 + $0xf9] sm:$0x7f]  ;;  %v298_v16 = vpack.c.bf16 %v280_v11, %v279_v10 }
  0x1f   : > { %v838_v15 = vld [vmem:[%s10878_s5 + $0xf1] sm:$0xff]  ;;  %v299_v17 = vpack.c.bf16 %v282_v13, %v281_v12  ;;  %v1486_v24 = vld [vmem:[%s10878_s5 + $0x20] sm:$0xff]  ;;  %v1487_v25 = vld [vmem:[%s10878_s5 + $0x28] sm:$0xff] }
  0x20   : > { %v1485_v18 = vld [vmem:[%s10878_s5 + $0x18] sm:$0xff]  ;;  %v1484_v19 = vld [vmem:[%s10878_s5 + $0x10] sm:$0xff]  ;;  %v1494_v32 = vld [vmem:[%s10878_s5 + $0x60] sm:$0xff] }
  0x21   : > { %897 = vperm.xlu1 %7337, %v821_v28   ;;  %892 = vperm.xlu0 %7336, %v820_v29   ;;  %v283_v20 = vld [vmem:[%s7789_s12 + $0xf0] sm:$0xff]  ;;  %v284_v21 = vld [vmem:[%s7789_s12 + $0xf8] sm:$0xff]  ;;  %v1490_v28 = vld [vmem:[%s10878_s5 + $0x40] sm:$0xff] }
  0x22   : > { %v300_v23 = vpack.c.bf16 %v284_v21, %v283_v20  ;;  %v1488_v26 = vld [vmem:[%s10878_s5 + $0x30] sm:$0xff]  ;;  %v1489_v27 = vld [vmem:[%s10878_s5 + $0x38] sm:$0xff]  ;;  %v1491_v29 = vld [vmem:[%s10878_s5 + $0x48] sm:$0xff] }
  0x23   : > { %v1492_v30 = vld [vmem:[%s10878_s5 + $0x50] sm:$0xff]  ;;  %v1493_v31 = vld [vmem:[%s10878_s5 + $0x58] sm:$0xff]  ;;  %v1495_v33 = vld [vmem:[%s10878_s5 + $0x68] sm:$0xff] }
  0x24   : > { %7250 = vmatmul.mubr.msk.bf16.gmra.mxu0 %vm309_vm1, %v290_v36  ;;  %v1498_v36 = vld [vmem:[%s10878_s5 + $0x80] sm:$0xff]  ;;  %v1503_v41 = vld [vmem:[%s10878_s5 + $0xa8] sm:$0xff]  ;;  %v1504_v42 = vld [vmem:[%s10878_s5 + $0xb0] sm:$0xff] }
  0x25   : > { %907 = vperm.xlu1 %7337, %v823_v34   ;;  %902 = vperm.xlu0 %7336, %v822_v35   ;;  %v1496_v34 = vld [vmem:[%s10878_s5 + $0x70] sm:$0xff]  ;;  %v1497_v35 = vld [vmem:[%s10878_s5 + $0x78] sm:$0xff]  ;;  %v1502_v40 = vld [vmem:[%s10878_s5 + $0xa0] sm:$0xff] }
  0x26   : > { %7253 = vmatprep.mubr.msk.bf16.mxu0 %vm309_vm1, %v291_v37  ;;  %v1499_v37 = vld [vmem:[%s10878_s5 + $0x88] sm:$0xff]  ;;  %v1505_v43 = vld [vmem:[%s10878_s5 + $0xb8] sm:$0xff]  ;;  %v1512_v50 = vld [vmem:[%s10878_s5 + $0xf0] sm:$0xff] }
  0x27   : > { %v1513_v51 = vld [vmem:[%s10878_s5 + $0xf8] sm:$0xff]  ;;  %v1938_v52 = vld [vmem:[%s10878_s5 + $0xf] sm:$0xff]  ;;  %v1941_v61 = vld [vmem:[%s10878_s5 + $0x27] sm:$0xff] }
  0x28   : > { %v1939_v53 = vld [vmem:[%s10878_s5 + $0x17] sm:$0xff]  ;;  %v1944_v62 = vld [vmem:[%s10878_s5 + $0x3f] sm:$0xff]  ;;  %vm8461_vm6 = vmor %vm2249_vm4, %vm2250_vm5 }
  0x29   : > { %917 = vperm.xlu1 %7337, %v825_v38   ;;  %912 = vperm.xlu0 %7336, %v824_v39   ;;  %v1500_v38 = vld [vmem:[%s10878_s5 + $0x90] sm:$0xff]  ;;  %v1501_v39 = vld [vmem:[%s10878_s5 + $0x98] sm:$0xff]  ;;  %vm8959_vm12 = vmor %vm1110_vm8, %vm1111_vm9 }
  0x2a   : > { %v1948_v10 = vld [vmem:[%s10878_s5 + $0x5f] sm:$0xff]  ;;  %v1947_v13 = vld [vmem:[%s10878_s5 + $0x57] sm:$0xff]  ;;  %vm8979_vm13 = vmand %vm1411_vm2, %vm1412_vm10 }
  0x2b   : > { %v1951_v21 = vld [vmem:[%s10878_s5 + $0x77] sm:$0xff]  ;;  %vm9033_vm0 = vmand %vm1449_vm14, %vm1110_vm8 }
  0x2c   : > { %7254 = vmatmul.mubr.msk.bf16.gmra.mxu0 %vm309_vm1, %v292_v46  ;;  %v1508_v46 = vld [vmem:[%s10878_s5 + $0xd0] sm:$0xff]  ;;  %vm9142_vm9 = vmand %vm2655_vm11, %vm2249_vm4 }
  0x2d   : > { %927 = vperm.xlu1 %7337, %v827_v44   ;;  %922 = vperm.xlu0 %7336, %v826_v45   ;;  %v1506_v44 = vld [vmem:[%s10878_s5 + $0xc0] sm:$0xff]  ;;  %v1507_v45 = vld [vmem:[%s10878_s5 + $0xc8] sm:$0xff] }
  0x2e   : > { %7257 = vmatprep.mubr.msk.bf16.mxu0 %vm309_vm1, %v293_v47  ;;  %v1509_v47 = vld [vmem:[%s10878_s5 + $0xd8] sm:$0xff] }
  0x31   : > { %937 = vperm.xlu1 %7337, %v829_v48   ;;  %932 = vperm.xlu0 %7336, %v828_v49   ;;  %v1510_v48 = vld [vmem:[%s10878_s5 + $0xe0] sm:$0xff]  ;;  %v1511_v49 = vld [vmem:[%s10878_s5 + $0xe8] sm:$0xff] }
  0x34   : > { %7258 = vmatmul.mubr.msk.bf16.gmra.mxu0 %vm309_vm1, %v294_v56 }
  0x35   : > { %947 = vperm.xlu1 %7337, %v831_v54   ;;  %942 = vperm.xlu0 %7336, %v830_v55   ;;  %v7698_v54 = vmov 2  }
  0x36   : > { %7261 = vmatprep.mubr.msk.bf16.mxu0 %vm309_vm1, %v295_v57  ;;  %v1940_v57 = vld [vmem:[%s10878_s5 + $0x1f] sm:$0xff] }
  0x39   : > { %957 = vperm.xlu1 %7337, %v833_v58   ;;  %952 = vperm.xlu0 %7336, %v832_v59   ;;  %v1942_v58 = vld [vmem:[%s10878_s5 + $0x2f] sm:$0xff] }
  0x3c   : > { %7262 = vmatmul.mubr.msk.bf16.gmra.mxu0 %vm309_vm1, %v296_v5  ;;  %v1946_v5 = vld [vmem:[%s10878_s5 + $0x4f] sm:$0xff] }
  0x3d   : > { %967 = vperm.xlu1 %7337, %v835_v3   ;;  %962 = vperm.xlu0 %7336, %v834_v4   ;;  %v1943_v4 = vld [vmem:[%s10878_s5 + $0x37] sm:$0xff] }
  0x3e   : > { %7265 = vmatprep.mubr.msk.bf16.mxu0 %vm309_vm1, %v297_v7 }
  0x41   : > { %977 = vperm.xlu1 %7337, %v837_v8   ;;  %972 = vperm.xlu0 %7336, %v836_v9   ;;  %v1945_v9 = vld [vmem:[%s10878_s5 + $0x47] sm:$0xff] }
  0x44   : > { %7266 = vmatmul.mubr.msk.bf16.gmra.mxu0 %vm309_vm1, %v298_v16 }
  0x45   : > { %987 = vperm.xlu1 %7337, %v839_v14   ;;  %982 = vperm.xlu0 %7336, %v838_v15   ;;  %v1950_v14 = vld [vmem:[%s10878_s5 + $0x6f] sm:$0xff] }
  0x46   : > { %7269 = vmatprep.mubr.msk.bf16.mxu0 %vm309_vm1, %v299_v17  ;;  %v1949_v17 = vld [vmem:[%s10878_s5 + $0x67] sm:$0xff] }
  0x49   : > { %7339 = vset.pattern.permute.xlu1 %v7697_v22  ;;  %7338 = vset.pattern.permute.xlu0 %v7697_v22  ;;  %v1954_v22 = vld [vmem:[%s10878_s5 + $0x8f] sm:$0xff] }
  0x4a   : > { %1521 = vperm.xlu1 %7339, %v1485_v18   ;;  %1516 = vperm.xlu0 %7338, %v1484_v19   ;;  %v1952_v18 = vld [vmem:[%s10878_s5 + $0x7f] sm:$0xff] }
  0x4c   : > { %7270 = vmatmul.mubr.msk.bf16.gmra.mxu0 %vm309_vm1, %v300_v23 }
  0x4e   : > { %1526 = vperm.xlu1 %7339, %v1486_v24   ;;  %1531 = vperm.xlu0 %7338, %v1487_v25   ;;  %v1953_v25 = vld [vmem:[%s10878_s5 + $0x87] sm:$0xff] }
  0x52   : > { %1536 = vperm.xlu1 %7339, %v1488_v26   ;;  %1541 = vperm.xlu0 %7338, %v1489_v27   ;;  %v1956_v26 = vld [vmem:[%s10878_s5 + $0x9f] sm:$0xff] }
  0x56   : > { %1546 = vperm.xlu1 %7339, %v1490_v28   ;;  %1551 = vperm.xlu0 %7338, %v1491_v29   ;;  %v1955_v29 = vld [vmem:[%s10878_s5 + $0x97] sm:$0xff] }
  0x5a   : > { %1556 = vperm.xlu1 %7339, %v1492_v30   ;;  %1561 = vperm.xlu0 %7338, %v1493_v31   ;;  %v1958_v30 = vld [vmem:[%s10878_s5 + $0xaf] sm:$0xff] }
  0x5e   : > { %1566 = vperm.xlu1 %7339, %v1494_v32   ;;  %1571 = vperm.xlu0 %7338, %v1495_v33   ;;  %v1957_v33 = vld [vmem:[%s10878_s5 + $0xa7] sm:$0xff] }
  0x62   : > { %1576 = vperm.xlu1 %7339, %v1496_v34   ;;  %1581 = vperm.xlu0 %7338, %v1497_v35   ;;  %v1960_v34 = vld [vmem:[%s10878_s5 + $0xbf] sm:$0xff] }
  0x66   : > { %1586 = vperm.xlu1 %7339, %v1498_v36   ;;  %1591 = vperm.xlu0 %7338, %v1499_v37   ;;  %v1959_v37 = vld [vmem:[%s10878_s5 + $0xb7] sm:$0xff] }
  0x6a   : > { %1596 = vperm.xlu1 %7339, %v1500_v38   ;;  %1601 = vperm.xlu0 %7338, %v1501_v39   ;;  %v1962_v38 = vld [vmem:[%s10878_s5 + $0xcf] sm:$0xff] }
  0x6e   : > { %1606 = vperm.xlu1 %7339, %v1502_v40   ;;  %1611 = vperm.xlu0 %7338, %v1503_v41   ;;  %v1961_v41 = vld [vmem:[%s10878_s5 + $0xc7] sm:$0xff] }
  0x72   : > { %1616 = vperm.xlu1 %7339, %v1504_v42   ;;  %1621 = vperm.xlu0 %7338, %v1505_v43   ;;  %v1964_v42 = vld [vmem:[%s10878_s5 + $0xdf] sm:$0xff] }
  0x76   : > { %1626 = vperm.xlu1 %7339, %v1506_v44   ;;  %1631 = vperm.xlu0 %7338, %v1507_v45   ;;  %v1963_v45 = vld [vmem:[%s10878_s5 + $0xd7] sm:$0xff] }
  0x7a   : > { %1636 = vperm.xlu1 %7339, %v1508_v46   ;;  %1641 = vperm.xlu0 %7338, %v1509_v47   ;;  %v1966_v46 = vld [vmem:[%s10878_s5 + $0xef] sm:$0xff] }
  0x7e   : > { %1646 = vperm.xlu1 %7339, %v1510_v48   ;;  %1651 = vperm.xlu0 %7338, %v1511_v49   ;;  %v1965_v49 = vld [vmem:[%s10878_s5 + $0xe7] sm:$0xff] }
  0x82   : > { %1656 = vperm.xlu1 %7339, %v1512_v50   ;;  %1661 = vperm.xlu0 %7338, %v1513_v51   ;;  %v1968_v50 = vld [vmem:[%s10878_s5 + $0xff] sm:$0x1] }
  0x86   : > { %7340 = vset.pattern.permute.xlu1 %v7698_v54  ;;  %7341 = vset.pattern.permute.xlu0 %v7698_v54  ;;  %v2724_v54 = vld [vmem:[%s10878_s5 + $0x1] sm:$0xff] }
  0x87   : > { %1971 = vperm.xlu1 %7340, %v1938_v52   ;;  %1976 = vperm.xlu0 %7341, %v1939_v53   ;;  %v1967_v53 = vld [vmem:[%s10878_s5 + $0xf7] sm:$0xff] }
  0x88   : > { %v8014_v55 = vpop.permute.xlu1 %852  ;;  %v8016_v56 = vpop.permute.xlu0 %842 }
  0x89   : > { %10888 = vst [vmem:[#allocation4_spill] sm:$0xff] %v8016_v56 }
  0x8b   : > { %1981 = vperm.xlu1 %7340, %v1940_v57   ;;  %1991 = vperm.xlu0 %7341, %v1942_v58   ;;  %v7699_v57 = vmov 3  }
  0x8c   : > { %v8024_v59 = vpop.permute.xlu1 %857  ;;  %v8026_v60 = vpop.permute.xlu0 %847 }
  0x8d   : > { %10889 = vst [vmem:[#allocation5_spill] sm:$0xff] %v8024_v59  ;;  %10890 = vst [vmem:[#allocation6_spill] sm:$0xff] %v8026_v60 }
  0x8f   : > { %1986 = vperm.xlu1 %7340, %v1941_v61   ;;  %2001 = vperm.xlu0 %7341, %v1944_v62   ;;  %v2725_v62 = vld [vmem:[%s10878_s5 + $0x9] sm:$0xff] }
  0x90   : > { %v8034_v63 = vpop.permute.xlu1 %867  ;;  %v8036_v3 = vpop.permute.xlu0 %862 }
  0x91   : > { %10891 = vst [vmem:[#allocation7_spill] sm:$0xff] %v8034_v63  ;;  %10892 = vst [vmem:[#allocation8_spill] sm:$0xff] %v8036_v3 }
  0x93   : > { %1996 = vperm.xlu1 %7340, %v1943_v4   ;;  %2011 = vperm.xlu0 %7341, %v1946_v5  }
  0x94   : > { %v8044_v7 = vpop.permute.xlu1 %877  ;;  %v8046_v8 = vpop.permute.xlu0 %872 }
  0x95   : > { %10893 = vst [vmem:[#allocation9_spill] sm:$0xff] %v8044_v7  ;;  %10894 = vst [vmem:[#allocation10_spill] sm:$0xff] %v8046_v8 }
  0x97   : > { %2006 = vperm.xlu1 %7340, %v1945_v9   ;;  %2021 = vperm.xlu0 %7341, %v1948_v10  }
  0x98   : > { %v8054_v11 = vpop.permute.xlu1 %887  ;;  %v8056_v12 = vpop.permute.xlu0 %882 }
  0x99   : > { %10895 = vst [vmem:[#allocation11_spill] sm:$0xff] %v8054_v11  ;;  %10896 = vst [vmem:[#allocation12_spill] sm:$0xff] %v8056_v12 }
  0x9b   : > { %2016 = vperm.xlu1 %7340, %v1947_v13   ;;  %2031 = vperm.xlu0 %7341, %v1950_v14  }
  0x9c   : > { %v8064_v15 = vpop.permute.xlu1 %897  ;;  %v8066_v16 = vpop.permute.xlu0 %892 }
  0x9d   : > { %10897 = vst [vmem:[#allocation13_spill] sm:$0xff] %v8064_v15  ;;  %10898 = vst [vmem:[#allocation14_spill] sm:$0xff] %v8066_v16 }
  0x9f   : > { %2026 = vperm.xlu1 %7340, %v1949_v17   ;;  %2041 = vperm.xlu0 %7341, %v1952_v18  }
  0xa0   : > { %v8074_v19 = vpop.permute.xlu1 %907  ;;  %v8076_v20 = vpop.permute.xlu0 %902 }
  0xa1   : > { %10899 = vst [vmem:[#allocation15_spill] sm:$0xff] %v8074_v19  ;;  %10900 = vst [vmem:[#allocation16_spill] sm:$0xff] %v8076_v20 }
  0xa3   : > { %2036 = vperm.xlu1 %7340, %v1951_v21   ;;  %2051 = vperm.xlu0 %7341, %v1954_v22  }
  0xa4   : > { %v8084_v23 = vpop.permute.xlu1 %917  ;;  %v8086_v24 = vpop.permute.xlu0 %912 }
  0xa5   : > { %10901 = vst [vmem:[#allocation17_spill] sm:$0xff] %v8084_v23  ;;  %10902 = vst [vmem:[#allocation18_spill] sm:$0xff] %v8086_v24 }
  0xa7   : > { %2046 = vperm.xlu1 %7340, %v1953_v25   ;;  %2061 = vperm.xlu0 %7341, %v1956_v26  }
  0xa8   : > { %v8094_v27 = vpop.permute.xlu1 %927  ;;  %v8096_v28 = vpop.permute.xlu0 %922 }
  0xa9   : > { %10903 = vst [vmem:[#allocation19_spill] sm:$0xff] %v8094_v27  ;;  %10904 = vst [vmem:[#allocation20_spill] sm:$0xff] %v8096_v28 }
  0xab   : > { %2056 = vperm.xlu1 %7340, %v1955_v29   ;;  %2071 = vperm.xlu0 %7341, %v1958_v30  }
  0xac   : > { %v8104_v31 = vpop.permute.xlu1 %937  ;;  %v8106_v32 = vpop.permute.xlu0 %932 }
  0xad   : > { %10905 = vst [vmem:[#allocation21_spill] sm:$0xff] %v8104_v31  ;;  %10906 = vst [vmem:[#allocation22_spill] sm:$0xff] %v8106_v32 }
  0xaf   : > { %2066 = vperm.xlu1 %7340, %v1957_v33   ;;  %2081 = vperm.xlu0 %7341, %v1960_v34  }
  0xb0   : > { %v8114_v35 = vpop.permute.xlu1 %947  ;;  %v8116_v36 = vpop.permute.xlu0 %942 }
  0xb1   : > { %10907 = vst [vmem:[#allocation23_spill] sm:$0xff] %v8114_v35  ;;  %10908 = vst [vmem:[#allocation24_spill] sm:$0xff] %v8116_v36 }
  0xb3   : > { %2076 = vperm.xlu1 %7340, %v1959_v37   ;;  %2091 = vperm.xlu0 %7341, %v1962_v38  }
  0xb4   : > { %v8124_v39 = vpop.permute.xlu1 %957  ;;  %v8126_v40 = vpop.permute.xlu0 %952 }
  0xb5   : > { %10909 = vst [vmem:[#allocation25_spill] sm:$0xff] %v8124_v39  ;;  %10910 = vst [vmem:[#allocation26_spill] sm:$0xff] %v8126_v40 }
  0xb7   : > { %2086 = vperm.xlu1 %7340, %v1961_v41   ;;  %2101 = vperm.xlu0 %7341, %v1964_v42  }
  0xb8   : > { %v8134_v43 = vpop.permute.xlu1 %967  ;;  %v8136_v44 = vpop.permute.xlu0 %962 }
  0xb9   : > { %10911 = vst [vmem:[#allocation27_spill] sm:$0xff] %v8134_v43  ;;  %10912 = vst [vmem:[#allocation28_spill] sm:$0xff] %v8136_v44 }
  0xbb   : > { %2096 = vperm.xlu1 %7340, %v1963_v45   ;;  %2111 = vperm.xlu0 %7341, %v1966_v46  }
  0xbc   : > { %v8144_v47 = vpop.permute.xlu1 %977  ;;  %v8146_v48 = vpop.permute.xlu0 %972 }
  0xbd   : > { %10913 = vst [vmem:[#allocation29_spill] sm:$0xff] %v8144_v47  ;;  %10914 = vst [vmem:[#allocation30_spill] sm:$0xff] %v8146_v48 }
  0xbf   : > { %2106 = vperm.xlu1 %7340, %v1965_v49   ;;  %2121 = vperm.xlu0 %7341, %v1968_v50  }
  0xc0   : > { %v8154_v51 = vpop.permute.xlu1 %987  ;;  %v8156_v52 = vpop.permute.xlu0 %982 }
  0xc1   : > { %10915 = vst [vmem:[#allocation31_spill] sm:$0xff] %v8154_v51  ;;  %10916 = vst [vmem:[#allocation32_spill] sm:$0xff] %v8156_v52 }
  0xc3   : > { %2116 = vperm.xlu1 %7340, %v1967_v53   ;;  %7342 = vset.pattern.permute.xlu0 %v7699_v57 }
  0xc4   : > { %2758 = vperm.xlu0 %7342, %v2724_v54  }
  0xc5   : > { %v8164_v58 = vpop.permute.xlu1 %1521  ;;  %v8166_v61 = vpop.permute.xlu0 %1516 }
  0xc7   : > { %7343 = vset.pattern.permute.xlu1 %v7699_v57 }
  0xc8   : > { %2763 = vperm.xlu1 %7343, %v2725_v62   ;;  %2773 = vperm.xlu0 %7342, %v7781_v6  }
  0xc9   : > { %v8172_v4 = vpop.permute.xlu1 %1526  ;;  %v8174_v5 = vpop.permute.xlu0 %1531 }
  0xcc   : > { %2768 = vperm.xlu1 %7343, %v7764_v1   ;;  %v8193_v1 = vld [vmem:[%s10875_s2] ss:$0 sm:$0xff] }
  0xcd   : > { %v8177_v9 = vpop.permute.xlu1 %1536  ;;  %v8179_v10 = vpop.permute.xlu0 %1541 }
  0xd0   : > { %2778 = vperm.xlu1 %7343, %v7759_v0  }
  0xd1   : > { %v8182_v13 = vpop.permute.xlu1 %1546  ;;  %v8188_v6 = vpop.permute.xlu0 %1551 }
  0xd4   : > { %v7243_v0 = vpop.f32.mrf.mxu0 }
  0xd5   : > { %v8195_v14 = vpop.permute.xlu1 %1556  ;;  %v8197_v17 = vpop.permute.xlu0 %1561  ;;  %v8200_v18 = vadd.f32 %v7243_v0, %v8193_v1 }
  0xd6   : > { %v396_v21 = vpop.f32.mrf.mxu0 }
  0xd7   : > { %v6547_v22 = vmul.f32 -1.442695, %v8200_v18  ;;  %v8204_v25 = vadd.f32 %v8193_v1, %v396_v21 }
  0xd8   : > { %v7244_v30 = vpop.f32.mrf.mxu0 }
  0xd9   : > { %v8206_v26 = vpop.permute.xlu1 %1566  ;;  %v8208_v29 = vpop.permute.xlu0 %1571  ;;  %7387 = vpow2.f32 %v6547_v22  ;;  %v6545_v33 = vmul.f32 -1.442695, %v8204_v25  ;;  %v8212_v34 = vadd.f32 %v7244_v30, %v8193_v1 }
  0xda   : > { %v399_v37 = vpop.f32.mrf.mxu0 }
  0xdb   : > { %7389 = vpow2.f32 %v6545_v33  ;;  %v6548_v38 = vmul.f32 -1.442695, %v8212_v34  ;;  %v8216_v41 = vadd.f32 %v8193_v1, %v399_v37 }
  0xdc   : > { %v7247_v46 = vpop.f32.mrf.mxu0 }
  0xdd   : > { %v8218_v42 = vpop.permute.xlu1 %1576  ;;  %v8220_v45 = vpop.permute.xlu0 %1581  ;;  %7391 = vpow2.f32 %v6548_v38  ;;  %v6546_v49 = vmul.f32 -1.442695, %v8216_v41  ;;  %v8224_v50 = vadd.f32 %v7247_v46, %v8193_v1 }
  0xde   : > { %v412_v53 = vpop.f32.mrf.mxu0 }
  0xdf   : > { %7393 = vpow2.f32 %v6546_v49  ;;  %v6551_v54 = vmul.f32 -1.442695, %v8224_v50  ;;  %v8228_v57 = vadd.f32 %v8193_v1, %v412_v53 }
  0xe0   : > { %v7248_v21 = vpop.f32.mrf.mxu0 }
  0xe1   : > { %v8230_v62 = vpop.permute.xlu1 %1586  ;;  %v8232_v0 = vpop.permute.xlu0 %1591  ;;  %7395 = vpow2.f32 %v6551_v54  ;;  %v6549_v22 = vmul.f32 -1.442695, %v8228_v57  ;;  %v8236_v30 = vadd.f32 %v7248_v21, %v8193_v1 }
  0xe2   : > { %v415_v33 = vpop.f32.mrf.mxu0 }
  0xe3   : > { %7397 = vpow2.f32 %v6549_v22  ;;  %v6552_v37 = vmul.f32 -1.442695, %v8236_v30  ;;  %v8240_v38 = vadd.f32 %v8193_v1, %v415_v33 }
  0xe4   : > { %v7251_v53 = vpop.f32.mrf.mxu0 }
  0xe5   : > { %v8242_v46 = vpop.permute.xlu1 %1596  ;;  %v8244_v49 = vpop.permute.xlu0 %1601  ;;  %7399 = vpow2.f32 %v6552_v37  ;;  %v6550_v54 = vmul.f32 -1.442695, %v8240_v38  ;;  %v8248_v2 = vadd.f32 %v7251_v53, %v8193_v1 }
  0xe6   : > { %v7388_v21 = vpop.eup %7387  ;;  %v428_v51 = vpop.f32.mrf.mxu0 }
  0xe7   : > { %v621_v52 = vadd.f32 1.0, %v7388_v21  ;;  %7401 = vpow2.f32 %v6550_v54  ;;  %v6555_v22 = vmul.f32 -1.442695, %v8248_v2  ;;  %v8252_v33 = vadd.f32 %v8193_v1, %v428_v51 }
  0xe8   : > { %v7390_v44 = vpop.eup %7389  ;;  %v7252_v37 = vpop.f32.mrf.mxu0 }
  0xe9   : > { %v8254_v47 = vpop.permute.xlu1 %1606  ;;  %v8256_v48 = vpop.permute.xlu0 %1611  ;;  %7403 = vrcp.f32 %v621_v52  ;;  %v619_v43 = vadd.f32 1.0, %v7390_v44  ;;  %v6553_v53 = vmul.f32 -1.442695, %v8252_v33  ;;  %v8260_v39 = vadd.f32 %v7252_v37, %v8193_v1 }
  0xea   : > { %v7392_v21 = vpop.eup %7391  ;;  %7405 = vpow2.f32 %v6555_v22  ;;  %v431_v54 = vpop.f32.mrf.mxu0 }
  0xeb   : > { %7407 = vrcp.f32 %v619_v43  ;;  %v622_v36 = vadd.f32 1.0, %v7392_v21  ;;  %v6556_v51 = vmul.f32 -1.442695, %v8260_v39  ;;  %v8264_v40 = vadd.f32 %v8193_v1, %v431_v54 }
  0xec   : > { %v7394_v31 = vpop.eup %7393  ;;  %7409 = vpow2.f32 %v6553_v53  ;;  %v7255_v44 = vpop.f32.mrf.mxu0 }
  0xed   : > { %v8266_v35 = vpop.permute.xlu1 %1616  ;;  %7411 = vrcp.f32 %v622_v36  ;;  %v620_v52 = vadd.f32 1.0, %v7394_v31  ;;  %v6554_v37 = vmul.f32 -1.442695, %v8264_v40  ;;  %v8269_v28 = vpop.permute.xlu0 %1621  ;;  %v8272_v22 = vadd.f32 %v7255_v44, %v8193_v1 }
  0xee   : > { %10917 = vst [vmem:[#allocation33_spill] sm:$0xff] %v8269_v28  ;;  %v7396_v43 = vpop.eup %7395  ;;  %7413 = vpow2.f32 %v6556_v51  ;;  %v444_v21 = vpop.f32.mrf.mxu0 }
  0xef   : > { %7415 = vrcp.f32 %v620_v52  ;;  %v625_v54 = vadd.f32 1.0, %v7396_v43  ;;  %v6559_v32 = vmul.f32 -1.442695, %v8272_v22  ;;  %v8276_v27 = vadd.f32 %v8193_v1, %v444_v21 }
  0xf0   : > { %v7398_v31 = vpop.eup %7397  ;;  %7417 = vpow2.f32 %v6554_v37  ;;  %v7256_v36 = vpop.f32.mrf.mxu0 }
  0xf1   : > { %v8278_v53 = vpop.permute.xlu1 %1626  ;;  %7419 = vrcp.f32 %v625_v54  ;;  %v623_v23 = vadd.f32 1.0, %v7398_v31  ;;  %v6557_v44 = vmul.f32 -1.442695, %v8276_v27  ;;  %v8282_v20 = vadd.f32 %v7256_v36, %v8193_v1  ;;  %v8284_v24 = vpop.permute.xlu0 %1631 }
  0xf2   : > { %v7400_v51 = vpop.eup %7399  ;;  %7421 = vpow2.f32 %v6559_v32  ;;  %v447_v52 = vpop.f32.mrf.mxu0  ;;  %10918 = vst [vmem:[#allocation34_spill] sm:$0xff] %v8284_v24 }
  0xf3   : > { %7423 = vrcp.f32 %v623_v23  ;;  %v626_v43 = vadd.f32 1.0, %v7400_v51  ;;  %v6560_v21 = vmul.f32 -1.442695, %v8282_v20  ;;  %v8288_v19 = vadd.f32 %v8193_v1, %v447_v52 }
  0xf4   : > { %v7402_v54 = vpop.eup %7401  ;;  %7425 = vpow2.f32 %v6557_v44  ;;  %v7259_v31 = vpop.f32.mrf.mxu0 }
  0xf5   : > { %v8290_v37 = vpop.permute.xlu1 %1636  ;;  %7427 = vrcp.f32 %v626_v43  ;;  %v624_v36 = vadd.f32 1.0, %v7402_v54  ;;  %v6558_v15 = vmul.f32 -1.442695, %v8288_v19  ;;  %v8294_v32 = vadd.f32 %v7259_v31, %v8193_v1  ;;  %v8305_v3 = vpop.permute.xlu0 %1641 }
  0xf6   : > { %10919 = vst [vmem:[#allocation35_spill] sm:$0xff] %v8290_v37  ;;  %v7404_v23 = vpop.eup %7403  ;;  %7429 = vpow2.f32 %v6560_v21  ;;  %v460_v51 = vpop.f32.mrf.mxu0  ;;  %10921 = vst [vmem:[#allocation37_spill] sm:$0xff] %v8305_v3 }
  0xf7   : > { %v7406_v12 = vpop.eup %7405  ;;  %v717_v52 = vmul.f32 %v7404_v23, %v8200_v18  ;;  %7431 = vrcp.f32 %v624_v36  ;;  %v6563_v16 = vmul.f32 -1.442695, %v8294_v32  ;;  %v8299_v44 = vadd.f32 %v8193_v1, %v460_v51 }
  0xf8   : > { %v7408_v54 = vpop.eup %7407  ;;  %v629_v11 = vadd.f32 1.0, %v7406_v12  ;;  %7433 = vpow2.f32 %v6558_v15  ;;  %v7260_v31 = vpop.f32.mrf.mxu0 }
  0xf9   : > { %v8301_v43 = vpop.permute.xlu1 %1646  ;;  %v7410_v7 = vpop.eup %7409  ;;  %750 = vst.msk [vmem:[#allocation2 + $0x10] sm:$0xff] %vm747_vm3, %v717_v52  ;;  %v715_v21 = vmul.f32 %v7408_v54, %v8204_v25  ;;  %7435 = vpow2.f32 %v6563_v16  ;;  %v6561_v18 = vmul.f32 -1.442695, %v8299_v44  ;;  %v8309_v36 = vadd.f32 %v7260_v31, %v8193_v1 }
  0xfa   : > { %10920 = vst [vmem:[#allocation36_spill] sm:$0xff] %v8301_v43  ;;  %v7412_v23 = vpop.eup %7411  ;;  %7437 = vrcp.f32 %v629_v11  ;;  %v627_v51 = vadd.f32 1.0, %v7410_v7  ;;  %v463_v8 = vpop.f32.mrf.mxu0 }
  0xfb   : > { %v7414_v12 = vpop.eup %7413  ;;  %748 = vst.msk [vmem:[#allocation2] sm:$0xff] %vm747_vm3, %v715_v21  ;;  %v718_v15 = vmul.f32 %v7412_v23, %v8212_v34  ;;  %7439 = vpow2.f32 %v6561_v18  ;;  %v6564_v25 = vmul.f32 -1.442695, %v8309_v36  ;;  %v8315_v52 = vadd.f32 %v8193_v1, %v463_v8  ;;  %v8327_v56 = vpop.permute.xlu0 %1651 }
  0xfc   : > { %v7416_v16 = vpop.eup %7415  ;;  %7441 = vrcp.f32 %v627_v51  ;;  %v630_v54 = vadd.f32 1.0, %v7414_v12  ;;  %v7263_v63 = vpop.f32.mrf.mxu0  ;;  %10923 = vst [vmem:[#allocation39_spill] sm:$0xff] %v8327_v56 }
  0xfd   : > { %v8317_v31 = vpop.permute.xlu1 %1656  ;;  %v7418_v11 = vpop.eup %7417  ;;  %751 = vst.msk [vmem:[#allocation2 + $0x18] sm:$0xff] %vm747_vm3, %v718_v15  ;;  %v716_v7 = vmul.f32 %v7416_v16, %v8216_v41  ;;  %7443 = vpow2.f32 %v6564_v25  ;;  %v6562_v34 = vmul.f32 -1.442695, %v8315_v52  ;;  %v8323_v21 = vadd.f32 %v7263_v63, %v8193_v1 }
  0xfe   : > { %10922 = vst [vmem:[#allocation38_spill] sm:$0xff] %v8317_v31  ;;  %v7420_v18 = vpop.eup %7419  ;;  %7445 = vrcp.f32 %v630_v54  ;;  %v628_v8 = vadd.f32 1.0, %v7418_v11  ;;  %v476_v23 = vpop.f32.mrf.mxu0 }
  0xff   : > { %v7422_v51 = vpop.eup %7421  ;;  %749 = vst.msk [vmem:[#allocation2 + $0x8] sm:$0xff] %vm747_vm3, %v716_v7  ;;  %v721_v12 = vmul.f32 %v7420_v18, %v8224_v50  ;;  %7447 = vpow2.f32 %v6562_v34  ;;  %v6567_v41 = vmul.f32 -1.442695, %v8323_v21  ;;  %v8331_v15 = vadd.f32 %v8193_v1, %v476_v23  ;;  %v8353_v3 = vpop.permute.xlu0 %1661 }
 0x100   : > { %v7424_v25 = vpop.eup %7423  ;;  %7449 = vrcp.f32 %v628_v8  ;;  %v633_v63 = vadd.f32 1.0, %v7422_v51  ;;  %v7264_v16 = vpop.f32.mrf.mxu0  ;;  %v8333_v54 = vld [vmem:[#allocation2 + $0x10] sm:$0xff]  ;;  %10924 = vst [vmem:[#allocation40_spill] sm:$0xff] %v8353_v3 }
 0x101   : > { %v7426_v11 = vpop.eup %7425  ;;  %754 = vst.msk [vmem:[#allocation2 + $0x30] sm:$0xff] %vm747_vm3, %v721_v12  ;;  %v719_v7 = vmul.f32 %v7424_v25, %v8228_v57  ;;  %7451 = vpow2.f32 %v6567_v41  ;;  %v6565_v50 = vmul.f32 -1.442695, %v8331_v15  ;;  %v8339_v34 = vadd.f32 %v7264_v16, %v8193_v1 }
 0x102   : > { %v7428_v18 = vpop.eup %7427  ;;  %7453 = vrcp.f32 %v633_v63  ;;  %v631_v23 = vadd.f32 1.0, %v7426_v11  ;;  %v8341_v59 = vpop.permute.xlu1 %1971  ;;  %v1666_v51 = vmul.f32 %v8333_v54, %v8172_v4 }
 0x103   : > { %v479_v8 = vpop.f32.mrf.mxu0  ;;  %v7430_v31 = vpop.eup %7429  ;;  %752 = vst.msk [vmem:[#allocation2 + $0x20] sm:$0xff] %vm747_vm3, %v719_v7  ;;  %v722_v57 = vmul.f32 %v7428_v18, %v8236_v30  ;;  %7455 = vpow2.f32 %v6565_v50  ;;  %v6568_v12 = vmul.f32 -1.442695, %v8339_v34 }
 0x104   : > { %v7432_v41 = vpop.eup %7431  ;;  %7457 = vrcp.f32 %v631_v23  ;;  %v634_v25 = vadd.f32 1.0, %v7430_v31  ;;  %v8349_v63 = vadd.f32 %v8193_v1, %v479_v8  ;;  %v6958_v11 = vpack.c.bf16 %v1666_v51, %v1666_v51 }
 0x105   : > { %v7267_v16 = vpop.f32.mrf.mxu0  ;;  %v7434_v60 = vpop.eup %7433  ;;  %755 = vst.msk [vmem:[#allocation2 + $0x38] sm:$0xff] %vm747_vm3, %v722_v57  ;;  %v720_v4 = vmul.f32 %v7432_v41, %v8240_v38  ;;  %7459 = vpow2.f32 %v6568_v12 }
 0x106   : > { %v8356_v30 = vadd.f32 %v7267_v16, %v8193_v1  ;;  %v7436_v7 = vpop.eup %7435  ;;  %7461 = vrcp.f32 %v634_v25  ;;  %v632_v50 = vadd.f32 1.0, %v7434_v60  ;;  %v6566_v31 = vmul.f32 -1.442695, %v8349_v63  ;;  %1788 = vrot.lane.b32.xlu1 %v6958_v11, %s7700_s13  ;;  %v1982_v57 = vpop.permute.xlu1 %1981 }
 0x107   : > { %v7438_v18 = vpop.eup %7437  ;;  %753 = vst.msk [vmem:[#allocation2 + $0x28] sm:$0xff] %vm747_vm3, %v720_v4  ;;  %v637_v23 = vadd.f32 1.0, %v7436_v7  ;;  %v492_v60 = vpop.f32.mrf.mxu0 }
 0x108   : > { %v7440_v8 = vpop.eup %7439  ;;  %v725_v38 = vmul.f32 %v7438_v18, %v8248_v2  ;;  %7463 = vrcp.f32 %v632_v50  ;;  %v6571_v51 = vmul.f32 -1.442695, %v8356_v30  ;;  %v8365_v7 = vpop.permute.xlu0 %1976 }
 0x109   : > { %v7442_v12 = vpop.eup %7441  ;;  %7465 = vrcp.f32 %v637_v23  ;;  %v635_v41 = vadd.f32 1.0, %v7440_v8  ;;  %v1907_v8 = vld [vmem:[#allocation2] sm:$0xff]  ;;  %v7268_v3 = vpop.f32.mrf.mxu0 }
 0x10a   : > { %v7444_v25 = vpop.eup %7443  ;;  %758 = vst.msk [vmem:[#allocation2 + $0x50] sm:$0xff] %vm747_vm3, %v725_v38  ;;  %v723_v16 = vmul.f32 %v7442_v12, %v8252_v33  ;;  %7467 = vpow2.f32 %v6566_v31  ;;  %v2126_v31 = vmul.f32 %v1982_v57, %v8333_v54  ;;  %v1987_v12 = vpop.permute.xlu1 %1986 }
 0x10b   : > { %v7446_v11 = vpop.eup %7445  ;;  %7469 = vrcp.f32 %v635_v41  ;;  %v638_v4 = vadd.f32 1.0, %v7444_v25 }
 0x10c   : > { %v7448_v2 = vpop.eup %7447  ;;  %756 = vst.msk [vmem:[#allocation2 + $0x40] sm:$0xff] %vm747_vm3, %v723_v16  ;;  %v726_v50 = vmul.f32 %v7446_v11, %v8260_v39  ;;  %7471 = vpow2.f32 %v6571_v51  ;;  %v8373_v16 = vadd.f32 %v8193_v1, %v492_v60  ;;  %v2124_v11 = vmul.f32 %v8341_v59, %v1907_v8  ;;  %v8381_v57 = vpop.permute.xlu0 %1991 }
 0x10d   : > { %v7450_v18 = vpop.eup %7449  ;;  %7473 = vrcp.f32 %v638_v4  ;;  %v636_v23 = vadd.f32 1.0, %v7448_v2  ;;  %v8379_v4 = vadd.f32 %v7268_v3, %v8193_v1 }
 0x10e   : > { %v7452_v38 = vpop.eup %7451  ;;  %759 = vst.msk [vmem:[#allocation2 + $0x58] sm:$0xff] %vm747_vm3, %v726_v50  ;;  %v724_v33 = vmul.f32 %v7450_v18, %v8264_v40  ;;  %v6569_v2 = vmul.f32 -1.442695, %v8373_v16  ;;  %v6988_v18 = vpack.c.bf16 %v2126_v31, %v2126_v31 }
 0x10f   : > { %v7454_v41 = vpop.eup %7453  ;;  %7475 = vrcp.f32 %v636_v23  ;;  %v641_v25 = vadd.f32 1.0, %v7452_v38  ;;  %v1910_v23 = vld [vmem:[#allocation2 + $0x18] sm:$0xff]  ;;  %v495_v38 = vpop.f32.mrf.mxu0 }
 0x110   : > { %v7456_v39 = vpop.eup %7455  ;;  %757 = vst.msk [vmem:[#allocation2 + $0x48] sm:$0xff] %vm747_vm3, %v724_v33  ;;  %v729_v51 = vmul.f32 %v7454_v41, %v8272_v22  ;;  %v6572_v22 = vmul.f32 -1.442695, %v8379_v4  ;;  %v6986_v41 = vpack.c.bf16 %v2124_v11, %v2124_v11  ;;  %v2002_v11 = vpop.permute.xlu0 %2001 }
 0x111   : > { %v7458_v40 = vpop.eup %7457  ;;  %7477 = vrcp.f32 %v641_v25  ;;  %v639_v54 = vadd.f32 1.0, %v7456_v39  ;;  %v8389_v25 = vpop.permute.xlu1 %1996 }
 0x112   : > { %v7460_v50 = vpop.eup %7459  ;;  %762 = vst.msk [vmem:[#allocation2 + $0x70] sm:$0xff] %vm747_vm3, %v729_v51  ;;  %v727_v60 = vmul.f32 %v7458_v40, %v8276_v27  ;;  %v1667_v27 = vmul.f32 %v1910_v23, %v8174_v5  ;;  %v1908_v40 = vld [vmem:[#allocation2 + $0x8] sm:$0xff]  ;;  %v7271_v56 = vpop.f32.mrf.mxu0  ;;  %v2253_v5 = vshll.u32 %v6986_v41, 16 }
 0x113   : > { %v7462_v59 = vpop.eup %7461  ;;  %7479 = vrcp.f32 %v639_v54  ;;  %v642_v3 = vadd.f32 1.0, %v7460_v50  ;;  %v2272_v54 = vshll.u32 %v6988_v18, 16 }
 0x114   : > { %760 = vst.msk [vmem:[#allocation2 + $0x60] sm:$0xff] %vm747_vm3, %v727_v60  ;;  %v730_v33 = vmul.f32 %v7462_v59, %v8282_v20  ;;  %7481 = vpow2.f32 %v6569_v2  ;;  %v2276_v20 = vshrl.u32 %v6988_v18, 16  ;;  %v6959_v2 = vpack.c.bf16 %v1667_v27, %v1667_v27 }
 0x115   : > { %v7464_v39 = vpop.eup %7463  ;;  %7483 = vrcp.f32 %v642_v3  ;;  %v1664_v59 = vmul.f32 %v1907_v8, %v8166_v61  ;;  %v8401_v8 = vpop.permute.xlu1 %2006 }
 0x116   : > { %v7466_v31 = vpop.eup %7465  ;;  %763 = vst.msk [vmem:[#allocation2 + $0x78] sm:$0xff] %vm747_vm3, %v730_v33  ;;  %v728_v51 = vmul.f32 %v7464_v39, %v8288_v19  ;;  %7485 = vpow2.f32 %v6572_v22  ;;  %v2127_v33 = vmul.f32 %v1987_v12, %v1910_v23  ;;  %v2256_v22 = vshrl.u32 %v6986_v41, 16  ;;  %1790 = vrot.lane.b32.xlu0 %v6959_v2, %s7700_s13 }
 0x117   : > { %v7468_v50 = vpop.eup %7467  ;;  %v733_v60 = vmul.f32 %v7466_v31, %v8294_v32  ;;  %v2125_v32 = vmul.f32 %v8365_v7, %v1908_v40  ;;  %v6956_v18 = vpack.c.bf16 %v1664_v59, %v1664_v59  ;;  %v8405_v23 = vrot.slane %v2272_v54, 5  ;;  %v508_v7 = vpop.f32.mrf.mxu0 }
 0x118   : > { %v7470_v3 = vpop.eup %7469  ;;  %761 = vst.msk [vmem:[#allocation2 + $0x68] sm:$0xff] %vm747_vm3, %v728_v51  ;;  %v640_v37 = vadd.f32 1.0, %v7468_v50  ;;  %v2278_v27 = vrot.slane %v2276_v20, 4  ;;  %v2255_v31 = vrot.slane %v2253_v5, 5  ;;  %v8414_v51 = vadd.f32 %v7271_v56, %v8193_v1  ;;  %v8426_v5 = vld [vmem:[#allocation2 + $0x20] sm:$0xff] }
 0x119   : > { %v7472_v43 = vpop.eup %7471  ;;  %766 = vst.msk [vmem:[#allocation2 + $0x90] sm:$0xff] %vm747_vm3, %v733_v60  ;;  %v731_v19 = vmul.f32 %v7470_v3, %v8299_v44  ;;  %1784 = vrot.lane.b32.xlu1 %v6956_v18, %s7700_s13  ;;  %v8409_v44 = vadd.f32 %v8193_v1, %v495_v38  ;;  %v2258_v54 = vrot.slane %v2256_v22, 4  ;;  %v6987_v50 = vpack.c.bf16 %v2125_v32, %v2125_v32  ;;  %v8419_v38 = vpop.permute.xlu0 %2011 }
 0x11a   : > { %v7474_v39 = vpop.eup %7473  ;;  %7487 = vrcp.f32 %v640_v37  ;;  %v645_v61 = vadd.f32 1.0, %v7472_v43  ;;  %v8411_v37 = vpack.c.bf16 %v2127_v33, %v2127_v33  ;;  %v1913_v43 = vld [vmem:[#allocation2 + $0x30] sm:$0xff]  ;;  %v6575_v2 = vmul.f32 -1.442695, %v8414_v51  ;;  %v7272_v33 = vpop.f32.mrf.mxu0 }
 0x11b   : > { %764 = vst.msk [vmem:[#allocation2 + $0x80] sm:$0xff] %vm747_vm3, %v731_v19  ;;  %v734_v12 = vmul.f32 %v7474_v39, %v8309_v36  ;;  %v6570_v60 = vmul.f32 -1.442695, %v8409_v44  ;;  %v1665_v59 = vmul.f32 %v1908_v40, %v8164_v58  ;;  %v2279_v3 = vor.u32 %v2278_v27, %v8405_v23  ;;  %v8430_v40 = vpop.permute.xlu1 %2016 }
 0x11c   : > { %v7476_v41 = vpop.eup %7475  ;;  %7489 = vrcp.f32 %v645_v61  ;;  %v2282_v22 = vshll.u32 %v8411_v37, 16  ;;  %v2259_v18 = vor.u32 %v2258_v54, %v2255_v31  ;;  %v8435_v39 = vadd.f32 %v8193_v1, %v508_v7 }
 0x11d   : > { %767 = vst.msk [vmem:[#allocation2 + $0x98] sm:$0xff] %vm747_vm3, %v734_v12  ;;  %v732_v36 = vmul.f32 %v7476_v41, %v8315_v52  ;;  %v2130_v52 = vmul.f32 %v2002_v11, %v1913_v43  ;;  %7491 = vpow2.f32 %v6570_v60  ;;  %2556 = vrot.lane.b32.xlu1 %v2255_v31, %s7701_s14  ;;  %v6957_v58 = vpack.c.bf16 %v1665_v59, %v1665_v59 }
 0x11e   : > { %v7478_v20 = vpop.eup %7477  ;;  %7493 = vpow2.f32 %v6575_v2  ;;  %v2262_v11 = vshll.u32 %v6987_v50, 16  ;;  %v2266_v12 = vshrl.u32 %v6987_v50, 16  ;;  %v2128_v27 = vmul.f32 %v8381_v57, %v8426_v5  ;;  %v511_v50 = vpop.f32.mrf.mxu0 }
 0x11f   : > { %765 = vst.msk [vmem:[#allocation2 + $0x88] sm:$0xff] %vm747_vm3, %v732_v36  ;;  %v737_v56 = vmul.f32 %v7478_v20, %v8323_v21  ;;  %1786 = vrot.lane.b32.xlu0 %v6957_v58, %s7700_s13  ;;  %v8441_v36 = vadd.f32 %v7272_v33, %v8193_v1  ;;  %v2280_v31 = vrot.slane %v2279_v3, 4  ;;  %v6992_v54 = vpack.c.bf16 %v2130_v52, %v2130_v52  ;;  %v2022_v20 = vpop.permute.xlu0 %2021  ;;  %v8456_v58 = vpop.permute.xlu1 %2026 }
 0x120   : > { %v7480_v19 = vpop.eup %7479  ;;  %v6573_v7 = vmul.f32 -1.442695, %v8435_v39  ;;  %v8446_v57 = vrot.slane %v2282_v22, 5  ;;  %v2264_v33 = vrot.slane %v2262_v11, 5  ;;  %v1670_v3 = vmul.f32 %v1913_v43, %v8182_v13  ;;  %v8466_v13 = vld [vmem:[#allocation2 + $0x40] sm:$0xff] }
 0x121   : > { %v7482_v32 = vpop.eup %7481  ;;  %770 = vst.msk [vmem:[#allocation2 + $0xb0] sm:$0xff] %vm747_vm3, %v737_v56  ;;  %v735_v21 = vmul.f32 %v7480_v19, %v8331_v15  ;;  %v6576_v59 = vmul.f32 -1.442695, %v8441_v36  ;;  %v2260_v56 = vrot.slane %v2259_v18, 4  ;;  %v2268_v19 = vrot.slane %v2266_v12, 4 }
 0x122   : > { %v7484_v61 = vpop.eup %7483  ;;  %v643_v41 = vadd.f32 1.0, %v7482_v32  ;;  %v8454_v52 = vadd.f32 %v8193_v1, %v511_v50  ;;  %v6990_v32 = vpack.c.bf16 %v2128_v27, %v2128_v27  ;;  %v6962_v1 = vpack.c.bf16 %v1670_v3, %v1670_v3  ;;  %v8484_v3 = vld [vmem:[#allocation2 + $0x50] sm:$0xff] }
 0x123   : > { %v7486_v60 = vpop.eup %7485  ;;  %768 = vst.msk [vmem:[#allocation2 + $0xa0] sm:$0xff] %vm747_vm3, %v735_v21  ;;  %v738_v15 = vmul.f32 %v7484_v61, %v8339_v34  ;;  %v8450_v34 = vld [vmem:[#allocation2 + $0x28] sm:$0xff]  ;;  %v2286_v21 = vshrl.u32 %v8411_v37, 16  ;;  %v2312_v61 = vshll.u32 %v6992_v54, 16  ;;  %v2285_v12 = vsel %vm8461_vm6, %v2280_v31, %v8446_v57 }
 0x124   : > { %7495 = vrcp.f32 %v643_v41  ;;  %v646_v2 = vadd.f32 1.0, %v7486_v60  ;;  %v6574_v43 = vmul.f32 -1.442695, %v8454_v52  ;;  %v2316_v27 = vshrl.u32 %v6992_v54, 16  ;;  %2562 = vrot.lane.b32.xlu0 %v2285_v12, %s7701_s14  ;;  %v2032_v60 = vpop.permute.xlu0 %2031  ;;  %1796 = vrot.lane.b32.xlu1 %v6962_v1, %s7700_s13  ;;  %v1914_v54 = vld [vmem:[#allocation2 + $0x38] sm:$0xff] }
 0x125   : > { %771 = vst.msk [vmem:[#allocation2 + $0xb8] sm:$0xff] %vm747_vm3, %v738_v15  ;;  %7497 = vpow2.f32 %v6573_v7  ;;  %v2129_v41 = vmul.f32 %v8389_v25, %v8450_v34  ;;  %v2269_v15 = vor.u32 %v2268_v19, %v2264_v33  ;;  %v2292_v7 = vshll.u32 %v6990_v32, 16 }
 0x126   : > { %7499 = vrcp.f32 %v646_v2  ;;  %v2288_v50 = vrot.slane %v2286_v21, 4  ;;  %v2132_v31 = vmul.f32 %v8419_v38, %v8466_v13  ;;  %v2296_v25 = vshrl.u32 %v6990_v32, 16 }
 0x127   : > { %v7488_v22 = vpop.eup %7487  ;;  %7501 = vpow2.f32 %v6576_v59  ;;  %v8481_v59 = vrot.slane %v2312_v61, 5  ;;  %v2131_v19 = vmul.f32 %v8401_v8, %v1914_v54  ;;  %v6991_v1 = vpack.c.bf16 %v2129_v41, %v2129_v41  ;;  %v8495_v8 = vld [vmem:[#allocation2 + $0x48] sm:$0xff] }
 0x128   : > { %v736_v11 = vmul.f32 %v7488_v22, %v8349_v63  ;;  %7503 = vpow2.f32 %v6574_v43  ;;  %v8488_v22 = vpop.permute.xlu1 %2036  ;;  %v1668_v43 = vmul.f32 %v8426_v5, %v8177_v9  ;;  %v2270_v32 = vrot.slane %v2269_v15, 4 }
 0x129   : > { %v7490_v37 = vpop.eup %7489  ;;  %v2289_v12 = vor.u32 %v2288_v50, %v8446_v57  ;;  %v8503_v41 = vrot.slane %v2292_v7, 5  ;;  %v6993_v9 = vpack.c.bf16 %v2131_v19, %v2131_v19  ;;  %v2133_v57 = vmul.f32 %v8430_v40, %v8495_v8 }
 0x12a   : > { %769 = vst.msk [vmem:[#allocation2 + $0xa8] sm:$0xff] %vm747_vm3, %v736_v11  ;;  %v741_v63 = vmul.f32 %v7490_v37, %v8356_v30  ;;  %v7492_v2 = vpop.eup %7491  ;;  %v2265_v30 = vsel %vm8461_vm6, %v2260_v56, %v2264_v33  ;;  %v8490_v11 = vrot.slane %v2316_v27, 4  ;;  %v6994_v56 = vpack.c.bf16 %v2132_v31, %v2132_v31  ;;  %v8499_v37 = vld [vmem:[#allocation2 + $0x60] sm:$0xff]  ;;  %v8501_v27 = vpop.permute.xlu0 %2041 }
 0x12b   : > { %v7494_v21 = vpop.eup %7493  ;;  %v644_v38 = vadd.f32 1.0, %v7492_v2  ;;  %2558 = vrot.lane.b32.xlu0 %v2265_v30, %s7701_s14  ;;  %v2134_v33 = vmul.f32 %v2022_v20, %v8484_v3  ;;  %v2302_v2 = vshll.u32 %v6991_v1, 16  ;;  %v6960_v50 = vpack.c.bf16 %v1668_v43, %v1668_v43 }
 0x12c   : > { %774 = vst.msk [vmem:[#allocation2 + $0xd0] sm:$0xff] %vm747_vm3, %v741_v63  ;;  %v649_v61 = vadd.f32 1.0, %v7494_v21  ;;  %v8505_v63 = vrot.slane %v2296_v25, 4  ;;  %v2319_v15 = vor.u32 %v8490_v11, %v8481_v59  ;;  %v2306_v30 = vshrl.u32 %v6991_v1, 16  ;;  %v8514_v21 = vpop.permute.xlu1 %2046 }
 0x12d   : > { %7505 = vrcp.f32 %v644_v38  ;;  %v2136_v7 = vmul.f32 %v2032_v60, %v8499_v37  ;;  %v1671_v25 = vmul.f32 %v1914_v54, %v8188_v6  ;;  %v2290_v38 = vrot.slane %v2289_v12, 4  ;;  %1792 = vrot.lane.b32.xlu1 %v6960_v50, %s7700_s13 }
 0x12e   : > { %7507 = vrcp.f32 %v649_v61  ;;  %v2332_v61 = vshll.u32 %v6994_v56, 16  ;;  %v6996_v11 = vpack.c.bf16 %v2134_v33, %v2134_v33  ;;  %v2322_v1 = vshll.u32 %v6993_v9, 16 }
 0x12f   : > { %v6963_v43 = vpack.c.bf16 %v1671_v25, %v1671_v25  ;;  %v2326_v6 = vshrl.u32 %v6993_v9, 16  ;;  %v6995_v54 = vpack.c.bf16 %v2133_v57, %v2133_v57  ;;  %v8520_v12 = vrot.slane %v2302_v2, 5 }
 0x130   : > { %v2308_v33 = vrot.slane %v2306_v30, 4  ;;  %v2275_v50 = vsel %vm8461_vm6, %v2270_v32, %v8405_v23  ;;  %v8529_v9 = vrot.slane %v2332_v61, 5  ;;  %v2324_v57 = vrot.slane %v2322_v1, 5  ;;  %v8531_v30 = vpop.permute.xlu1 %2056 }
 0x131   : > { %v7496_v5 = vpop.eup %7495  ;;  %1798 = vrot.lane.b32.xlu0 %v6963_v43, %s7700_s13  ;;  %2560 = vrot.lane.b32.xlu1 %v2275_v50, %s7701_s14  ;;  %v2342_v23 = vshll.u32 %v6995_v54, 16  ;;  %v2346_v32 = vshrl.u32 %v6995_v54, 16  ;;  %v8544_v43 = vld [vmem:[#allocation2 + $0x70] sm:$0xff]  ;;  %v2320_v54 = vrot.slane %v2319_v15, 4 }
 0x132   : > { %v7498_v20 = vpop.eup %7497  ;;  %v739_v31 = vmul.f32 %v7496_v5, %v8373_v16  ;;  %v2336_v16 = vshrl.u32 %v6994_v56, 16  ;;  %v2052_v5 = vpop.permute.xlu0 %2051  ;;  %v2352_v56 = vshll.u32 %v6996_v11, 16 }
 0x133   : > { %v7500_v19 = vpop.eup %7499  ;;  %v647_v28 = vadd.f32 1.0, %v7498_v20  ;;  %v6998_v20 = vpack.c.bf16 %v2136_v7, %v2136_v7  ;;  %v2328_v7 = vrot.slane %v2326_v6, 4 }
 0x134   : > { %v7502_v24 = vpop.eup %7501  ;;  %772 = vst.msk [vmem:[#allocation2 + $0xc0] sm:$0xff] %vm747_vm3, %v739_v31  ;;  %v742_v40 = vmul.f32 %v7500_v19, %v8379_v4  ;;  %v2338_v2 = vrot.slane %v2336_v16, 4  ;;  %v8540_v61 = vrot.slane %v2352_v56, 5  ;;  %v8555_v56 = vrot.slane %v2342_v23, 5 }
 0x135   : > { %7509 = vrcp.f32 %v647_v28  ;;  %v650_v60 = vadd.f32 1.0, %v7502_v24  ;;  %v7504_v4 = vpop.eup %7503  ;;  %v2356_v28 = vshrl.u32 %v6996_v11, 16  ;;  %v1669_v24 = vmul.f32 %v8450_v34, %v8179_v10  ;;  %v8533_v11 = vld [vmem:[#allocation2 + $0x58] sm:$0xff] }
 0x136   : > { %775 = vst.msk [vmem:[#allocation2 + $0xd8] sm:$0xff] %vm747_vm3, %v742_v40  ;;  %v648_v31 = vadd.f32 1.0, %v7504_v4  ;;  %v2372_v19 = vshll.u32 %v6998_v20, 16  ;;  %v2376_v40 = vshrl.u32 %v6998_v20, 16  ;;  %v2295_v10 = vsel %vm8461_vm6, %v2290_v38, %v8503_v41 }
 0x137   : > { %7511 = vrcp.f32 %v650_v60  ;;  %v6961_v25 = vpack.c.bf16 %v1669_v24, %v1669_v24  ;;  %v2299_v34 = vor.u32 %v8505_v63, %v8503_v41  ;;  %v2358_v16 = vrot.slane %v2356_v28, 4  ;;  %2564 = vrot.lane.b32.xlu1 %v2295_v10, %s7701_s14  ;;  %v2062_v60 = vpop.permute.xlu0 %2061  ;;  %v8550_v41 = vld [vmem:[#allocation2 + $0x68] sm:$0xff]  ;;  %v8557_v24 = vld [vmem:[#allocation2 + $0x80] sm:$0xff] }
 0x138   : > { %7513 = vrcp.f32 %v648_v31  ;;  %v2135_v1 = vmul.f32 %v8456_v58, %v8533_v11  ;;  %v2309_v38 = vor.u32 %v2308_v33, %v8520_v12  ;;  %v2339_v20 = vor.u32 %v2338_v2, %v8529_v9 }
 0x139   : > { %1794 = vrot.lane.b32.xlu0 %v6961_v25, %s7700_s13  ;;  %v1674_v63 = vmul.f32 %v8484_v3, %v8206_v26  ;;  %v2329_v4 = vor.u32 %v2328_v7, %v2324_v57  ;;  %v2348_v28 = vrot.slane %v2346_v32, 4  ;;  %v8560_v31 = vrot.slane %v2372_v19, 5  ;;  %v8564_v25 = vpop.permute.xlu1 %2066  ;;  %v782_v26 = vld [vmem:[#allocation2 + $0x10] sm:$0xff] }
 0x13a   : > { %v7506_v6 = vpop.eup %7505  ;;  %v2378_v33 = vrot.slane %v2376_v40, 4  ;;  %v2138_v2 = vmul.f32 %v8501_v27, %v8544_v43  ;;  %v6997_v3 = vpack.c.bf16 %v2135_v1, %v2135_v1  ;;  %v2137_v7 = vmul.f32 %v8488_v22, %v8550_v41 }
 0x13b   : > { %v7508_v50 = vpop.eup %7507  ;;  %v740_v58 = vmul.f32 %v7506_v6, %v8409_v44  ;;  %v2359_v44 = vor.u32 %v2358_v16, %v8540_v61  ;;  %v6966_v23 = vpack.c.bf16 %v1674_v63, %v1674_v63  ;;  %v2300_v32 = vrot.slane %v2299_v34, 4  ;;  %v2072_v16 = vpop.permute.xlu0 %2071 }
 0x13c   : > { %v745_v15 = vmul.f32 %v7508_v50, %v8414_v51  ;;  %v2140_v51 = vmul.f32 %v2052_v5, %v8557_v24  ;;  %v2325_v27 = vsel %vm8461_vm6, %v2320_v54, %v2324_v57  ;;  %v2310_v19 = vrot.slane %v2309_v38, 4  ;;  %v8585_v57 = vld [vmem:[#allocation2 + $0x90] sm:$0xff] }
 0x13d   : > { %773 = vst.msk [vmem:[#allocation2 + $0xc8] sm:$0xff] %vm747_vm3, %v740_v58  ;;  %v8574_v40 = vrot.slane %v2339_v20, 4  ;;  %v2349_v10 = vor.u32 %v2348_v28, %v8555_v56  ;;  %1804 = vrot.lane.b32.xlu1 %v6966_v23, %s7700_s13  ;;  %2570 = vrot.lane.b32.xlu0 %v2325_v27, %s7701_s14  ;;  %v8580_v22 = vmul.f32 %v8014_v55, %v782_v26  ;;  %v8582_v1 = vrot.slane %v2329_v4, 4  ;;  %v8592_v58 = vld [vmem:[#allocation2 + $0x78] sm:$0xff]  ;;  %v8594_v55 = vld [vmem:[#allocation2 + $0x88] sm:$0xff]  ;;  %v8596_v4 = vld [vmem:[#allocation2 + $0xa0] sm:$0xff] }
 0x13e   : > { %778 = vst.msk [vmem:[#allocation2 + $0xf0] sm:$0xff] %vm747_vm3, %v745_v15  ;;  %v2379_v5 = vor.u32 %v2378_v33, %v8560_v31  ;;  %v7000_v6 = vpack.c.bf16 %v2138_v2, %v2138_v2  ;;  %v1672_v54 = vmul.f32 %v8466_v13, %v8195_v14  ;;  %v8590_v20 = vrot.slane %v2359_v44, 4 }
 0x13f   : > { %10927 = vst [vmem:[#allocation41_spill] sm:$0xff] %v8580_v22  ;;  %v2362_v63 = vshll.u32 %v6997_v3, 16  ;;  %v6999_v50 = vpack.c.bf16 %v2137_v7, %v2137_v7  ;;  %v7002_v15 = vpack.c.bf16 %v2140_v51, %v2140_v51  ;;  %v2139_v33 = vmul.f32 %v8514_v21, %v8592_v58  ;;  %v8661_v22 = vld [vmem:[#allocation2 + $0xc0] sm:$0xff] }
 0x140   : > { %v6964_v2 = vpack.c.bf16 %v1672_v54, %v1672_v54  ;;  %v2305_v14 = vsel %vm8461_vm6, %v2300_v32, %v8520_v12  ;;  %v8607_v26 = vrot.slane %v2349_v10, 4  ;;  %v2366_v44 = vshrl.u32 %v6997_v3, 16  ;;  %v2082_v10 = vpop.permute.xlu0 %2081  ;;  %10929 = vst [vmem:[#allocation43_spill] sm:$0xff] %v8661_v22 }
 0x141   : > { %v2142_v7 = vmul.f32 %v2062_v60, %v8585_v57  ;;  %2566 = vrot.lane.b32.xlu0 %v2305_v14, %s7701_s14  ;;  %v8611_v23 = vrot.slane %v2379_v5, 4  ;;  %v2392_v21 = vshll.u32 %v7000_v6, 16  ;;  %v2141_v51 = vmul.f32 %v8531_v30, %v8594_v55 }
 0x142   : > { %v7510_v34 = vpop.eup %7509  ;;  %v2144_v12 = vmul.f32 %v2072_v16, %v8596_v4  ;;  %1800 = vrot.lane.b32.xlu1 %v6964_v2, %s7700_s13  ;;  %v2382_v27 = vshll.u32 %v6999_v50, 16  ;;  %v2386_v3 = vshrl.u32 %v6999_v50, 16  ;;  %v1675_v60 = vmul.f32 %v8533_v11, %v8208_v29  ;;  %v8629_v11 = vld [vmem:[#allocation2 + $0x98] sm:$0xff] }
 0x143   : > { %v743_v38 = vmul.f32 %v7510_v34, %v8435_v39  ;;  %v8603_v39 = vpop.permute.xlu1 %2076  ;;  %v2412_v5 = vshll.u32 %v7002_v15, 16  ;;  %v2416_v54 = vshrl.u32 %v7002_v15, 16  ;;  %v8621_v30 = vrot.slane %v2362_v63, 5 }
 0x144   : > { %v7512_v28 = vpop.eup %7511  ;;  %v7004_v16 = vpack.c.bf16 %v2142_v7, %v2142_v7  ;;  %v6967_v2 = vpack.c.bf16 %v1675_v60, %v1675_v60  ;;  %v8627_v50 = vrot.slane %v2392_v21, 5  ;;  %v7003_v14 = vpack.c.bf16 %v2141_v51, %v2141_v51 }
 0x145   : > { %776 = vst.msk [vmem:[#allocation2 + $0xe0] sm:$0xff] %vm747_vm3, %v743_v38  ;;  %v746_v13 = vmul.f32 %v7512_v28, %v8441_v36  ;;  %v7514_v32 = vpop.eup %7513  ;;  %v2396_v36 = vshrl.u32 %v7000_v6, 16  ;;  %v7001_v38 = vpack.c.bf16 %v2139_v33, %v2139_v33  ;;  %v2315_v28 = vsel %vm8461_vm6, %v2310_v19, %v8481_v59 }
 0x146   : > { %v744_v34 = vmul.f32 %v7514_v32, %v8454_v52  ;;  %v2368_v6 = vrot.slane %v2366_v44, 4  ;;  %v7006_v29 = vpack.c.bf16 %v2144_v12, %v2144_v12  ;;  %2568 = vrot.lane.b32.xlu1 %v2315_v28, %s7701_s14  ;;  %v8634_v15 = vrot.slane %v2382_v27, 5  ;;  %1806 = vrot.lane.b32.xlu0 %v6967_v2, %s7700_s13  ;;  %v2092_v12 = vpop.permute.xlu0 %2091 }
 0x147   : > { %779 = vst.msk [vmem:[#allocation2 + $0xf8] sm:$0xff] %vm747_vm3, %v746_v13  ;;  %v8632_v52 = vpop.permute.xlu1 %2086  ;;  %v2398_v63 = vrot.slane %v2396_v36, 4  ;;  %v2388_v33 = vrot.slane %v2386_v3, 4  ;;  %v2143_v59 = vmul.f32 %v8564_v25, %v8629_v11  ;;  %v8639_v19 = vrot.slane %v2412_v5, 5 }
 0x148   : > { %777 = vst.msk [vmem:[#allocation2 + $0xe8] sm:$0xff] %vm747_vm3, %v744_v34  ;;  %v2418_v13 = vrot.slane %v2416_v54, 4  ;;  %v2402_v44 = vshll.u32 %v7001_v38, 16  ;;  %v2406_v7 = vshrl.u32 %v7001_v38, 16  ;;  %v2432_v21 = vshll.u32 %v7004_v16, 16  ;;  %v8648_v34 = vld [vmem:[#allocation2 + $0xb0] sm:$0xff] }
 0x149   : > { %10928 = vst [vmem:[#allocation42_spill] sm:$0xff] %v8639_v19  ;;  %v2436_v51 = vshrl.u32 %v7004_v16, 16  ;;  %v2335_v32 = vsel %vm8461_vm6, %v8582_v1, %v8529_v9  ;;  %v1673_v36 = vmul.f32 %v8495_v8, %v8197_v17  ;;  %v2369_v25 = vor.u32 %v2368_v6, %v8621_v30  ;;  %v8652_v16 = vld [vmem:[#allocation2 + $0xa8] sm:$0xff] }
 0x14a   : > { %v2422_v27 = vshll.u32 %v7003_v14, 16  ;;  %v2426_v3 = vshrl.u32 %v7003_v14, 16  ;;  %v2452_v60 = vshll.u32 %v7006_v29, 16  ;;  %2572 = vrot.lane.b32.xlu1 %v2335_v32, %s7701_s14  ;;  %v2399_v5 = vor.u32 %v2398_v63, %v8627_v50 }
 0x14b   : > { %v2456_v54 = vshrl.u32 %v7006_v29, 16  ;;  %v7005_v38 = vpack.c.bf16 %v2143_v59, %v2143_v59  ;;  %v6965_v28 = vpack.c.bf16 %v1673_v36, %v1673_v36  ;;  %v2389_v9 = vor.u32 %v2388_v33, %v8634_v15  ;;  %v2097_v2 = vpop.permute.xlu1 %2096 }
 0x14c   : > { %v2419_v17 = vor.u32 %v2418_v13, %v8639_v19  ;;  %v8656_v8 = vrot.slane %v2402_v44, 5  ;;  %v2408_v1 = vrot.slane %v2406_v7, 4  ;;  %v8658_v6 = vrot.slane %v2432_v21, 5 }
 0x14d   : > { %v2438_v14 = vrot.slane %v2436_v51, 4  ;;  %v2146_v32 = vmul.f32 %v2082_v10, %v8648_v34  ;;  %1802 = vrot.lane.b32.xlu0 %v6965_v28, %s7700_s13  ;;  %v1678_v29 = vmul.f32 %v8544_v43, %v8230_v62  ;;  %v8666_v63 = vrot.slane %v2422_v27, 5  ;;  %v2102_v51 = vpop.permute.xlu0 %2101 }
 0x14e   : > { %v2428_v33 = vrot.slane %v2426_v3, 4  ;;  %v8668_v59 = vrot.slane %v2452_v60, 5  ;;  %v2145_v13 = vmul.f32 %v8603_v39, %v8652_v16  ;;  %v2458_v44 = vrot.slane %v2456_v54, 4  ;;  %v8686_v60 = vld [vmem:[#allocation2 + $0xd0] sm:$0xff] }
 0x14f   : > { %v2442_v7 = vshll.u32 %v7005_v38, 16  ;;  %v2446_v21 = vshrl.u32 %v7005_v38, 16  ;;  %v6970_v10 = vpack.c.bf16 %v1678_v29, %v1678_v29  ;;  %v8672_v36 = vrot.slane %v2369_v25, 4  ;;  %v8692_v38 = vld [vmem:[#allocation2 + $0xb8] sm:$0xff] }
 0x150   : > { %v2409_v28 = vor.u32 %v2408_v1, %v8656_v8  ;;  %v2148_v19 = vmul.f32 %v2092_v12, %v8661_v22  ;;  %v2365_v62 = vsel %vm8461_vm6, %v8590_v20, %v8621_v30  ;;  %v8680_v43 = vrot.slane %v2399_v5, 4  ;;  %v8694_v20 = vld [vmem:[#allocation2 + $0xc8] sm:$0xff]  ;;  %v2107_v5 = vpop.permute.xlu1 %2106 }
 0x151   : > { %v8682_v27 = vrot.slane %v2389_v9, 4  ;;  %v8684_v39 = vrot.slane %v2419_v17, 4  ;;  %v7008_v3 = vpack.c.bf16 %v2146_v32, %v2146_v32  ;;  %1812 = vrot.lane.b32.xlu1 %v6970_v10, %s7700_s13  ;;  %2578 = vrot.lane.b32.xlu0 %v2365_v62, %s7701_s14  ;;  %v2439_v12 = vor.u32 %v2438_v14, %v8658_v6  ;;  %10930 = vst [vmem:[#allocation44_spill] sm:$0xff] %v8694_v20  ;;  %v8705_v32 = vld [vmem:[#allocation2 + $0xe0] sm:$0xff] }
 0x152   : > { %v2429_v25 = vor.u32 %v2428_v33, %v8666_v63  ;;  %v7007_v54 = vpack.c.bf16 %v2145_v13, %v2145_v13  ;;  %v1676_v30 = vmul.f32 %v8499_v37, %v8218_v42  ;;  %v2459_v9 = vor.u32 %v2458_v44, %v8668_v59  ;;  %10931 = vst [vmem:[#allocation45_spill] sm:$0xff] %v8705_v32 }
 0x153   : > { %v8699_v17 = vrot.slane %v2442_v7, 5  ;;  %v8701_v1 = vrot.slane %v2446_v21, 4  ;;  %v2147_v14 = vmul.f32 %v8632_v52, %v8692_v38  ;;  %v8707_v29 = vrot.slane %v2409_v28, 4  ;;  %v2112_v21 = vpop.permute.xlu0 %2111 }
 0x154   : > { %v7010_v33 = vpack.c.bf16 %v2148_v19, %v2148_v19  ;;  %v2150_v13 = vmul.f32 %v2102_v51, %v8686_v60  ;;  %v2345_v42 = vsel %vm8461_vm6, %v8574_v40, %v8555_v56  ;;  %v2472_v37 = vshll.u32 %v7008_v3, 16 }
 0x155   : > { %v2476_v44 = vshrl.u32 %v7008_v3, 16  ;;  %v2149_v7 = vmul.f32 %v2097_v2, %v8694_v20  ;;  %v6968_v10 = vpack.c.bf16 %v1676_v30, %v1676_v30  ;;  %2574 = vrot.lane.b32.xlu0 %v2345_v42, %s7701_s14  ;;  %v8716_v52 = vrot.slane %v2439_v12, 4  ;;  %v8726_v2 = vld [vmem:[#allocation2 + $0xd8] sm:$0xff]  ;;  %v2117_v20 = vpop.permute.xlu1 %2116 }
 0x156   : > { %v8718_v28 = vrot.slane %v2429_v25, 4  ;;  %v2462_v19 = vshll.u32 %v7007_v54, 16  ;;  %v2152_v51 = vmul.f32 %v2112_v21, %v8705_v32  ;;  %v8721_v62 = vrot.slane %v2459_v9, 4  ;;  %10933 = vst [vmem:[#allocation47_spill] sm:$0xff] %v8726_v2  ;;  %v8731_v21 = vld [vmem:[#allocation2 + $0xe8] sm:$0xff] }
 0x157   : > { %v7009_v40 = vpack.c.bf16 %v2147_v14, %v2147_v14  ;;  %1808 = vrot.lane.b32.xlu1 %v6968_v10, %s7700_s13  ;;  %v1679_v3 = vmul.f32 %v8592_v58, %v8232_v0  ;;  %v2466_v12 = vshrl.u32 %v7007_v54, 16  ;;  %v2492_v30 = vshll.u32 %v7010_v33, 16 }
 0x158   : > { %10932 = vst [vmem:[#allocation46_spill] sm:$0xff] %v8721_v62  ;;  %v7012_v25 = vpack.c.bf16 %v2150_v13, %v2150_v13  ;;  %v2151_v42 = vmul.f32 %v2107_v5, %v8726_v2  ;;  %v8733_v9 = vrot.slane %v2472_v37, 5  ;;  %v8735_v32 = vrot.slane %v2476_v44, 4 }
 0x159   : > { %v7011_v14 = vpack.c.bf16 %v2149_v7, %v2149_v7  ;;  %v6971_v56 = vpack.c.bf16 %v1679_v3, %v1679_v3  ;;  %v8737_v10 = vrot.slane %v2462_v19, 5  ;;  %v2496_v62 = vshrl.u32 %v7010_v33, 16  ;;  %v2122_v3 = vpop.permute.xlu0 %2121 }
 0x15a   : > { %v7014_v22 = vpack.c.bf16 %v2152_v51, %v2152_v51  ;;  %v2355_v0 = vsel %vm8461_vm6, %v8607_v26, %v8540_v61  ;;  %v2482_v58 = vshll.u32 %v7009_v40, 16  ;;  %v2486_v54 = vshrl.u32 %v7009_v40, 16  ;;  %v1937_v61 = vld [vmem:[#allocation2 + $0xf0] sm:$0x1] }
 0x15b   : > { %2576 = vrot.lane.b32.xlu1 %v2355_v0, %s7701_s14  ;;  %1814 = vrot.lane.b32.xlu0 %v6971_v56, %s7700_s13  ;;  %v2153_v5 = vmul.f32 %v2117_v20, %v8731_v21  ;;  %v1677_v13 = vmul.f32 %v8550_v41, %v8220_v45  ;;  %v2468_v37 = vrot.slane %v2466_v12, 4  ;;  %v8748_v44 = vrot.slane %v2492_v30, 5 }
 0x15c   : > { %v2512_v33 = vshll.u32 %v7012_v25, 16  ;;  %v7013_v7 = vpack.c.bf16 %v2151_v42, %v2151_v42  ;;  %v2516_v19 = vshrl.u32 %v7012_v25, 16  ;;  %v2502_v51 = vshll.u32 %v7011_v14, 16 }
 0x15d   : > { %v6969_v26 = vpack.c.bf16 %v1677_v13, %v1677_v13  ;;  %v1682_v40 = vmul.f32 %v8585_v57, %v8254_v47  ;;  %v2506_v0 = vshrl.u32 %v7011_v14, 16  ;;  %v2532_v56 = vshll.u32 %v7014_v22, 16 }
 0x15e   : > { %v2536_v2 = vshrl.u32 %v7014_v22, 16  ;;  %v2375_v45 = vsel %vm8461_vm6, %v8672_v36, %v8560_v31  ;;  %v2498_v41 = vrot.slane %v2496_v62, 4  ;;  %v8756_v20 = vrot.slane %v2482_v58, 5 }
 0x15f   : > { %v2488_v12 = vrot.slane %v2486_v54, 4  ;;  %v7015_v30 = vpack.c.bf16 %v2153_v5, %v2153_v5  ;;  %2580 = vrot.lane.b32.xlu1 %v2375_v45, %s7701_s14  ;;  %1810 = vrot.lane.b32.xlu0 %v6969_v26, %s7700_s13  ;;  %v8760_v25 = vrot.slane %v2512_v33, 5  ;;  %v2522_v47 = vshll.u32 %v7013_v7, 16 }
 0x160   : > { %v2526_v57 = vshrl.u32 %v7013_v7, 16  ;;  %v2154_v42 = vmul.f32 %v2122_v3, %v1937_v61  ;;  %v2518_v22 = vrot.slane %v2516_v19, 4  ;;  %v8762_v14 = vrot.slane %v2502_v51, 5 }
 0x161   : > { %v6974_v13 = vpack.c.bf16 %v1682_v40, %v1682_v40  ;;  %v1680_v31 = vmul.f32 %v8557_v24, %v8242_v46  ;;  %v2508_v36 = vrot.slane %v2506_v0, 4  ;;  %v8766_v62 = vrot.slane %v2532_v56, 5 }
 0x162   : > { %v2538_v58 = vrot.slane %v2536_v2, 4  ;;  %v2405_v54 = vsel %vm8461_vm6, %v8680_v43, %v8656_v8  ;;  %v2479_v5 = vor.u32 %v8735_v32, %v8733_v9  ;;  %v2469_v33 = vor.u32 %v2468_v37, %v8737_v10 }
 0x163   : > { %v2542_v7 = vshll.u32 %v7015_v30, 16  ;;  %v2546_v19 = vshrl.u32 %v7015_v30, 16  ;;  %1820 = vrot.lane.b32.xlu1 %v6974_v13, %s7700_s13  ;;  %2586 = vrot.lane.b32.xlu0 %v2405_v54, %s7701_s14  ;;  %v2499_v46 = vor.u32 %v2498_v41, %v8748_v44  ;;  %v8778_v24 = vrot.slane %v2522_v47, 5  ;;  %v8814_v47 = vpop.permute.xlu1 %2763 }
 0x164   : > { %v2528_v2 = vrot.slane %v2526_v57, 4  ;;  %v7016_v51 = vpack.c.bf16 %v2154_v42, %v2154_v42  ;;  %v2489_v3 = vor.u32 %v2488_v12, %v8756_v20  ;;  %v2519_v8 = vor.u32 %v2518_v22, %v8760_v25 }
 0x165   : > { %v6972_v43 = vpack.c.bf16 %v1680_v31, %v1680_v31  ;;  %v1683_v32 = vmul.f32 %v8629_v11, %v8256_v48  ;;  %v10934_v37 = vor.u32 %v8701_v1, %v8699_v17  ;;  %v2509_v26 = vor.u32 %v2508_v36, %v8762_v14  ;;  %v10936_v36 = vld [vmem:[#allocation33_spill] sm:$0xff] }
 0x166   : > { %v2539_v40 = vor.u32 %v2538_v58, %v8766_v62  ;;  %v2385_v0 = vsel %vm8461_vm6, %v8611_v23, %v8634_v15  ;;  %v8795_v56 = vrot.slane %v2479_v5, 4  ;;  %v8797_v45 = vrot.slane %v2469_v33, 4 }
 0x167   : > { %v8787_v61 = vrot.slane %v10934_v37, 4  ;;  %v8799_v41 = vrot.slane %v2542_v7, 5  ;;  %v2548_v48 = vrot.slane %v2546_v19, 4  ;;  %1816 = vrot.lane.b32.xlu1 %v6972_v43, %s7700_s13  ;;  %2582 = vrot.lane.b32.xlu0 %v2385_v0, %s7701_s14  ;;  %v8803_v11 = vrot.slane %v2499_v46, 4  ;;  %v10939_v7 = vld [vmem:[#allocation36_spill] sm:$0xff]  ;;  %v781_v19 = vld [vmem:[#allocation2 + $0x8] sm:$0xff] }
 0x168   : > { %v2529_v1 = vor.u32 %v2528_v2, %v8778_v24  ;;  %v8806_v12 = vshll.u32 %v7016_v51, 16  ;;  %v1681_v23 = vmul.f32 %v8594_v55, %v8244_v49  ;;  %v8810_v15 = vrot.slane %v2489_v3, 4  ;;  %v8880_v51 = vpop.permute.xlu1 %2768  ;;  %v10942_v43 = vld [vmem:[#allocation39_spill] sm:$0xff]  ;;  %v10944_v0 = vld [vmem:[#allocation46_spill] sm:$0xff] }
 0x169   : > { %v8812_v30 = vrot.slane %v2519_v8, 4  ;;  %v6975_v57 = vpack.c.bf16 %v1683_v32, %v1683_v32  ;;  %v1686_v42 = vmul.f32 %v8648_v34, %v8278_v53  ;;  %v8818_v22 = vrot.slane %v2509_v26, 4  ;;  %v10935_v53 = vld [vmem:[#allocation34_spill] sm:$0xff]  ;;  %v10943_v32 = vld [vmem:[#allocation47_spill] sm:$0xff]  ;;  %v10958_v8 = vld [vmem:[#allocation8_spill] sm:$0xff] }
 0x16a   : > { %v8820_v13 = vrot.slane %v2539_v40, 4  ;;  %v2395_v31 = vsel %vm8461_vm6, %v8682_v27, %v8627_v50  ;;  %v8828_v49 = vmul.f32 %v8596_v4, %v8266_v35  ;;  %v2549_v55 = vor.u32 %v2548_v48, %v8799_v41  ;;  %v10937_v4 = vld [vmem:[#allocation42_spill] sm:$0xff]  ;;  %v783_v26 = vld [vmem:[#allocation2 + $0x18] sm:$0xff] }
 0x16b   : > { %2584 = vrot.lane.b32.xlu1 %v2395_v31, %s7701_s14  ;;  %1822 = vrot.lane.b32.xlu0 %v6975_v57, %s7700_s13  ;;  %v8835_v34 = vmul.f32 %v8692_v38, %v10935_v53  ;;  %v8839_v58 = vmul.f32 %v8652_v16, %v10936_v36  ;;  %v8841_v50 = vrot.slane %v2529_v1, 4  ;;  %v2415_v27 = vsel %vm8461_vm6, %v8707_v29, %v10937_v4  ;;  %v10945_v1 = vld [vmem:[#allocation37_spill] sm:$0xff]  ;;  %v10956_v40 = vld [vmem:[#allocation7_spill] sm:$0xff] }
 0x16c   : > { %v6973_v54 = vpack.c.bf16 %v1681_v23, %v1681_v23  ;;  %v10938_v5 = vmov 0   ;;  %v6978_v38 = vpack.c.bf16 %v1686_v42, %v1686_v42  ;;  %v2445_v16 = vsel %vm8461_vm6, %v8716_v52, %v8699_v17  ;;  %v10940_v52 = vld [vmem:[#allocation35_spill] sm:$0xff]  ;;  %v10946_v23 = vld [vmem:[#allocation44_spill] sm:$0xff]  ;;  %v10947_v42 = vld [vmem:[#allocation6_spill] sm:$0xff] }
 0x16d   : > { %1905 = vst.msk [vmem:[#allocation3] sm:$0xf] %vm1874_vm7, %v10938_v5  ;;  %1906 = vst.msk [vmem:[#allocation3 + $0x4] sm:$0xf] %vm1874_vm7, %v10938_v5  ;;  %v2425_v33 = vsel %vm8461_vm6, %v8684_v39, %v8666_v63  ;;  %v8862_v29 = vmul.f32 %v8686_v60, %v10939_v7  ;;  %v6976_v46 = vpack.c.bf16 %v8828_v49, %v8828_v49  ;;  %v10941_v63 = vld [vmem:[#allocation43_spill] sm:$0xff]  ;;  %v8878_v60 = vrot.slane %v2549_v55, 4 }
 0x16e   : > { %v2435_v2 = vsel %vm8461_vm6, %v8718_v28, %v8658_v6  ;;  %v8876_v39 = vmul.f32 %v10941_v63, %v10940_v52  ;;  %v6979_v3 = vpack.c.bf16 %v8835_v34, %v8835_v34  ;;  %v8890_v37 = vmul.f32 %v10943_v32, %v10942_v43  ;;  %v780_v49 = vld [vmem:[#allocation2] sm:$0xff]  ;;  %v10948_v34 = vld [vmem:[#allocation38_spill] sm:$0xff]  ;;  %v10949_v36 = vld [vmem:[#allocation45_spill] sm:$0xff]  ;;  %2686 = vst.msk [vmem:[#allocation3] sm:$0xf] %vm2655_vm11, %v10938_v5 }
 0x16f   : > { %2588 = vrot.lane.b32.xlu1 %v2415_v27, %s7701_s14  ;;  %1818 = vrot.lane.b32.xlu0 %v6973_v54, %s7700_s13  ;;  %v8902_v57 = vmul.f32 %v10946_v23, %v10945_v1  ;;  %v991_v31 = vmul.f32 %v10947_v42, %v781_v19  ;;  %v8913_v4 = vmul.f32 %v10949_v36, %v10948_v34  ;;  %v10950_v27 = vld [vmem:[#allocation41_spill] sm:$0xff]  ;;  %v10952_v42 = vld [vmem:[#allocation4_spill] sm:$0xff]  ;;  %v8939_v36 = vpop.permute.xlu1 %2778  ;;  %vm2650_vm3 = vsmask.f32 7950 }
 0x170   : > { %v6928_v54 = vpack.c.bf16 %v10950_v27, %v10950_v27  ;;  %v10951_v63 = vld [vmem:[#allocation5_spill] sm:$0xff]  ;;  %v990_v34 = vmul.f32 %v10952_v42, %v780_v49  ;;  %v784_v19 = vld [vmem:[#allocation2 + $0x20] sm:$0xff]  ;;  %vm9081_vm5 = vmand %vm2649_vm15, %vm2650_vm3  ;;  %vm4434_vm15 = vcmask 93267  }
 0x171   : > { %v6927_v52 = vpack.c.bf16 %v991_v31, %v991_v31  ;;  %v993_v43 = vmul.f32 %v10951_v63, %v783_v26  ;;  %v994_v17 = vmul.f32 %v10958_v8, %v784_v19  ;;  %v1414_v8 = vld [vmem:[#allocation3 + $0x8] sm:$0xf]  ;;  %v9573_v7 = vld [vmem:[%s10878_s5 + $0x20] sm:$0xff] }
 0x172   : > { %v1131_v23 = vshrl.u32 %v6928_v54, 16  ;;  %v6926_v35 = vpack.c.bf16 %v990_v34, %v990_v34  ;;  %v1134_v49 = vshll.u32 %v6928_v54, 16  ;;  %v10953_v34 = vld [vmem:[#allocation40_spill] sm:$0xff]  ;;  %v789_v19 = vld [vmem:[#allocation2 + $0x48] sm:$0xff] }
 0x173   : > { %1828 = vrot.lane.b32.xlu1 %v6978_v38, %s7700_s13  ;;  %2594 = vrot.lane.b32.xlu0 %v2445_v16, %s7701_s14  ;;  %v1122_v16 = vshrl.u32 %v6927_v52, 16  ;;  %v6929_v26 = vpack.c.bf16 %v993_v43, %v993_v43  ;;  %v785_v43 = vld [vmem:[#allocation2 + $0x28] sm:$0xff]  ;;  %v786_v38 = vld [vmem:[#allocation2 + $0x30] sm:$0xff]  ;;  %v1125_v27 = vshll.u32 %v6927_v52, 16  ;;  %v787_v52 = vld [vmem:[#allocation2 + $0x38] sm:$0xff]  ;;  %v6930_v28 = vpack.c.bf16 %v994_v17, %v994_v17 }
 0x174   : > { %v1133_v63 = vrot.slane %v1131_v23, 7  ;;  %v1114_v54 = vshrl.u32 %v6926_v35, 16  ;;  %v1117_v48 = vshll.u32 %v6926_v35, 16 }
 0x175   : > { %v1124_v1 = vrot.slane %v1122_v16, 7  ;;  %v1140_v31 = vshrl.u32 %v6929_v26, 16  ;;  %v1143_v23 = vshll.u32 %v6929_v26, 16  ;;  %v8953_v16 = vmul.f32 %v8731_v21, %v10953_v34  ;;  %v10957_v34 = vld [vmem:[#allocation10_spill] sm:$0xff] }
 0x176   : > { %v1136_v42 = vor.u32 %v1134_v49, %v1133_v63  ;;  %v995_v21 = vmul.f32 %v10956_v40, %v785_v43  ;;  %v996_v55 = vmul.f32 %v10957_v34, %v786_v38  ;;  %v1149_v17 = vshrl.u32 %v6930_v28, 16 }
 0x177   : > { %1824 = vrot.lane.b32.xlu1 %v6976_v46, %s7700_s13  ;;  %2590 = vrot.lane.b32.xlu0 %v2425_v33, %s7701_s14  ;;  %v1129_v32 = vrot.slane %v1124_v1, 4  ;;  %v8955_v53 = vrot.slane %v1140_v31, 7  ;;  %v1116_v46 = vrot.slane %v1114_v54, 7  ;;  %v1127_v26 = vor.u32 %v1125_v27, %v1124_v1 }
 0x178   : > { %v1789_v33 = vpop.permute.xlu1 %1788  ;;  %v1138_v31 = vrot.slane %v1133_v63, 4  ;;  %v6931_v38 = vpack.c.bf16 %v995_v21, %v995_v21  ;;  %v8988_v63 = vpop.permute.xlu0 %2758 }
 0x179   : > { %v1137_v49 = vsel %vm8959_vm12, %v1129_v32, %v1136_v42  ;;  %v1145_v35 = vor.u32 %v1143_v23, %v8955_v53  ;;  %v1119_v40 = vor.u32 %v1117_v48, %v1116_v46  ;;  %v1120_v1 = vrot.slane %v1116_v46, 4  ;;  %v790_v23 = vld [vmem:[#allocation2 + $0x50] sm:$0xff] }
 0x17a   : > { %1419 = vst.msk [vmem:[#allocation3 + $0x10] sm:$0xf] %vm1411_vm2, %v1137_v49  ;;  %v6932_v32 = vpack.c.bf16 %v996_v55, %v996_v55  ;;  %v1158_v42 = vshrl.u32 %v6931_v38, 16  ;;  %v10962_v46 = vsel %vm8461_vm6, %v8787_v61, %v8668_v59  ;;  %v10964_v49 = vld [vmem:[#allocation11_spill] sm:$0xff] }
 0x17b   : > { %2592 = vrot.lane.b32.xlu1 %v2435_v2, %s7701_s14  ;;  %1830 = vrot.lane.b32.xlu0 %v6979_v3, %s7700_s13  ;;  %1877 = vst.msk [vmem:[#allocation3 + $0x10] sm:$0xf] %vm1874_vm7, %v1789_v33  ;;  %v1146_v6 = vsel %vm8959_vm12, %v1138_v31, %v1145_v35  ;;  %v1147_v2 = vrot.slane %v8955_v53, 4  ;;  %v10961_v3 = vld [vmem:[#allocation9_spill] sm:$0xff]  ;;  %v1128_v55 = vsel %vm8959_vm12, %v1120_v1, %v1127_v26  ;;  %v1151_v35 = vrot.slane %v1149_v17, 7  ;;  %v10968_v17 = vld [vmem:[#allocation12_spill] sm:$0xff] }
 0x17c   : > { %v997_v48 = vmul.f32 %v10961_v3, %v787_v52  ;;  %1420 = vst.msk [vmem:[#allocation3 + $0x14] sm:$0xf] %vm1411_vm2, %v1146_v6  ;;  %v1167_v43 = vshrl.u32 %v6932_v32, 16  ;;  %1418 = vst.msk [vmem:[#allocation3 + $0xc] sm:$0xf] %vm1411_vm2, %v1128_v55  ;;  %v1170_v54 = vshll.u32 %v6932_v32, 16  ;;  %v1415_v53 = vsel %vm8979_vm13, %v1119_v40, %v1414_v8 }
 0x17d   : > { %v10963_v26 = vpack.c.bf16 %v8839_v58, %v8839_v58  ;;  %v1160_v21 = vrot.slane %v1158_v42, 7  ;;  %1416 = vst [vmem:[#allocation3 + $0x8] sm:$0xf] %v1415_v53  ;;  %v1161_v52 = vshll.u32 %v6931_v38, 16  ;;  %v999_v31 = vmul.f32 %v10964_v49, %v789_v19  ;;  %v10965_v32 = vld [vmem:[#allocation14_spill] sm:$0xff]  ;;  %v9008_v8 = vld [vmem:[#allocation2 + $0x40] sm:$0xff]  ;;  %v9012_v38 = vpop.permute.xlu0 %2773 }
 0x17e   : > { %v6933_v33 = vpack.c.bf16 %v997_v48, %v997_v48  ;;  %v1169_v34 = vrot.slane %v1167_v43, 7  ;;  %v1152_v40 = vshll.u32 %v6930_v28, 16  ;;  %v1000_v27 = vmul.f32 %v10965_v32, %v790_v23 }
 0x17f   : > { %2596 = vrot.lane.b32.xlu1 %v10962_v46, %s7701_s14  ;;  %1826 = vrot.lane.b32.xlu0 %v10963_v26, %s7700_s13  ;;  %v1165_v59 = vrot.slane %v1160_v21, 4  ;;  %v1163_v3 = vor.u32 %v1161_v52, %v1160_v21  ;;  %v1156_v55 = vrot.slane %v1151_v35, 4  ;;  %v6935_v42 = vpack.c.bf16 %v999_v31, %v999_v31  ;;  %v793_v52 = vld [vmem:[#allocation2 + $0x68] sm:$0xff]  ;;  %v9064_v46 = vld [vmem:[#allocation2 + $0x78] sm:$0xff] }
 0x180   : > { %v1176_v1 = vshrl.u32 %v6933_v33, 16  ;;  %v1172_v61 = vor.u32 %v1170_v54, %v1169_v34  ;;  %v1179_v6 = vshll.u32 %v6933_v33, 16  ;;  %v1154_v58 = vor.u32 %v1152_v40, %v1151_v35  ;;  %v791_v33 = vld [vmem:[#allocation2 + $0x58] sm:$0xff] }
 0x181   : > { %v10966_v28 = vpack.c.bf16 %v8862_v29, %v8862_v29  ;;  %v10967_v19 = vsel %vm8461_vm6, %v8795_v56, %v8756_v20  ;;  %v1174_v23 = vrot.slane %v1169_v34, 4  ;;  %v6936_v54 = vpack.c.bf16 %v1000_v27, %v1000_v27  ;;  %v794_v27 = vld [vmem:[#allocation2 + $0x70] sm:$0xff] }
 0x182   : > { %v9010_v48 = vrot.slane %v1176_v1, 7  ;;  %v1173_v43 = vsel %vm8959_vm12, %v1165_v59, %v1172_v61  ;;  %v998_v53 = vmul.f32 %v10968_v17, %v9008_v8  ;;  %v1155_v29 = vsel %vm8959_vm12, %v1147_v2, %v1154_v58  ;;  %v10971_v1 = vld [vmem:[#allocation13_spill] sm:$0xff] }
 0x183   : > { %1836 = vrot.lane.b32.xlu1 %v10966_v28, %s7700_s13  ;;  %2602 = vrot.lane.b32.xlu0 %v10967_v19, %s7701_s14  ;;  %1423 = vst.msk [vmem:[#allocation3 + $0x20] sm:$0xf] %vm1411_vm2, %v1173_v43  ;;  %v1164_v56 = vsel %vm8959_vm12, %v1156_v55, %v1163_v3  ;;  %v1194_v26 = vshrl.u32 %v6935_v42, 16  ;;  %1421 = vst.msk [vmem:[#allocation3 + $0x18] sm:$0xf] %vm1411_vm2, %v1155_v29  ;;  %v1203_v21 = vshrl.u32 %v6936_v54, 16 }
 0x184   : > { %v1181_v20 = vor.u32 %v1179_v6, %v9010_v48  ;;  %1422 = vst.msk [vmem:[#allocation3 + $0x1c] sm:$0xf] %vm1411_vm2, %v1164_v56  ;;  %v1206_v34 = vshll.u32 %v6936_v54, 16  ;;  %v6934_v2 = vpack.c.bf16 %v998_v53, %v998_v53  ;;  %v1451_v49 = vld [vmem:[#allocation3 + $0x8] sm:$0x1]  ;;  %v1183_v40 = vrot.slane %v9010_v48, 4 }
 0x185   : > { %v1196_v35 = vrot.slane %v1194_v26, 7  ;;  %v1001_v32 = vmul.f32 %v10971_v1, %v791_v33  ;;  %v10972_v59 = vpack.c.bf16 %v8876_v39, %v8876_v39  ;;  %v10973_v61 = vsel %vm8461_vm6, %v10944_v0, %v8737_v10  ;;  %v9059_v28 = vld [vmem:[#allocation2 + $0x60] sm:$0xff]  ;;  %v10975_v33 = vld [vmem:[#allocation18_spill] sm:$0xff] }
 0x186   : > { %v1182_v31 = vsel %vm8959_vm12, %v1174_v23, %v1181_v20  ;;  %v1452_v3 = vsel %vm9033_vm0, 0, %v1451_v49  ;;  %v1205_v58 = vrot.slane %v1203_v21, 7  ;;  %v1185_v48 = vshrl.u32 %v6934_v2, 16  ;;  %v10974_v23 = vld [vmem:[#allocation15_spill] sm:$0xff]  ;;  %v10976_v26 = vld [vmem:[#allocation16_spill] sm:$0xff]  ;;  %vm4435_vm0 = vmand %vm4434_vm15, %vm2650_vm3 }
 0x187   : > { %1832 = vrot.lane.b32.xlu1 %v10972_v59, %s7700_s13  ;;  %2598 = vrot.lane.b32.xlu0 %v10973_v61, %s7701_s14  ;;  %1424 = vst.msk [vmem:[#allocation3 + $0x24] sm:$0xf] %vm1411_vm2, %v1182_v31  ;;  %v1197_v55 = vshll.u32 %v6935_v42, 16  ;;  %1453 = vst [vmem:[#allocation3 + $0x8] sm:$0x1] %v1452_v3  ;;  %v1201_v39 = vrot.slane %v1196_v35, 4  ;;  %v6937_v43 = vpack.c.bf16 %v1001_v32, %v1001_v32 }
 0x188   : > { %v1791_v6 = vpop.permute.xlu0 %1790  ;;  %v1188_v19 = vshll.u32 %v6934_v2, 16  ;;  %v1003_v10 = vmul.f32 %v10974_v23, %v793_v52  ;;  %v1208_v54 = vor.u32 %v1206_v34, %v1205_v58  ;;  %v1187_v17 = vrot.slane %v1185_v48, 7  ;;  %v2652_v49 = vld [vmem:[#allocation3 + $0x4] sm:$0x8] }
 0x189   : > { %1878 = vst.msk [vmem:[#allocation3 + $0x14] sm:$0xf] %vm1874_vm7, %v1791_v6  ;;  %v1199_v53 = vor.u32 %v1197_v55, %v1196_v35  ;;  %v1004_v29 = vmul.f32 %v10975_v33, %v794_v27  ;;  %v1212_v42 = vshrl.u32 %v6937_v43, 16  ;;  %v1215_v20 = vshll.u32 %v6937_v43, 16  ;;  %v9110_v33 = vld [vmem:[#allocation2 + $0x90] sm:$0xff]  ;;  %v9118_v52 = vld [vmem:[#allocation2 + $0x80] sm:$0xff] }
 0x18a   : > { %v6939_v56 = vpack.c.bf16 %v1003_v10, %v1003_v10  ;;  %v1002_v21 = vmul.f32 %v10976_v26, %v9059_v28  ;;  %v10977_v34 = vsel %vm8461_vm6, %v8797_v45, %v8733_v9  ;;  %v10978_v2 = vpack.c.bf16 %v8890_v37, %v8890_v37  ;;  %v10981_v37 = vld [vmem:[#allocation17_spill] sm:$0xff] }
 0x18b   : > { %v1785_v0 = vpop.permute.xlu1 %1784  ;;  %2600 = vrot.lane.b32.xlu1 %v10977_v34, %s7701_s14  ;;  %v1209_v31 = vsel %vm8959_vm12, %v1201_v39, %v1208_v54  ;;  %v1190_v35 = vor.u32 %v1188_v19, %v1187_v17  ;;  %v1192_v1 = vrot.slane %v1187_v17, 4  ;;  %v6940_v32 = vpack.c.bf16 %v1004_v29, %v1004_v29  ;;  %v9094_v39 = vld [vmem:[#allocation2 + $0x88] sm:$0xff] }
 0x18c   : > { %1875 = vst.msk [vmem:[#allocation3 + $0x8] sm:$0xf] %vm1874_vm7, %v1785_v0  ;;  %1838 = vrot.lane.b32.xlu0 %v10978_v2, %s7700_s13  ;;  %v1214_v9 = vrot.slane %v1212_v42, 7  ;;  %v1230_v45 = vshrl.u32 %v6939_v56, 16  ;;  %v6938_v27 = vpack.c.bf16 %v1002_v21, %v1002_v21  ;;  %v1005_v59 = vmul.f32 %v10981_v37, %v9064_v46 }
 0x18d   : > { %1427 = vst.msk [vmem:[#allocation3 + $0x30] sm:$0xf] %vm1411_vm2, %v1209_v31  ;;  %v1191_v6 = vsel %vm8959_vm12, %v1183_v40, %v1190_v35  ;;  %v1210_v3 = vrot.slane %v1205_v58, 4  ;;  %v1200_v48 = vsel %vm8959_vm12, %v1192_v1, %v1199_v53  ;;  %v1239_v55 = vshrl.u32 %v6940_v32, 16  ;;  %v10985_v35 = vld [vmem:[#allocation22_spill] sm:$0xff] }
 0x18e   : > { %1425 = vst.msk [vmem:[#allocation3 + $0x28] sm:$0xf] %vm1411_vm2, %v1191_v6  ;;  %v1217_v43 = vor.u32 %v1215_v20, %v1214_v9  ;;  %1426 = vst.msk [vmem:[#allocation3 + $0x2c] sm:$0xf] %vm1411_vm2, %v1200_v48  ;;  %v1232_v23 = vrot.slane %v1230_v45, 7  ;;  %v1242_v10 = vshll.u32 %v6940_v32, 16  ;;  %v10982_v40 = vsel %vm8461_vm6, %v8810_v15, %v8748_v44 }
 0x18f   : > { %v2557_v61 = vpop.permute.xlu1 %2556  ;;  %2604 = vrot.lane.b32.xlu1 %v10982_v40, %s7701_s14  ;;  %v10983_v58 = vpack.c.bf16 %v8902_v57, %v8902_v57  ;;  %v1241_v0 = vrot.slane %v1239_v55, 7  ;;  %v1219_v54 = vrot.slane %v1214_v9, 4  ;;  %v1221_v17 = vshrl.u32 %v6938_v27, 16  ;;  %v10984_v44 = vld [vmem:[#allocation19_spill] sm:$0xff]  ;;  %v10990_v6 = vld [vmem:[#allocation20_spill] sm:$0xff] }
 0x190   : > { %v2653_v19 = vsel %vm9081_vm5, %v2557_v61, %v2652_v49  ;;  %v6941_v53 = vpack.c.bf16 %v1005_v59, %v1005_v59  ;;  %v1218_v42 = vsel %vm8959_vm12, %v1210_v3, %v1217_v43  ;;  %v1237_v20 = vrot.slane %v1232_v23, 4  ;;  %v9149_v48 = vld [vmem:[#allocation2 + $0x98] sm:$0xff] }
 0x191   : > { %1834 = vrot.lane.b32.xlu0 %v10983_v58, %s7700_s13  ;;  %2654 = vst [vmem:[#allocation3 + $0x4] sm:$0x8] %v2653_v19  ;;  %v1787_v29 = vpop.permute.xlu0 %1786  ;;  %v1233_v26 = vshll.u32 %v6939_v56, 16  ;;  %v1007_v15 = vmul.f32 %v10984_v44, %v9094_v39  ;;  %1428 = vst.msk [vmem:[#allocation3 + $0x34] sm:$0xf] %vm1411_vm2, %v1218_v42  ;;  %v1244_v57 = vor.u32 %v1242_v10, %v1241_v0  ;;  %v1223_v21 = vrot.slane %v1221_v17, 7 }
 0x192   : > { %1876 = vst.msk [vmem:[#allocation3 + $0xc] sm:$0xf] %vm1874_vm7, %v1787_v29  ;;  %v1224_v34 = vshll.u32 %v6938_v27, 16  ;;  %v1248_v2 = vshrl.u32 %v6941_v53, 16  ;;  %v1251_v49 = vshll.u32 %v6941_v53, 16  ;;  %v1008_v1 = vmul.f32 %v10985_v35, %v9110_v33  ;;  %v9182_v29 = vld [vmem:[#allocation2 + $0xa8] sm:$0xff] }
 0x193   : > { %v1235_v31 = vor.u32 %v1233_v26, %v1232_v23  ;;  %v6943_v32 = vpack.c.bf16 %v1007_v15, %v1007_v15  ;;  %v10986_v56 = vpack.c.bf16 %v8913_v4, %v8913_v4  ;;  %v10987_v9 = vsel %vm8461_vm6, %v8812_v30, %v8778_v24  ;;  %v9186_v26 = vld [vmem:[#allocation2 + $0xb0] sm:$0xff]  ;;  %v10995_v35 = vld [vmem:[#allocation23_spill] sm:$0xff] }
 0x194   : > { %v1245_v45 = vsel %vm8959_vm12, %v1237_v20, %v1244_v57  ;;  %v1226_v27 = vor.u32 %v1224_v34, %v1223_v21  ;;  %v9134_v37 = vrot.slane %v1248_v2, 7  ;;  %v1228_v59 = vrot.slane %v1223_v21, 4 }
 0x195   : > { %1840 = vrot.lane.b32.xlu1 %v10986_v56, %s7700_s13  ;;  %2610 = vrot.lane.b32.xlu0 %v10987_v9, %s7701_s14  ;;  %v2535_v4 = vsel %vm8461_vm6, %v8841_v50, %v8766_v62  ;;  %1431 = vst.msk [vmem:[#allocation3 + $0x40] sm:$0xf] %vm1411_vm2, %v1245_v45  ;;  %v6944_v24 = vpack.c.bf16 %v1008_v1, %v1008_v1  ;;  %v1266_v30 = vshrl.u32 %v6943_v32, 16  ;;  %v1246_v19 = vrot.slane %v1241_v0, 4  ;;  %v9197_v56 = vld [vmem:[#allocation2 + $0xa0] sm:$0xff]  ;;  %v9199_v9 = vld [vmem:[#allocation2 + $0xb8] sm:$0xff] }
 0x196   : > { %v1006_v3 = vmul.f32 %v10990_v6, %v9118_v52  ;;  %v1227_v55 = vsel %vm8959_vm12, %v1219_v54, %v1226_v27  ;;  %v1253_v62 = vor.u32 %v1251_v49, %v9134_v37  ;;  %v1236_v50 = vsel %vm8959_vm12, %v1228_v59, %v1235_v31  ;;  %v2563_v17 = vpop.permute.xlu0 %2562  ;;  %v1797_v42 = vpop.permute.xlu1 %1796 }
 0x197   : > { %v2545_v43 = vsel %vm8461_vm6, %v8820_v13, %v8799_v41  ;;  %1429 = vst.msk [vmem:[#allocation3 + $0x38] sm:$0xf] %vm1411_vm2, %v1227_v55  ;;  %1430 = vst.msk [vmem:[#allocation3 + $0x3c] sm:$0xf] %vm1411_vm2, %v1236_v50  ;;  %v1268_v10 = vrot.slane %v1266_v30, 7  ;;  %v1275_v40 = vshrl.u32 %v6944_v24, 16  ;;  %v10991_v0 = vsel %vm8461_vm6, %v8818_v22, %v8760_v25 }
 0x198   : > { %v2689_v23 = vld [vmem:[#allocation3 + $0x4] sm:$0xf]  ;;  %v6942_v58 = vpack.c.bf16 %v1006_v3, %v1006_v3  ;;  %v10992_v41 = vsel %vm8461_vm6, %v8803_v11, %v8762_v14  ;;  %v6985_v13 = vpack.c.bf16 %v8953_v16, %v8953_v16  ;;  %v1254_v53 = vsel %vm8959_vm12, %v1246_v19, %v1253_v62  ;;  %v10993_v25 = vld [vmem:[#allocation21_spill] sm:$0xff]  ;;  %2658 = vst.msk [vmem:[#allocation3 + $0x10] sm:$0xf] %vm2655_vm11, %v2563_v17 }
 0x199   : > { %2608 = vrot.lane.b32.xlu1 %v10991_v0, %s7701_s14  ;;  %2606 = vrot.lane.b32.xlu0 %v10992_v41, %s7701_s14  ;;  %v2690_v54 = vsel %vm9142_vm9, 0, %v2689_v23  ;;  %v1009_v22 = vmul.f32 %v10993_v25, %v9149_v48  ;;  %1432 = vst.msk [vmem:[#allocation3 + $0x44] sm:$0xf] %vm1411_vm2, %v1254_v53  ;;  %v1273_v14 = vrot.slane %v1268_v10, 4  ;;  %v1277_v11 = vrot.slane %v1275_v40, 7  ;;  %v10997_v3 = vld [vmem:[#allocation24_spill] sm:$0xff] }
 0x19a   : > { %2691 = vst [vmem:[#allocation3 + $0x4] sm:$0xf] %v2690_v54  ;;  %v1278_v16 = vshll.u32 %v6944_v24, 16  ;;  %v1257_v20 = vshrl.u32 %v6942_v58, 16  ;;  %v10994_v44 = vrot.slane %v8806_v12, 5  ;;  %v1255_v57 = vrot.slane %v9134_v37, 4 }
 0x19b   : > { %1881 = vst.msk [vmem:[#allocation3 + $0x20] sm:$0xf] %vm1874_vm7, %v1797_v42  ;;  %v6945_v21 = vpack.c.bf16 %v1009_v22, %v1009_v22  ;;  %v1269_v34 = vshll.u32 %v6943_v32, 16  ;;  %v1260_v31 = vshll.u32 %v6942_v58, 16  ;;  %v1011_v1 = vmul.f32 %v10995_v35, %v9182_v29  ;;  %v10996_v32 = vld [vmem:[#allocation26_spill] sm:$0xff]  ;;  %v10998_v19 = vld [vmem:[#allocation25_spill] sm:$0xff] }
 0x19c   : > { %v2555_v15 = vsel %vm8461_vm6, %v8878_v60, %v10994_v44  ;;  %v1280_v2 = vor.u32 %v1278_v16, %v1277_v11  ;;  %v1259_v49 = vrot.slane %v1257_v20, 7  ;;  %v1012_v27 = vmul.f32 %v10996_v32, %v9186_v26  ;;  %v2730_v37 = vld [vmem:[%s10878_s5 + $0x31] sm:$0xff]  ;;  %v9218_v50 = vld [vmem:[#allocation2 + $0xc8] sm:$0xff] }
 0x19d   : > { %2612 = vrot.lane.b32.xlu1 %v2535_v4, %s7701_s14  ;;  %1842 = vrot.lane.b32.xlu0 %v6985_v13, %s7700_s13  ;;  %v2559_v18 = vpop.permute.xlu0 %2558  ;;  %v1284_v12 = vshrl.u32 %v6945_v21, 16  ;;  %v1287_v60 = vshll.u32 %v6945_v21, 16  ;;  %v1271_v45 = vor.u32 %v1269_v34, %v1268_v10  ;;  %v6947_v24 = vpack.c.bf16 %v1011_v1, %v1011_v1  ;;  %v2729_v17 = vld [vmem:[%s10878_s5 + $0x29] sm:$0xff]  ;;  %v9238_v21 = vld [vmem:[#allocation2 + $0xc0] sm:$0xff]  ;;  %v9240_v34 = vld [vmem:[#allocation2 + $0xd8] sm:$0xff]  ;;  %s10664_s13 = scalar_lea.vmem %s10879_s6, %s6924_s9 }
 0x19e   : > { %2656 = vst.msk [vmem:[#allocation3 + $0x8] sm:$0xf] %vm2655_vm11, %v2559_v18  ;;  %v1281_v59 = vsel %vm8959_vm12, %v1273_v14, %v1280_v2  ;;  %v1262_v61 = vor.u32 %v1260_v31, %v1259_v49  ;;  %v1264_v4 = vrot.slane %v1259_v49, 4  ;;  %v6948_v6 = vpack.c.bf16 %v1012_v27, %v1012_v27  ;;  %v9231_v42 = vld [vmem:[#allocation2 + $0xd0] sm:$0xff]  ;;  %v2732_v32 = vld [vmem:[%s10878_s5 + $0x41] sm:$0xff]  ;;  %v2731_v27 = vld [vmem:[%s10878_s5 + $0x39] sm:$0xff] }
 0x19f   : > { %1435 = vst.msk [vmem:[#allocation3 + $0x50] sm:$0xf] %vm1411_vm2, %v1281_v59  ;;  %v9212_v30 = vrot.slane %v1284_v12, 7  ;;  %v1010_v55 = vmul.f32 %v10997_v3, %v9197_v56  ;;  %v1013_v62 = vmul.f32 %v10998_v19, %v9199_v9  ;;  %v1282_v10 = vrot.slane %v1277_v11, 4  ;;  %v1793_v11 = vpop.permute.xlu1 %1792 }
 0x1a0   : > { %v1263_v23 = vsel %vm8959_vm12, %v1255_v57, %v1262_v61  ;;  %v1272_v40 = vsel %vm8959_vm12, %v1264_v4, %v1271_v45  ;;  %v1302_v58 = vshrl.u32 %v6947_v24, 16  ;;  %v1311_v41 = vshrl.u32 %v6948_v6, 16  ;;  %1879 = vst.msk [vmem:[#allocation3 + $0x18] sm:$0xf] %vm1874_vm7, %v1793_v11 }
 0x1a1   : > { %2788 = vperm.xlu1 %7343, %v2730_v37   ;;  %2614 = vrot.lane.b32.xlu0 %v2545_v43, %s7701_s14  ;;  %1433 = vst.msk [vmem:[#allocation3 + $0x48] sm:$0xf] %vm1411_vm2, %v1263_v23  ;;  %v1289_v0 = vor.u32 %v1287_v60, %v9212_v30  ;;  %1434 = vst.msk [vmem:[#allocation3 + $0x4c] sm:$0xf] %vm1411_vm2, %v1272_v40  ;;  %v6946_v13 = vpack.c.bf16 %v1010_v55, %v1010_v55  ;;  %v1305_v54 = vshll.u32 %v6947_v24, 16  ;;  %v10999_v43 = vld [vmem:[#allocation27_spill] sm:$0xff] }
 0x1a2   : > { %v1304_v53 = vrot.slane %v1302_v58, 7  ;;  %v1314_v25 = vshll.u32 %v6948_v6, 16  ;;  %v6949_v22 = vpack.c.bf16 %v1013_v62, %v1013_v62  ;;  %v1015_v14 = vmul.f32 %v10999_v43, %v9218_v50  ;;  %v11000_v60 = vld [vmem:[#allocation30_spill] sm:$0xff]  ;;  %v11002_v24 = vld [vmem:[#allocation29_spill] sm:$0xff] }
 0x1a3   : > { %v1290_v16 = vsel %vm8959_vm12, %v1282_v10, %v1289_v0  ;;  %v1313_v20 = vrot.slane %v1311_v41, 7  ;;  %v1291_v44 = vrot.slane %v9212_v30, 4  ;;  %v1293_v57 = vshrl.u32 %v6946_v13, 16  ;;  %v1799_v37 = vpop.permute.xlu0 %1798  ;;  %v2561_v6 = vpop.permute.xlu1 %2560  ;;  %v9262_v0 = vld [vmem:[#allocation2 + $0xe0] sm:$0xff] }
 0x1a4   : > { %1436 = vst.msk [vmem:[#allocation3 + $0x54] sm:$0xf] %vm1411_vm2, %v1290_v16  ;;  %v1309_v2 = vrot.slane %v1304_v53, 4  ;;  %v1296_v49 = vshll.u32 %v6946_v13, 16  ;;  %v1320_v31 = vshrl.u32 %v6949_v22, 16  ;;  %v1323_v35 = vshll.u32 %v6949_v22, 16 }
 0x1a5   : > { %2616 = vrot.lane.b32.xlu1 %v2555_v15, %s7701_s14  ;;  %2783 = vperm.xlu0 %7342, %v2729_v17   ;;  %v1316_v1 = vor.u32 %v1314_v25, %v1313_v20  ;;  %v1295_v18 = vrot.slane %v1293_v57, 7  ;;  %v1307_v12 = vor.u32 %v1305_v54, %v1304_v53  ;;  %v1016_v45 = vmul.f32 %v11000_v60, %v9231_v42  ;;  %v11001_v15 = vld [vmem:[#allocation28_spill] sm:$0xff]  ;;  %v809_v17 = vld [vmem:[#allocation2 + $0xe8] sm:$0x7f]  ;;  %v2734_v53 = vld [vmem:[%s10878_s5 + $0x51] sm:$0xff]  ;;  %s7705_s14 = smov 8  }
 0x1a6   : > { %v1322_v59 = vrot.slane %v1320_v31, 7  ;;  %v6951_v61 = vpack.c.bf16 %v1015_v14, %v1015_v14  ;;  %v1014_v4 = vmul.f32 %v11001_v15, %v9238_v21  ;;  %v1017_v30 = vmul.f32 %v11002_v24, %v9240_v34  ;;  %1882 = vst.msk [vmem:[#allocation3 + $0x24] sm:$0xf] %vm1874_vm7, %v1799_v37  ;;  %v2733_v25 = vld [vmem:[%s10878_s5 + $0x49] sm:$0xff]  ;;  %v2736_v37 = vld [vmem:[%s10878_s5 + $0x61] sm:$0xff]  ;;  %v2735_v15 = vld [vmem:[%s10878_s5 + $0x59] sm:$0xff] }
 0x1a7   : > { %v1317_v3 = vsel %vm8959_vm12, %v1309_v2, %v1316_v1  ;;  %v1298_v55 = vor.u32 %v1296_v49, %v1295_v18  ;;  %v1300_v19 = vrot.slane %v1295_v18, 4  ;;  %v6952_v62 = vpack.c.bf16 %v1016_v45, %v1016_v45  ;;  %2657 = vst.msk [vmem:[#allocation3 + $0xc] sm:$0xf] %vm2655_vm11, %v2561_v6  ;;  %v11003_v49 = vld [vmem:[#allocation32_spill] sm:$0xff] }
 0x1a8   : > { %1439 = vst.msk [vmem:[#allocation3 + $0x60] sm:$0xf] %vm1411_vm2, %v1317_v3  ;;  %v1318_v23 = vrot.slane %v1313_v20, 4  ;;  %v1325_v10 = vor.u32 %v1323_v35, %v1322_v59  ;;  %v1338_v40 = vshrl.u32 %v6951_v61, 16  ;;  %v6950_v58 = vpack.c.bf16 %v1014_v4, %v1014_v4 }
 0x1a9   : > { %2798 = vperm.xlu1 %7343, %v2732_v32   ;;  %2793 = vperm.xlu0 %7342, %v2731_v27   ;;  %v1299_v41 = vsel %vm8959_vm12, %v1291_v44, %v1298_v55  ;;  %v1308_v13 = vsel %vm8959_vm12, %v1300_v19, %v1307_v12  ;;  %v1347_v54 = vshrl.u32 %v6952_v62, 16  ;;  %v1350_v14 = vshll.u32 %v6952_v62, 16  ;;  %v2565_v16 = vpop.permute.xlu1 %2564  ;;  %v11004_v12 = vld [vmem:[#allocation31_spill] sm:$0xff] }
 0x1aa   : > { %1437 = vst.msk [vmem:[#allocation3 + $0x58] sm:$0xf] %vm1411_vm2, %v1299_v41  ;;  %v1326_v22 = vsel %vm8959_vm12, %v1318_v23, %v1325_v10  ;;  %1438 = vst.msk [vmem:[#allocation3 + $0x5c] sm:$0xf] %vm1411_vm2, %v1308_v13  ;;  %v1340_v43 = vrot.slane %v1338_v40, 7  ;;  %v1329_v11 = vshrl.u32 %v6950_v58, 16  ;;  %v6953_v2 = vpack.c.bf16 %v1017_v30, %v1017_v30 }
 0x1ab   : > { %v1795_v20 = vpop.permute.xlu0 %1794  ;;  %1440 = vst.msk [vmem:[#allocation3 + $0x64] sm:$0xf] %vm1411_vm2, %v1326_v22  ;;  %v1349_v44 = vrot.slane %v1347_v54, 7  ;;  %v1332_v57 = vshll.u32 %v6950_v58, 16  ;;  %v1018_v31 = vmul.f32 %v11003_v49, %v9262_v0  ;;  %v1341_v18 = vshll.u32 %v6951_v61, 16  ;;  %v2738_v54 = vld [vmem:[%s10878_s5 + $0x71] sm:$0xff] }
 0x1ac   : > { %2659 = vst.msk [vmem:[#allocation3 + $0x14] sm:$0xf] %vm2655_vm11, %v2565_v16  ;;  %v1345_v35 = vrot.slane %v1340_v43, 4  ;;  %v1331_v1 = vrot.slane %v1329_v11, 7  ;;  %v1019_v60 = vmul.f32 %v11004_v12, %v809_v17  ;;  %v1327_v32 = vrot.slane %v1322_v59, 4  ;;  %v2737_v17 = vld [vmem:[%s10878_s5 + $0x69] sm:$0xff] }
 0x1ad   : > { %1880 = vst.msk [vmem:[#allocation3 + $0x1c] sm:$0xf] %vm1874_vm7, %v1795_v20  ;;  %2808 = vperm.xlu1 %7343, %v2734_v53   ;;  %2803 = vperm.xlu0 %7342, %v2733_v25   ;;  %v1352_v45 = vor.u32 %v1350_v14, %v1349_v44  ;;  %v1356_v27 = vshrl.u32 %v6953_v2, 16  ;;  %v1343_v30 = vor.u32 %v1341_v18, %v1340_v43  ;;  %v1359_v55 = vshll.u32 %v6953_v2, 16  ;;  %v2740_v2 = vld [vmem:[%s10878_s5 + $0x81] sm:$0xff]  ;;  %v2739_v49 = vld [vmem:[%s10878_s5 + $0x79] sm:$0xff] }
 0x1ae   : > { %v1334_v4 = vor.u32 %v1332_v57, %v1331_v1  ;;  %v1336_v24 = vrot.slane %v1331_v1, 4  ;;  %v6954_v6 = vpack.c.bf16 %v1018_v31, %v1018_v31  ;;  %v6955_v19 = vpack.c.bf16 %v1019_v60, %v1019_v60  ;;  %v2742_v18 = vld [vmem:[%s10878_s5 + $0x91] sm:$0xff]  ;;  %v2741_v12 = vld [vmem:[%s10878_s5 + $0x89] sm:$0xff] }
 0x1af   : > { %v1353_v61 = vsel %vm8959_vm12, %v1345_v35, %v1352_v45  ;;  %v1358_v3 = vrot.slane %v1356_v27, 7  ;;  %v1805_v10 = vpop.permute.xlu1 %1804  ;;  %v2571_v40 = vpop.permute.xlu0 %2570  ;;  %v1354_v58 = vrot.slane %v1349_v44, 4  ;;  %v2743_v27 = vld [vmem:[%s10878_s5 + $0x99] sm:$0xff]  ;;  %vm4397_vm13 = vcmask 93264  }
 0x1b0   : > { %1443 = vst.msk [vmem:[#allocation3 + $0x70] sm:$0xf] %vm1411_vm2, %v1353_v61  ;;  %v1335_v59 = vsel %vm8959_vm12, %v1327_v32, %v1334_v4  ;;  %v1344_v62 = vsel %vm8959_vm12, %v1336_v24, %v1343_v30  ;;  %v1365_v23 = vshrl.u32 %v6954_v6, 16  ;;  %v1374_v13 = vshrl.u32 %v6955_v19, 16  ;;  %v2744_v32 = vld [vmem:[%s10878_s5 + $0xa1] sm:$0xff]  ;;  %v2746_v4 = vld [vmem:[%s10878_s5 + $0xb1] sm:$0xff]  ;;  %vm4430_vm14 = vmand %vm4397_vm13, %vm2249_vm4 }
 0x1b1   : > { %2818 = vperm.xlu1 %7343, %v2736_v37   ;;  %2813 = vperm.xlu0 %7342, %v2735_v15   ;;  %1441 = vst.msk [vmem:[#allocation3 + $0x68] sm:$0xf] %vm1411_vm2, %v1335_v59  ;;  %v1361_v41 = vor.u32 %v1359_v55, %v1358_v3  ;;  %1442 = vst.msk [vmem:[#allocation3 + $0x6c] sm:$0xf] %vm1411_vm2, %v1344_v62  ;;  %v1368_v25 = vshll.u32 %v6954_v6, 16  ;;  %v1377_v14 = vshll.u32 %v6955_v19, 16 }
 0x1b2   : > { %1885 = vst.msk [vmem:[#allocation3 + $0x30] sm:$0xf] %vm1874_vm7, %v1805_v10  ;;  %v1367_v53 = vrot.slane %v1365_v23, 7  ;;  %v1376_v43 = vrot.slane %v1374_v13, 7  ;;  %v1363_v11 = vrot.slane %v1358_v3, 4  ;;  %v2745_v24 = vld [vmem:[%s10878_s5 + $0xa9] sm:$0xff] }
 0x1b3   : > { %2662 = vst.msk [vmem:[#allocation3 + $0x20] sm:$0xf] %vm2655_vm11, %v2571_v40  ;;  %v1362_v22 = vsel %vm8959_vm12, %v1354_v58, %v1361_v41  ;;  %v2567_v20 = vpop.permute.xlu0 %2566  ;;  %v2748_v61 = vld [vmem:[%s10878_s5 + $0xc1] sm:$0xff]  ;;  %v2747_v3 = vld [vmem:[%s10878_s5 + $0xb9] sm:$0xff]  ;;  %v7645_v23 = vld [vmem:[#allocation2 + $0x10] sm:$0xff]  ;;  %vm4874_vm5 = vcmask 109664  }
 0x1b4   : > { %1444 = vst.msk [vmem:[#allocation3 + $0x74] sm:$0xf] %vm1411_vm2, %v1362_v22  ;;  %v1370_v16 = vor.u32 %v1368_v25, %v1367_v53  ;;  %v1372_v44 = vrot.slane %v1367_v53, 4  ;;  %v1379_v57 = vor.u32 %v1377_v14, %v1376_v43  ;;  %v1801_v31 = vpop.permute.xlu1 %1800  ;;  %v7643_v55 = vld [vmem:[#allocation2] sm:$0xff]  ;;  %v7644_v59 = vld [vmem:[#allocation2 + $0x8] sm:$0xff]  ;;  %v2918_v10 = vmul.f32 %v7645_v23, %v8880_v51  ;;  %v2750_v58 = vld [vmem:[%s10878_s5 + $0xd1] sm:$0xff] }
 0x1b5   : > { %2828 = vperm.xlu1 %7343, %v2738_v54   ;;  %2823 = vperm.xlu0 %7342, %v2737_v17   ;;  %2660 = vst.msk [vmem:[#allocation3 + $0x18] sm:$0xf] %vm2655_vm11, %v2567_v20  ;;  %v2916_v19 = vmul.f32 %v7643_v55, %v8988_v63  ;;  %v2917_v62 = vmul.f32 %v7644_v59, %v8814_v47  ;;  %v2749_v41 = vld [vmem:[%s10878_s5 + $0xc9] sm:$0xff]  ;;  %v7646_v17 = vld [vmem:[#allocation2 + $0x20] sm:$0xff]  ;;  %v7647_v53 = vld [vmem:[#allocation2 + $0x18] sm:$0xff]  ;;  %vm5336_vm9 = vcmask 126064  }
 0x1b6   : > { %v1371_v35 = vsel %vm8959_vm12, %v1363_v11, %v1370_v16  ;;  %1883 = vst.msk [vmem:[#allocation3 + $0x28] sm:$0xf] %vm1874_vm7, %v1801_v31  ;;  %v1380_v1 = vsel %vm8959_vm12, %v1372_v44, %v1379_v57  ;;  %v7019_v47 = vpack.c.bf16 %v2918_v10, %v2918_v10  ;;  %v2920_v51 = vmul.f32 %v7646_v17, %v8939_v36  ;;  %v2752_v22 = vld [vmem:[%s10878_s5 + $0xe1] sm:$0xff]  ;;  %v2751_v43 = vld [vmem:[%s10878_s5 + $0xd9] sm:$0xff]  ;;  %v2754_v57 = vld [vmem:[%s10878_s5 + $0xf1] sm:$0xff] }
 0x1b7   : > { %1445 = vst.msk [vmem:[#allocation3 + $0x78] sm:$0xf] %vm1411_vm2, %v1371_v35  ;;  %1446 = vst.msk [vmem:[#allocation3 + $0x7c] sm:$0xf] %vm1411_vm2, %v1380_v1  ;;  %v7017_v63 = vpack.c.bf16 %v2916_v19, %v2916_v19  ;;  %v7018_v54 = vpack.c.bf16 %v2917_v62, %v2917_v62  ;;  %v2919_v25 = vmul.f32 %v7647_v53, %v9012_v38  ;;  %vm3426_vm2 = vcmask 60464  }
 0x1b8   : > { %v2569_v60 = vpop.permute.xlu1 %2568  ;;  %v1807_v45 = vpop.permute.xlu0 %1806  ;;  %v3062_v36 = vshrl.u32 %v7019_v47, 16  ;;  %v7021_v44 = vpack.c.bf16 %v2920_v51, %v2920_v51  ;;  %vm9517_vm6 = vmand %vm3426_vm2, %vm1412_vm10 }
 0x1b9   : > { %2838 = vperm.xlu1 %7343, %v2740_v2   ;;  %2833 = vperm.xlu0 %7342, %v2739_v49   ;;  %2661 = vst.msk [vmem:[#allocation3 + $0x1c] sm:$0xf] %vm2655_vm11, %v2569_v60  ;;  %v3045_v14 = vshrl.u32 %v7017_v63, 16  ;;  %v3053_v20 = vshrl.u32 %v7018_v54, 16  ;;  %v7020_v38 = vpack.c.bf16 %v2919_v25, %v2919_v25  ;;  %v2753_v2 = vld [vmem:[%s10878_s5 + $0xe9] sm:$0xff]  ;;  %v3048_v60 = vshll.u32 %v7017_v63, 16 }
 0x1ba   : > { %1886 = vst.msk [vmem:[#allocation3 + $0x34] sm:$0xf] %vm1874_vm7, %v1807_v45  ;;  %v3056_v45 = vshll.u32 %v7018_v54, 16  ;;  %v3083_v59 = vshll.u32 %v7021_v44, 16  ;;  %v7703_v25 = vmov 4  }
 0x1bb   : > { %v3047_v49 = vrot.slane %v3045_v14, 7  ;;  %v3055_v1 = vrot.slane %v3053_v20, 7  ;;  %v3074_v62 = vshll.u32 %v7020_v38, 16 }
 0x1bc   : > { %v2573_v37 = vpop.permute.xlu1 %2572 }
 0x1bd   : > { %2848 = vperm.xlu1 %7343, %v2742_v18   ;;  %2843 = vperm.xlu0 %7342, %v2741_v12   ;;  %2663 = vst.msk [vmem:[#allocation3 + $0x24] sm:$0xf] %vm2655_vm11, %v2573_v37  ;;  %v3064_v18 = vrot.slane %v3062_v36, 7  ;;  %v3080_v12 = vshrl.u32 %v7021_v44, 16  ;;  %v2755_v37 = vld [vmem:[%s10878_s5 + $0xf9] sm:$0x7f] }
 0x1be   : > { %v3060_v55 = vrot.slane %v3055_v1, 4 }
 0x1bf   : > { %v1803_v15 = vpop.permute.xlu0 %1802 }
 0x1c0   : > { %1884 = vst.msk [vmem:[#allocation3 + $0x2c] sm:$0xf] %vm1874_vm7, %v1803_v15  ;;  %v3050_v15 = vor.u32 %v3048_v60, %v3047_v49 }
 0x1c1   : > { %2858 = vperm.xlu1 %7343, %v2744_v32   ;;  %2853 = vperm.xlu0 %7342, %v2743_v27   ;;  %v3071_v32 = vshrl.u32 %v7020_v38, 16  ;;  %v3065_v27 = vshll.u32 %v7019_v47, 16 }
 0x1c3   : > { %v1813_v30 = vpop.permute.xlu1 %1812  ;;  %v2579_v6 = vpop.permute.xlu0 %2578  ;;  %v3073_v19 = vrot.slane %v3071_v32, 7 }
 0x1c4   : > { %1889 = vst.msk [vmem:[#allocation3 + $0x40] sm:$0xf] %vm1874_vm7, %v1813_v30  ;;  %v3058_v30 = vor.u32 %v3056_v45, %v3055_v1 }
 0x1c5   : > { %2868 = vperm.xlu1 %7343, %v2746_v4   ;;  %2863 = vperm.xlu0 %7342, %v2745_v24   ;;  %2666 = vst.msk [vmem:[#allocation3 + $0x30] sm:$0xf] %vm2655_vm11, %v2579_v6  ;;  %v3067_v6 = vor.u32 %v3065_v27, %v3064_v18  ;;  %v3078_v54 = vrot.slane %v3073_v19, 4 }
 0x1c7   : > { %v2575_v40 = vpop.permute.xlu0 %2574 }
 0x1c8   : > { %2664 = vst.msk [vmem:[#allocation3 + $0x28] sm:$0xf] %vm2655_vm11, %v2575_v40  ;;  %v3069_v40 = vrot.slane %v3064_v18, 4 }
 0x1c9   : > { %2878 = vperm.xlu1 %7343, %v2748_v61   ;;  %2873 = vperm.xlu0 %7342, %v2747_v3   ;;  %v1809_v13 = vpop.permute.xlu1 %1808  ;;  %v9386_v61 = vrot.slane %v3080_v12, 7  ;;  %v3051_v3 = vrot.slane %v3047_v49, 4 }
 0x1ca   : > { %1887 = vst.msk [vmem:[#allocation3 + $0x38] sm:$0xf] %vm1874_vm7, %v1809_v13  ;;  %v3076_v13 = vor.u32 %v3074_v62, %v3073_v19 }
 0x1cb   : > { %v3059_v63 = vsel %vm8959_vm12, %v3051_v3, %v3058_v30 }
 0x1cc   : > { %v3077_v53 = vsel %vm8959_vm12, %v3069_v40, %v3076_v13 }
 0x1cd   : > { %2888 = vperm.xlu1 %7343, %v2750_v58   ;;  %2883 = vperm.xlu0 %7342, %v2749_v41   ;;  %v2577_v11 = vpop.permute.xlu1 %2576  ;;  %v1815_v16 = vpop.permute.xlu0 %1814  ;;  %v3085_v58 = vor.u32 %v3083_v59, %v9386_v61  ;;  %v3068_v41 = vsel %vm8959_vm12, %v3060_v55, %v3067_v6  ;;  %v7648_v6 = vld [vmem:[#allocation2 + $0x30] sm:$0xff] }
 0x1ce   : > { %2665 = vst.msk [vmem:[#allocation3 + $0x2c] sm:$0xf] %vm2655_vm11, %v2577_v11 }
 0x1cf   : > { %1890 = vst.msk [vmem:[#allocation3 + $0x44] sm:$0xf] %vm1874_vm7, %v1815_v16  ;;  %v3086_v51 = vsel %vm8959_vm12, %v3078_v54, %v3085_v58 }
 0x1d1   : > { %2898 = vperm.xlu1 %7343, %v2752_v22   ;;  %2893 = vperm.xlu0 %7342, %v2751_v43   ;;  %v2581_v31 = vpop.permute.xlu1 %2580  ;;  %v1811_v35 = vpop.permute.xlu0 %1810 }
 0x1d2   : > { %2667 = vst.msk [vmem:[#allocation3 + $0x34] sm:$0xf] %vm2655_vm11, %v2581_v31 }
 0x1d3   : > { %1888 = vst.msk [vmem:[#allocation3 + $0x3c] sm:$0xf] %vm1874_vm7, %v1811_v35 }
 0x1d5   : > { %2908 = vperm.xlu1 %7343, %v2754_v57   ;;  %2903 = vperm.xlu0 %7342, %v2753_v2   ;;  %v1821_v4 = vpop.permute.xlu1 %1820  ;;  %v2587_v24 = vpop.permute.xlu0 %2586 }
 0x1d6   : > { %1893 = vst.msk [vmem:[#allocation3 + $0x50] sm:$0xf] %vm1874_vm7, %v1821_v4 }
 0x1d7   : > { %2670 = vst.msk [vmem:[#allocation3 + $0x40] sm:$0xf] %vm2655_vm11, %v2587_v24 }
 0x1d9   : > { %3330 = vrot.lane.b32.xlu1 %v3050_v15, %s7702_s7  ;;  %2913 = vperm.xlu0 %7342, %v2755_v37   ;;  %v1817_v23 = vpop.permute.xlu1 %1816  ;;  %v2583_v10 = vpop.permute.xlu0 %2582 }
 0x1da   : > { %1891 = vst.msk [vmem:[#allocation3 + $0x48] sm:$0xf] %vm1874_vm7, %v1817_v23  ;;  %7344 = vset.pattern.permute.xlu1 %v7703_v25  ;;  %v7649_v23 = vld [vmem:[#allocation2 + $0x28] sm:$0xff] }
 0x1db   : > { %2668 = vst.msk [vmem:[#allocation3 + $0x38] sm:$0xf] %vm2655_vm11, %v2583_v10 }
 0x1dd   : > { %3334 = vrot.lane.b32.xlu1 %v3068_v41, %s7702_s7  ;;  %3332 = vrot.lane.b32.xlu0 %v3059_v63, %s7702_s7  ;;  %v2585_v47 = vpop.permute.xlu1 %2584  ;;  %v1823_v17 = vpop.permute.xlu0 %1822 }
 0x1de   : > { %2669 = vst.msk [vmem:[#allocation3 + $0x3c] sm:$0xf] %vm2655_vm11, %v2585_v47  ;;  %7345 = vset.pattern.permute.xlu0 %v7703_v25 }
 0x1df   : > { %1894 = vst.msk [vmem:[#allocation3 + $0x54] sm:$0xf] %vm1874_vm7, %v1823_v17  ;;  %v7650_v17 = vld [vmem:[#allocation2 + $0x38] sm:$0xff] }
 0x1e1   : > { %3338 = vrot.lane.b32.xlu1 %v3086_v51, %s7702_s7  ;;  %3336 = vrot.lane.b32.xlu0 %v3077_v53, %s7702_s7  ;;  %v2589_v22 = vpop.permute.xlu1 %2588  ;;  %v1819_v43 = vpop.permute.xlu0 %1818 }
 0x1e2   : > { %2671 = vst.msk [vmem:[#allocation3 + $0x44] sm:$0xf] %vm2655_vm11, %v2589_v22  ;;  %v3087_v22 = vrot.slane %v9386_v61, 4 }
 0x1e3   : > { %1892 = vst.msk [vmem:[#allocation3 + $0x4c] sm:$0xf] %vm1874_vm7, %v1819_v43 }
 0x1e5   : > { %v1829_v14 = vpop.permute.xlu1 %1828  ;;  %v2595_v11 = vpop.permute.xlu0 %2594 }
 0x1e6   : > { %1897 = vst.msk [vmem:[#allocation3 + $0x60] sm:$0xf] %vm1874_vm7, %v1829_v14 }
 0x1e7   : > { %2674 = vst.msk [vmem:[#allocation3 + $0x50] sm:$0xf] %vm2655_vm11, %v2595_v11 }
 0x1e9   : > { %v1825_v16 = vpop.permute.xlu1 %1824  ;;  %v2591_v20 = vpop.permute.xlu0 %2590 }
 0x1ea   : > { %1895 = vst.msk [vmem:[#allocation3 + $0x58] sm:$0xf] %vm1874_vm7, %v1825_v16 }
 0x1eb   : > { %2672 = vst.msk [vmem:[#allocation3 + $0x48] sm:$0xf] %vm2655_vm11, %v2591_v20 }
 0x1ed   : > { %v2593_v36 = vpop.permute.xlu1 %2592  ;;  %v1831_v44 = vpop.permute.xlu0 %1830 }
 0x1ee   : > { %2673 = vst.msk [vmem:[#allocation3 + $0x4c] sm:$0xf] %vm2655_vm11, %v2593_v36 }
 0x1ef   : > { %1898 = vst.msk [vmem:[#allocation3 + $0x64] sm:$0xf] %vm1874_vm7, %v1831_v44 }
 0x1f1   : > { %v2597_v38 = vpop.permute.xlu1 %2596  ;;  %v1827_v57 = vpop.permute.xlu0 %1826 }
 0x1f2   : > { %2675 = vst.msk [vmem:[#allocation3 + $0x54] sm:$0xf] %vm2655_vm11, %v2597_v38  ;;  %v7651_v38 = vld [vmem:[#allocation2 + $0x50] sm:$0xff] }
 0x1f3   : > { %1896 = vst.msk [vmem:[#allocation3 + $0x5c] sm:$0xf] %vm1874_vm7, %v1827_v57 }
 0x1f5   : > { %v1837_v2 = vpop.permute.xlu1 %1836  ;;  %v2603_v49 = vpop.permute.xlu0 %2602 }
 0x1f6   : > { %1901 = vst.msk [vmem:[#allocation3 + $0x70] sm:$0xf] %vm1874_vm7, %v1837_v2  ;;  %v7652_v2 = vld [vmem:[#allocation2 + $0x48] sm:$0xff] }
 0x1f7   : > { %2678 = vst.msk [vmem:[#allocation3 + $0x60] sm:$0xf] %vm2655_vm11, %v2603_v49 }
 0x1f9   : > { %v1833_v31 = vpop.permute.xlu1 %1832  ;;  %v2599_v35 = vpop.permute.xlu0 %2598 }
 0x1fa   : > { %1899 = vst.msk [vmem:[#allocation3 + $0x68] sm:$0xf] %vm1874_vm7, %v1833_v31 }
 0x1fb   : > { %2676 = vst.msk [vmem:[#allocation3 + $0x58] sm:$0xf] %vm2655_vm11, %v2599_v35 }
 0x1fd   : > { %v2601_v1 = vpop.permute.xlu1 %2600 }
 0x1fe   : > { %v1839_v18 = vpop.permute.xlu0 %1838  ;;  %2677 = vst.msk [vmem:[#allocation3 + $0x5c] sm:$0xf] %vm2655_vm11, %v2601_v1 }
 0x1ff   : > { %1902 = vst.msk [vmem:[#allocation3 + $0x74] sm:$0xf] %vm1874_vm7, %v1839_v18 }
 0x201   : > { %v2605_v12 = vpop.permute.xlu1 %2604 }
 0x202   : > { %2679 = vst.msk [vmem:[#allocation3 + $0x64] sm:$0xf] %vm2655_vm11, %v2605_v12 }
 0x203   : > { %v1835_v60 = vpop.permute.xlu0 %1834 }
 0x204   : > { %1900 = vst.msk [vmem:[#allocation3 + $0x6c] sm:$0xf] %vm1874_vm7, %v1835_v60 }
 0x207   : > { %v1841_v45 = vpop.permute.xlu1 %1840  ;;  %v2611_v32 = vpop.permute.xlu0 %2610 }
 0x208   : > { %1903 = vst.msk [vmem:[#allocation3 + $0x78] sm:$0xf] %vm1874_vm7, %v1841_v45 }
 0x209   : > { %2682 = vst.msk [vmem:[#allocation3 + $0x70] sm:$0xf] %vm2655_vm11, %v2611_v32 }
 0x20b   : > { %v2609_v27 = vpop.permute.xlu1 %2608  ;;  %v2607_v37 = vpop.permute.xlu0 %2606 }
 0x20c   : > { %2681 = vst.msk [vmem:[#allocation3 + $0x6c] sm:$0xf] %vm2655_vm11, %v2609_v27  ;;  %2680 = vst.msk [vmem:[#allocation3 + $0x68] sm:$0xf] %vm2655_vm11, %v2607_v37 }
 0x20f   : > { %v2613_v15 = vpop.permute.xlu1 %2612  ;;  %v1843_v4 = vpop.permute.xlu0 %1842 }
 0x210   : > { %2683 = vst.msk [vmem:[#allocation3 + $0x74] sm:$0xf] %vm2655_vm11, %v2613_v15 }
 0x211   : > { %1904 = vst.msk [vmem:[#allocation3 + $0x7c] sm:$0xf] %vm1874_vm7, %v1843_v4  ;;  %vm3463_vm7 = vcmask 57392  }
 0x213   : > { %v2615_v24 = vpop.permute.xlu0 %2614 }
 0x214   : > { %2684 = vst.msk [vmem:[#allocation3 + $0x78] sm:$0xf] %vm2655_vm11, %v2615_v24 }
 0x21c   : > { %v2789_v30 = vpop.permute.xlu1 %2788 }
 0x21d   : > { %v2922_v3 = vmul.f32 %v7648_v6, %v2789_v30 }
 0x21f   : > { %v7023_v55 = vpack.c.bf16 %v2922_v3, %v2922_v3 }
 0x220   : > { %v2617_v19 = vpop.permute.xlu1 %2616  ;;  %v2784_v59 = vpop.permute.xlu0 %2783 }
 0x221   : > { %v3098_v62 = vshrl.u32 %v7023_v55, 16  ;;  %2685 = vst.msk [vmem:[#allocation3 + $0x7c] sm:$0xf] %vm2655_vm11, %v2617_v19  ;;  %v2921_v10 = vmul.f32 %v7649_v23, %v2784_v59  ;;  %v3101_v54 = vshll.u32 %v7023_v55, 16  ;;  %vm3464_vm11 = vmand %vm3463_vm7, %vm1110_vm8  ;;  %vm5962_vm7 = vcmask 146432  }
 0x223   : > { %v7022_v40 = vpack.c.bf16 %v2921_v10, %v2921_v10  ;;  %v3100_v58 = vrot.slane %v3098_v62, 7  ;;  %v7653_v10 = vld [vmem:[#allocation2 + $0x58] sm:$0xff] }
 0x224   : > { %v2799_v41 = vpop.permute.xlu1 %2798  ;;  %v2794_v63 = vpop.permute.xlu0 %2793 }
 0x225   : > { %v3089_v13 = vshrl.u32 %v7022_v40, 16  ;;  %v2924_v47 = vmul.f32 %v2799_v41, %v9008_v8  ;;  %v2923_v51 = vmul.f32 %v7650_v17, %v2794_v63  ;;  %v3092_v25 = vshll.u32 %v7022_v40, 16 }
 0x226   : > { %v3103_v43 = vor.u32 %v3101_v54, %v3100_v58  ;;  %v3105_v15 = vrot.slane %v3100_v58, 4 }
 0x227   : > { %v3091_v53 = vrot.slane %v3089_v13, 7  ;;  %v7025_v14 = vpack.c.bf16 %v2924_v47, %v2924_v47  ;;  %v7024_v11 = vpack.c.bf16 %v2923_v51, %v2923_v51 }
 0x228   : > { %v2809_v16 = vpop.permute.xlu1 %2808  ;;  %v2804_v20 = vpop.permute.xlu0 %2803 }
 0x229   : > { %v3094_v36 = vor.u32 %v3092_v25, %v3091_v53  ;;  %v3096_v44 = vrot.slane %v3091_v53, 4  ;;  %v2926_v57 = vmul.f32 %v7651_v38, %v2809_v16  ;;  %v2925_v49 = vmul.f32 %v7652_v2, %v2804_v20  ;;  %v7654_v25 = vld [vmem:[#allocation2 + $0x70] sm:$0xff] }
 0x22a   : > { %v3116_v31 = vshrl.u32 %v7025_v14, 16  ;;  %v3107_v35 = vshrl.u32 %v7024_v11, 16  ;;  %v3119_v60 = vshll.u32 %v7025_v14, 16  ;;  %v3110_v32 = vshll.u32 %v7024_v11, 16 }
 0x22b   : > { %v7027_v8 = vpack.c.bf16 %v2926_v57, %v2926_v57  ;;  %v7026_v1 = vpack.c.bf16 %v2925_v49, %v2925_v49  ;;  %v3095_v18 = vsel %vm8959_vm12, %v3087_v22, %v3094_v36  ;;  %v3104_v61 = vsel %vm8959_vm12, %v3096_v44, %v3103_v43  ;;  %v7655_v43 = vld [vmem:[#allocation2 + $0x68] sm:$0xff] }
 0x22c   : > { %v3118_v12 = vrot.slane %v3116_v31, 7  ;;  %v3109_v45 = vrot.slane %v3107_v35, 7  ;;  %v2819_v27 = vpop.permute.xlu1 %2818  ;;  %3340 = vrot.lane.b32.xlu0 %v3095_v18, %s7702_s7  ;;  %v2814_v37 = vpop.permute.xlu0 %2813  ;;  %3342 = vrot.lane.b32.xlu1 %v3104_v61, %s7702_s7 }
 0x22d   : > { %v3134_v4 = vshrl.u32 %v7027_v8, 16  ;;  %v3137_v24 = vshll.u32 %v7027_v8, 16  ;;  %v3125_v30 = vshrl.u32 %v7026_v1, 16  ;;  %v3128_v19 = vshll.u32 %v7026_v1, 16 }
 0x22e   : > { %v3121_v6 = vor.u32 %v3119_v60, %v3118_v12  ;;  %v3112_v3 = vor.u32 %v3110_v32, %v3109_v45  ;;  %v3114_v55 = vrot.slane %v3109_v45, 4  ;;  %v2928_v23 = vmul.f32 %v2819_v27, %v9059_v28 }
 0x22f   : > { %v3136_v59 = vrot.slane %v3134_v4, 7  ;;  %v3127_v62 = vrot.slane %v3125_v30, 7  ;;  %v2927_v40 = vmul.f32 %v7653_v10, %v2814_v37  ;;  %v3123_v54 = vrot.slane %v3118_v12, 4 }
 0x230   : > { %v2829_v41 = vpop.permute.xlu1 %2828  ;;  %v2824_v63 = vpop.permute.xlu0 %2823  ;;  %v3113_v13 = vsel %vm8959_vm12, %v3105_v15, %v3112_v3  ;;  %v3122_v58 = vsel %vm8959_vm12, %v3114_v55, %v3121_v6  ;;  %v7029_v53 = vpack.c.bf16 %v2928_v23, %v2928_v23 }
 0x231   : > { %v3139_v47 = vor.u32 %v3137_v24, %v3136_v59  ;;  %v3130_v17 = vor.u32 %v3128_v19, %v3127_v62  ;;  %v3132_v51 = vrot.slane %v3127_v62, 4  ;;  %3344 = vrot.lane.b32.xlu0 %v3113_v13, %s7702_s7  ;;  %3346 = vrot.lane.b32.xlu1 %v3122_v58, %s7702_s7  ;;  %v7028_v28 = vpack.c.bf16 %v2927_v40, %v2927_v40 }
 0x232   : > { %v2930_v22 = vmul.f32 %v7654_v25, %v2829_v41  ;;  %v2929_v14 = vmul.f32 %v7655_v43, %v2824_v63  ;;  %v3152_v20 = vshrl.u32 %v7029_v53, 16  ;;  %v3155_v8 = vshll.u32 %v7029_v53, 16 }
 0x233   : > { %v3131_v11 = vsel %vm8959_vm12, %v3123_v54, %v3130_v17  ;;  %v3140_v16 = vsel %vm8959_vm12, %v3132_v51, %v3139_v47  ;;  %v3143_v36 = vshrl.u32 %v7028_v28, 16  ;;  %v3146_v18 = vshll.u32 %v7028_v28, 16 }
 0x234   : > { %v2839_v44 = vpop.permute.xlu1 %2838  ;;  %v2834_v38 = vpop.permute.xlu0 %2833  ;;  %v7031_v57 = vpack.c.bf16 %v2930_v22, %v2930_v22  ;;  %v7030_v2 = vpack.c.bf16 %v2929_v14, %v2929_v14  ;;  %v3154_v35 = vrot.slane %v3152_v20, 7  ;;  %v3141_v61 = vrot.slane %v3136_v59, 4 }
 0x235   : > { %v2932_v49 = vmul.f32 %v2839_v44, %v9118_v52  ;;  %v2931_v31 = vmul.f32 %v2834_v38, %v9064_v46  ;;  %3348 = vrot.lane.b32.xlu0 %v3131_v11, %s7702_s7  ;;  %v3145_v1 = vrot.slane %v3143_v36, 7  ;;  %3350 = vrot.lane.b32.xlu1 %v3140_v16, %s7702_s7 }
 0x236   : > { %v3170_v12 = vshrl.u32 %v7031_v57, 16  ;;  %v3173_v60 = vshll.u32 %v7031_v57, 16  ;;  %v3161_v45 = vshrl.u32 %v7030_v2, 16  ;;  %v3157_v32 = vor.u32 %v3155_v8, %v3154_v35 }
 0x237   : > { %v3148_v27 = vor.u32 %v3146_v18, %v3145_v1  ;;  %v3150_v37 = vrot.slane %v3145_v1, 4  ;;  %v3164_v15 = vshll.u32 %v7030_v2, 16  ;;  %v7033_v30 = vpack.c.bf16 %v2932_v49, %v2932_v49 }
 0x238   : > { %v2849_v4 = vpop.permute.xlu1 %2848  ;;  %v2844_v52 = vpop.permute.xlu0 %2843  ;;  %v3172_v24 = vrot.slane %v3170_v12, 7  ;;  %v3163_v46 = vrot.slane %v3161_v45, 7  ;;  %v7032_v6 = vpack.c.bf16 %v2931_v31, %v2931_v31  ;;  %v3159_v62 = vrot.slane %v3154_v35, 4 }
 0x239   : > { %v2934_v3 = vmul.f32 %v2849_v4, %v9110_v33  ;;  %v2933_v55 = vmul.f32 %v2844_v52, %v9094_v39  ;;  %v3149_v19 = vsel %vm8959_vm12, %v3141_v61, %v3148_v27  ;;  %v3158_v59 = vsel %vm8959_vm12, %v3150_v37, %v3157_v32 }
 0x23a   : > { %v3175_v23 = vor.u32 %v3173_v60, %v3172_v24  ;;  %v3166_v10 = vor.u32 %v3164_v15, %v3163_v46  ;;  %v3168_v40 = vrot.slane %v3163_v46, 4  ;;  %3352 = vrot.lane.b32.xlu0 %v3149_v19, %s7702_s7  ;;  %3354 = vrot.lane.b32.xlu1 %v3158_v59, %s7702_s7  ;;  %v3188_v41 = vshrl.u32 %v7033_v30, 16 }
 0x23b   : > { %v3191_v63 = vshll.u32 %v7033_v30, 16  ;;  %v3179_v13 = vshrl.u32 %v7032_v6, 16  ;;  %v3182_v33 = vshll.u32 %v7032_v6, 16  ;;  %v7035_v54 = vpack.c.bf16 %v2934_v3, %v2934_v3 }
 0x23c   : > { %v2859_v58 = vpop.permute.xlu1 %2858  ;;  %v2854_v39 = vpop.permute.xlu0 %2853  ;;  %v7034_v47 = vpack.c.bf16 %v2933_v55, %v2933_v55  ;;  %v3190_v53 = vrot.slane %v3188_v41, 7  ;;  %v3167_v25 = vsel %vm8959_vm12, %v3159_v62, %v3166_v10  ;;  %v3176_v22 = vsel %vm8959_vm12, %v3168_v40, %v3175_v23 }
 0x23d   : > { %v2936_v17 = vmul.f32 %v2859_v58, %v9197_v56  ;;  %v2935_v51 = vmul.f32 %v2854_v39, %v9149_v48  ;;  %v3181_v28 = vrot.slane %v3179_v13, 7  ;;  %v3177_v43 = vrot.slane %v3172_v24, 4 }
 0x23e   : > { %v3206_v14 = vshrl.u32 %v7035_v54, 16  ;;  %v3209_v11 = vshll.u32 %v7035_v54, 16  ;;  %v3197_v16 = vshrl.u32 %v7034_v47, 16  ;;  %3356 = vrot.lane.b32.xlu0 %v3167_v25, %s7702_s7  ;;  %3358 = vrot.lane.b32.xlu1 %v3176_v22, %s7702_s7  ;;  %v3193_v20 = vor.u32 %v3191_v63, %v3190_v53 }
 0x23f   : > { %v3184_v56 = vor.u32 %v3182_v33, %v3181_v28  ;;  %v3186_v36 = vrot.slane %v3181_v28, 4  ;;  %v3200_v48 = vshll.u32 %v7034_v47, 16  ;;  %v7037_v49 = vpack.c.bf16 %v2936_v17, %v2936_v17 }
 0x240   : > { %v2869_v44 = vpop.permute.xlu1 %2868  ;;  %v2864_v38 = vpop.permute.xlu0 %2863  ;;  %v3208_v57 = vrot.slane %v3206_v14, 7  ;;  %v3199_v2 = vrot.slane %v3197_v16, 7  ;;  %v7036_v31 = vpack.c.bf16 %v2935_v51, %v2935_v51  ;;  %v3195_v61 = vrot.slane %v3190_v53, 4 }
 0x241   : > { %v2938_v35 = vmul.f32 %v2869_v44, %v9186_v26  ;;  %v2937_v8 = vmul.f32 %v2864_v38, %v9182_v29  ;;  %v3185_v1 = vsel %vm8959_vm12, %v3177_v43, %v3184_v56  ;;  %v3194_v18 = vsel %vm8959_vm12, %v3186_v36, %v3193_v20 }
 0x242   : > { %v3211_v12 = vor.u32 %v3209_v11, %v3208_v57  ;;  %v3202_v60 = vor.u32 %v3200_v48, %v3199_v2  ;;  %v3204_v45 = vrot.slane %v3199_v2, 4  ;;  %3360 = vrot.lane.b32.xlu0 %v3185_v1, %s7702_s7  ;;  %3362 = vrot.lane.b32.xlu1 %v3194_v18, %s7702_s7  ;;  %v3224_v32 = vshrl.u32 %v7037_v49, 16 }
 0x243   : > { %v3227_v27 = vshll.u32 %v7037_v49, 16  ;;  %v3215_v37 = vshrl.u32 %v7036_v31, 16  ;;  %v3218_v26 = vshll.u32 %v7036_v31, 16  ;;  %v7039_v4 = vpack.c.bf16 %v2938_v35, %v2938_v35 }
 0x244   : > { %v2879_v15 = vpop.permute.xlu1 %2878  ;;  %v2874_v29 = vpop.permute.xlu0 %2873  ;;  %v7038_v52 = vpack.c.bf16 %v2937_v8, %v2937_v8  ;;  %v3226_v30 = vrot.slane %v3224_v32, 7  ;;  %v3203_v3 = vsel %vm8959_vm12, %v3195_v61, %v3202_v60  ;;  %v3212_v55 = vsel %vm8959_vm12, %v3204_v45, %v3211_v12 }
 0x245   : > { %v2940_v24 = vmul.f32 %v2879_v15, %v9238_v21  ;;  %v2939_v46 = vmul.f32 %v2874_v29, %v9199_v9  ;;  %v3217_v6 = vrot.slane %v3215_v37, 7  ;;  %v3213_v19 = vrot.slane %v3208_v57, 4  ;;  %v9505_v37 = vld [vmem:[#allocation2 + $0xf0] sm:$0xff] }
 0x246   : > { %v3242_v59 = vshrl.u32 %v7039_v4, 16  ;;  %v3245_v62 = vshll.u32 %v7039_v4, 16  ;;  %v3233_v23 = vshrl.u32 %v7038_v52, 16  ;;  %3364 = vrot.lane.b32.xlu0 %v3203_v3, %s7702_s7  ;;  %3366 = vrot.lane.b32.xlu1 %v3212_v55, %s7702_s7  ;;  %v3229_v21 = vor.u32 %v3227_v27, %v3226_v30 }
 0x247   : > { %v3220_v10 = vor.u32 %v3218_v26, %v3217_v6  ;;  %v3222_v9 = vrot.slane %v3217_v6, 4  ;;  %v3236_v40 = vshll.u32 %v7038_v52, 16  ;;  %v7041_v58 = vpack.c.bf16 %v2940_v24, %v2940_v24  ;;  %v9507_v26 = vld [vmem:[#allocation2 + $0xe8] sm:$0xff]  ;;  %v9609_v24 = vld [vmem:[%s10878_s5 + $0x50] sm:$0xff] }
 0x248   : > { %v2889_v41 = vpop.permute.xlu1 %2888  ;;  %v2884_v63 = vpop.permute.xlu0 %2883  ;;  %v3244_v13 = vrot.slane %v3242_v59, 7  ;;  %v3235_v33 = vrot.slane %v3233_v23, 7  ;;  %v7040_v39 = vpack.c.bf16 %v2939_v46, %v2939_v46  ;;  %v3231_v53 = vrot.slane %v3226_v30, 4  ;;  %v3428_v46 = vld [vmem:[#allocation3] sm:$0xf] }
 0x249   : > { %v2942_v54 = vmul.f32 %v2889_v41, %v9231_v42  ;;  %v2941_v47 = vmul.f32 %v2884_v63, %v9218_v50  ;;  %v3221_v17 = vsel %vm8959_vm12, %v3213_v19, %v3220_v10  ;;  %v3230_v51 = vsel %vm8959_vm12, %v3222_v9, %v3229_v21  ;;  %v2723_v10 = vld [vmem:[#allocation2 + $0xf8] sm:$0x7f] }
 0x24a   : > { %v3247_v28 = vor.u32 %v3245_v62, %v3244_v13  ;;  %v3238_v25 = vor.u32 %v3236_v40, %v3235_v33  ;;  %v3240_v22 = vrot.slane %v3235_v33, 4  ;;  %3368 = vrot.lane.b32.xlu0 %v3221_v17, %s7702_s7  ;;  %3370 = vrot.lane.b32.xlu1 %v3230_v51, %s7702_s7  ;;  %v3260_v43 = vshrl.u32 %v7041_v58, 16 }
 0x24b   : > { %v3263_v14 = vshll.u32 %v7041_v58, 16  ;;  %v3251_v11 = vshrl.u32 %v7040_v39, 16  ;;  %v3254_v42 = vshll.u32 %v7040_v39, 16  ;;  %v7043_v20 = vpack.c.bf16 %v2942_v54, %v2942_v54 }
 0x24c   : > { %v2899_v16 = vpop.permute.xlu1 %2898  ;;  %v2894_v50 = vpop.permute.xlu0 %2893  ;;  %v7042_v56 = vpack.c.bf16 %v2941_v47, %v2941_v47  ;;  %v3262_v44 = vrot.slane %v3260_v43, 7  ;;  %v3239_v57 = vsel %vm8959_vm12, %v3231_v53, %v3238_v25  ;;  %v3248_v2 = vsel %vm8959_vm12, %v3240_v22, %v3247_v28 }
 0x24d   : > { %v2944_v36 = vmul.f32 %v2899_v16, %v9262_v0  ;;  %v2943_v48 = vmul.f32 %v2894_v50, %v9240_v34  ;;  %v3253_v38 = vrot.slane %v3251_v11, 7  ;;  %v3249_v49 = vrot.slane %v3244_v13, 4 }
 0x24e   : > { %v3278_v31 = vshrl.u32 %v7043_v20, 16  ;;  %v3281_v35 = vshll.u32 %v7043_v20, 16  ;;  %v3269_v8 = vshrl.u32 %v7042_v56, 16  ;;  %3372 = vrot.lane.b32.xlu0 %v3239_v57, %s7702_s7  ;;  %3374 = vrot.lane.b32.xlu1 %v3248_v2, %s7702_s7  ;;  %v3265_v1 = vor.u32 %v3263_v14, %v3262_v44 }
 0x24f   : > { %v3256_v0 = vor.u32 %v3254_v42, %v3253_v38  ;;  %v3258_v18 = vrot.slane %v3253_v38, 4  ;;  %v3272_v34 = vshll.u32 %v7042_v56, 16  ;;  %v7045_v32 = vpack.c.bf16 %v2944_v36, %v2944_v36 }
 0x250   : > { %v2909_v61 = vpop.permute.xlu1 %2908  ;;  %v2904_v12 = vpop.permute.xlu0 %2903  ;;  %v3280_v60 = vrot.slane %v3278_v31, 7  ;;  %v3271_v45 = vrot.slane %v3269_v8, 7  ;;  %v7044_v27 = vpack.c.bf16 %v2943_v48, %v2943_v48  ;;  %v3267_v30 = vrot.slane %v3262_v44, 4 }
 0x251   : > { %v2946_v15 = vmul.f32 %v2909_v61, %v9505_v37  ;;  %v2945_v29 = vmul.f32 %v2904_v12, %v9507_v26  ;;  %v3257_v4 = vsel %vm8959_vm12, %v3249_v49, %v3256_v0  ;;  %v3266_v52 = vsel %vm8959_vm12, %v3258_v18, %v3265_v1  ;;  %v9552_v12 = vld [vmem:[%s10878_s5] sm:$0xff] }
 0x252   : > { %v3283_v6 = vor.u32 %v3281_v35, %v3280_v60  ;;  %v3274_v3 = vor.u32 %v3272_v34, %v3271_v45  ;;  %v3276_v55 = vrot.slane %v3271_v45, 4  ;;  %3376 = vrot.lane.b32.xlu0 %v3257_v4, %s7702_s7  ;;  %3378 = vrot.lane.b32.xlu1 %v3266_v52, %s7702_s7  ;;  %v3296_v19 = vshrl.u32 %v7045_v32, 16  ;;  %v9561_v45 = vld [vmem:[%s10878_s5 + $0x8] sm:$0xff]  ;;  %v9597_v4 = vld [vmem:[%s10878_s5 + $0x40] sm:$0xff] }
 0x253   : > { %v3299_v59 = vshll.u32 %v7045_v32, 16  ;;  %v3287_v62 = vshrl.u32 %v7044_v27, 16  ;;  %v3290_v23 = vshll.u32 %v7044_v27, 16  ;;  %v7047_v40 = vpack.c.bf16 %v2946_v15, %v2946_v15  ;;  %v9566_v32 = vld [vmem:[%s10878_s5 + $0x10] sm:$0xff]  ;;  %v9578_v27 = vld [vmem:[%s10878_s5 + $0x18] sm:$0xff] }
 0x254   : > { %v3331_v21 = vpop.permute.xlu1 %3330  ;;  %v2914_v9 = vpop.permute.xlu0 %2913  ;;  %v7046_v41 = vpack.c.bf16 %v2945_v29, %v2945_v29  ;;  %v3298_v33 = vrot.slane %v3296_v19, 7  ;;  %v3275_v39 = vsel %vm8959_vm12, %v3267_v30, %v3274_v3  ;;  %v3284_v54 = vsel %vm8959_vm12, %v3276_v55, %v3283_v6  ;;  %v9585_v15 = vld [vmem:[%s10878_s5 + $0x30] sm:$0xff]  ;;  %v9590_v29 = vld [vmem:[%s10878_s5 + $0x28] sm:$0xff]  ;;  %v9602_v52 = vld [vmem:[%s10878_s5 + $0x38] sm:$0xff] }
 0x255   : > { %v3429_v63 = vsel %vm9517_vm6, %v3331_v21, %v3428_v46  ;;  %v2947_v13 = vmul.f32 %v2914_v9, %v2723_v10  ;;  %v3289_v58 = vrot.slane %v3287_v62, 7  ;;  %v3285_v47 = vrot.slane %v3280_v60, 4  ;;  %v9614_v46 = vld [vmem:[%s10878_s5 + $0x48] sm:$0xff]  ;;  %v9621_v30 = vld [vmem:[%s10878_s5 + $0x60] sm:$0xff]  ;;  %v9626_v6 = vld [vmem:[%s10878_s5 + $0x58] sm:$0xff] }
 0x256   : > { %3430 = vst [vmem:[#allocation3] sm:$0xf] %v3429_v63  ;;  %v3314_v17 = vshrl.u32 %v7047_v40, 16  ;;  %v3305_v51 = vshrl.u32 %v7046_v41, 16  ;;  %3380 = vrot.lane.b32.xlu0 %v3275_v39, %s7702_s7  ;;  %3382 = vrot.lane.b32.xlu1 %v3284_v54, %s7702_s7  ;;  %v3301_v53 = vor.u32 %v3299_v59, %v3298_v33  ;;  %v3317_v22 = vshll.u32 %v7047_v40, 16  ;;  %v9633_v3 = vld [vmem:[%s10878_s5 + $0x70] sm:$0xff] }
 0x257   : > { %v3292_v28 = vor.u32 %v3290_v23, %v3289_v58  ;;  %v3294_v25 = vrot.slane %v3289_v58, 4  ;;  %v3308_v16 = vshll.u32 %v7046_v41, 16  ;;  %v7048_v50 = vpack.c.bf16 %v2947_v13, %v2947_v13  ;;  %v9638_v55 = vld [vmem:[%s10878_s5 + $0x68] sm:$0xff]  ;;  %v9645_v19 = vld [vmem:[%s10878_s5 + $0x80] sm:$0xff]  ;;  %v9650_v59 = vld [vmem:[%s10878_s5 + $0x78] sm:$0xff] }
 0x258   : > { %v3335_v43 = vpop.permute.xlu1 %3334  ;;  %v3333_v14 = vpop.permute.xlu0 %3332  ;;  %v3316_v11 = vrot.slane %v3314_v17, 7  ;;  %v3307_v42 = vrot.slane %v3305_v51, 7  ;;  %v3303_v36 = vrot.slane %v3298_v33, 4  ;;  %v9657_v62 = vld [vmem:[%s10878_s5 + $0x90] sm:$0xff]  ;;  %v9662_v23 = vld [vmem:[%s10878_s5 + $0x88] sm:$0xff]  ;;  %v9669_v21 = vld [vmem:[%s10878_s5 + $0xa0] sm:$0xff] }
 0x259   : > { %3433 = vst.msk [vmem:[#allocation3 + $0x8] sm:$0xf] %vm3426_vm2, %v3335_v43  ;;  %3432 = vst.msk [vmem:[#allocation3 + $0x4] sm:$0xf] %vm3426_vm2, %v3333_v14  ;;  %v3293_v20 = vsel %vm8959_vm12, %v3285_v47, %v3292_v28  ;;  %v3302_v56 = vsel %vm8959_vm12, %v3294_v25, %v3301_v53  ;;  %v3323_v57 = vshrl.u32 %v7048_v50, 16  ;;  %v3326_v18 = vshll.u32 %v7048_v50, 16 }
 0x25a   : > { %v3319_v48 = vor.u32 %v3317_v22, %v3316_v11  ;;  %v3310_v44 = vor.u32 %v3308_v16, %v3307_v42  ;;  %v3312_v38 = vrot.slane %v3307_v42, 4  ;;  %3384 = vrot.lane.b32.xlu0 %v3293_v20, %s7702_s7  ;;  %3386 = vrot.lane.b32.xlu1 %v3302_v56, %s7702_s7  ;;  %v3321_v34 = vrot.slane %v3316_v11, 4  ;;  %v9674_v10 = vld [vmem:[%s10878_s5 + $0x98] sm:$0xff]  ;;  %v9681_v9 = vld [vmem:[%s10878_s5 + $0xb0] sm:$0xff] }
 0x25b   : > { %v3325_v0 = vrot.slane %v3323_v57, 7  ;;  %v9686_v40 = vld [vmem:[%s10878_s5 + $0xa8] sm:$0xff]  ;;  %v9693_v41 = vld [vmem:[%s10878_s5 + $0xc0] sm:$0xff]  ;;  %v9698_v63 = vld [vmem:[%s10878_s5 + $0xb8] sm:$0xff]  ;;  %v7704_v22 = vmov 5   ;;  %vm6011_vm6 = vcmask 1040384  }
 0x25c   : > { %v3339_v2 = vpop.permute.xlu1 %3338  ;;  %v3337_v49 = vpop.permute.xlu0 %3336  ;;  %v3311_v35 = vsel %vm8959_vm12, %v3303_v36, %v3310_v44  ;;  %v3320_v8 = vsel %vm8959_vm12, %v3312_v38, %v3319_v48  ;;  %v9705_v13 = vld [vmem:[%s10878_s5 + $0xd0] sm:$0xff]  ;;  %v9710_v33 = vld [vmem:[%s10878_s5 + $0xc8] sm:$0xff]  ;;  %v9717_v58 = vld [vmem:[%s10878_s5 + $0xe0] sm:$0xff] }
 0x25d   : > { %v3465_v31 = vld [vmem:[#allocation3] sm:$0x1]  ;;  %3435 = vst.msk [vmem:[#allocation3 + $0x10] sm:$0xf] %vm3426_vm2, %v3339_v2  ;;  %3434 = vst.msk [vmem:[#allocation3 + $0xc] sm:$0xf] %vm3426_vm2, %v3337_v49  ;;  %v3328_v61 = vor.u32 %v3326_v18, %v3325_v0 }
 0x25e   : > { %v3466_v1 = vsel %vm3464_vm11, 0, %v3465_v31  ;;  %3388 = vrot.lane.b32.xlu0 %v3311_v35, %s7702_s7  ;;  %3390 = vrot.lane.b32.xlu1 %v3320_v8, %s7702_s7  ;;  %v9722_v39 = vld [vmem:[%s10878_s5 + $0xd8] sm:$0xff]  ;;  %v9729_v54 = vld [vmem:[%s10878_s5 + $0xf0] sm:$0xff] }
 0x25f   : > { %3467 = vst [vmem:[#allocation3] sm:$0x1] %v3466_v1  ;;  %v3329_v60 = vsel %vm8959_vm12, %v3321_v34, %v3328_v61  ;;  %v9734_v47 = vld [vmem:[%s10878_s5 + $0xe8] sm:$0xff]  ;;  %v3531_v53 = vld [vmem:[%s10878_s5 + $0xf8] sm:$0xff]  ;;  %vm3916_vm12 = vcmask 76864  }
 0x262   : > { %3392 = vrot.lane.b32.xlu0 %v3329_v60, %s7702_s7  ;;  %3534 = vperm.xlu1 %7344, %v9552_v12   ;;  %v3468_v60 = vld [vmem:[#allocation2] sm:$0xff] }
 0x266   : > { %3539 = vperm.xlu0 %7345, %v9561_v45   ;;  %3544 = vperm.xlu1 %7344, %v9566_v32  }
 0x26a   : > { %3554 = vperm.xlu0 %7345, %v9573_v7   ;;  %3549 = vperm.xlu1 %7344, %v9578_v27  }
 0x26e   : > { %3564 = vperm.xlu0 %7345, %v9585_v15   ;;  %3559 = vperm.xlu1 %7344, %v9590_v29  }
 0x272   : > { %3574 = vperm.xlu0 %7345, %v9597_v4   ;;  %3569 = vperm.xlu1 %7344, %v9602_v52  }
 0x276   : > { %3584 = vperm.xlu0 %7345, %v9609_v24   ;;  %3579 = vperm.xlu1 %7344, %v9614_v46  }
 0x27a   : > { %3594 = vperm.xlu0 %7345, %v9621_v30   ;;  %3589 = vperm.xlu1 %7344, %v9626_v6  }
 0x27e   : > { %3604 = vperm.xlu0 %7345, %v9633_v3   ;;  %3599 = vperm.xlu1 %7344, %v9638_v55  }
 0x282   : > { %3614 = vperm.xlu0 %7345, %v9645_v19   ;;  %3609 = vperm.xlu1 %7344, %v9650_v59  }
 0x286   : > { %3624 = vperm.xlu0 %7345, %v9657_v62   ;;  %3619 = vperm.xlu1 %7344, %v9662_v23  }
 0x28a   : > { %3634 = vperm.xlu0 %7345, %v9669_v21   ;;  %3629 = vperm.xlu1 %7344, %v9674_v10  }
 0x28e   : > { %3644 = vperm.xlu0 %7345, %v9681_v9   ;;  %3639 = vperm.xlu1 %7344, %v9686_v40  }
 0x292   : > { %3654 = vperm.xlu0 %7345, %v9693_v41   ;;  %3649 = vperm.xlu1 %7344, %v9698_v63  }
 0x296   : > { %3664 = vperm.xlu0 %7345, %v9705_v13   ;;  %3659 = vperm.xlu1 %7344, %v9710_v33  }
 0x29a   : > { %3674 = vperm.xlu0 %7345, %v9717_v58   ;;  %3669 = vperm.xlu1 %7344, %v9722_v39  }
 0x29e   : > { %v3341_v17 = vpop.permute.xlu0 %3340  ;;  %v3343_v51 = vpop.permute.xlu1 %3342  ;;  %3684 = vperm.xlu0 %7345, %v9729_v54   ;;  %3679 = vperm.xlu1 %7344, %v9734_v47  }
 0x29f   : > { %3436 = vst.msk [vmem:[#allocation3 + $0x14] sm:$0xf] %vm3426_vm2, %v3341_v17  ;;  %3437 = vst.msk [vmem:[#allocation3 + $0x18] sm:$0xf] %vm3426_vm2, %v3343_v51 }
 0x2a2   : > { %3689 = vperm.xlu1 %7344, %v3531_v53   ;;  %7346 = vset.pattern.permute.xlu0 %v7704_v22 }
 0x2a3   : > { %v3345_v28 = vpop.permute.xlu0 %3344  ;;  %v3347_v25 = vpop.permute.xlu1 %3346 }
 0x2a4   : > { %3438 = vst.msk [vmem:[#allocation3 + $0x1c] sm:$0xf] %vm3426_vm2, %v3345_v28  ;;  %3439 = vst.msk [vmem:[#allocation3 + $0x20] sm:$0xf] %vm3426_vm2, %v3347_v25  ;;  %v3469_v28 = vld [vmem:[#allocation2 + $0x8] sm:$0xff] }
 0x2a6   : > { %7347 = vset.pattern.permute.xlu1 %v7704_v22  ;;  %v3470_v22 = vld [vmem:[#allocation2 + $0x10] sm:$0xff] }
 0x2a7   : > { %v3349_v43 = vpop.permute.xlu0 %3348  ;;  %v3351_v14 = vpop.permute.xlu1 %3350 }
 0x2a8   : > { %3440 = vst.msk [vmem:[#allocation3 + $0x24] sm:$0xf] %vm3426_vm2, %v3349_v43  ;;  %3441 = vst.msk [vmem:[#allocation3 + $0x28] sm:$0xf] %vm3426_vm2, %v3351_v14 }
 0x2ac   : > { %v3353_v11 = vpop.permute.xlu0 %3352  ;;  %v3355_v42 = vpop.permute.xlu1 %3354 }
 0x2ad   : > { %3442 = vst.msk [vmem:[#allocation3 + $0x2c] sm:$0xf] %vm3426_vm2, %v3353_v11  ;;  %3443 = vst.msk [vmem:[#allocation3 + $0x30] sm:$0xf] %vm3426_vm2, %v3355_v42 }
 0x2b0   : > { %v3357_v16 = vpop.permute.xlu0 %3356  ;;  %v3359_v50 = vpop.permute.xlu1 %3358 }
 0x2b1   : > { %3444 = vst.msk [vmem:[#allocation3 + $0x34] sm:$0xf] %vm3426_vm2, %v3357_v16  ;;  %3445 = vst.msk [vmem:[#allocation3 + $0x38] sm:$0xf] %vm3426_vm2, %v3359_v50  ;;  %v3472_v50 = vld [vmem:[#allocation2 + $0x20] sm:$0xff] }
 0x2b4   : > { %v3361_v20 = vpop.permute.xlu0 %3360  ;;  %v3363_v56 = vpop.permute.xlu1 %3362 }
 0x2b5   : > { %3446 = vst.msk [vmem:[#allocation3 + $0x3c] sm:$0xf] %vm3426_vm2, %v3361_v20  ;;  %3447 = vst.msk [vmem:[#allocation3 + $0x40] sm:$0xf] %vm3426_vm2, %v3363_v56  ;;  %v3471_v56 = vld [vmem:[#allocation2 + $0x18] sm:$0xff] }
 0x2b8   : > { %v3365_v36 = vpop.permute.xlu0 %3364  ;;  %v3367_v48 = vpop.permute.xlu1 %3366 }
 0x2b9   : > { %3448 = vst.msk [vmem:[#allocation3 + $0x44] sm:$0xf] %vm3426_vm2, %v3365_v36  ;;  %3449 = vst.msk [vmem:[#allocation3 + $0x48] sm:$0xf] %vm3426_vm2, %v3367_v48 }
 0x2bc   : > { %v3369_v44 = vpop.permute.xlu0 %3368  ;;  %v3371_v38 = vpop.permute.xlu1 %3370 }
 0x2bd   : > { %3450 = vst.msk [vmem:[#allocation3 + $0x4c] sm:$0xf] %vm3426_vm2, %v3369_v44  ;;  %3451 = vst.msk [vmem:[#allocation3 + $0x50] sm:$0xf] %vm3426_vm2, %v3371_v38 }
 0x2c0   : > { %v3373_v57 = vpop.permute.xlu0 %3372  ;;  %v3375_v2 = vpop.permute.xlu1 %3374 }
 0x2c1   : > { %3452 = vst.msk [vmem:[#allocation3 + $0x54] sm:$0xf] %vm3426_vm2, %v3373_v57  ;;  %3453 = vst.msk [vmem:[#allocation3 + $0x58] sm:$0xf] %vm3426_vm2, %v3375_v2  ;;  %v3474_v2 = vld [vmem:[#allocation2 + $0x30] sm:$0xff] }
 0x2c4   : > { %v3377_v49 = vpop.permute.xlu0 %3376  ;;  %v3379_v31 = vpop.permute.xlu1 %3378 }
 0x2c5   : > { %3454 = vst.msk [vmem:[#allocation3 + $0x5c] sm:$0xf] %vm3426_vm2, %v3377_v49  ;;  %3455 = vst.msk [vmem:[#allocation3 + $0x60] sm:$0xf] %vm3426_vm2, %v3379_v31  ;;  %v3473_v31 = vld [vmem:[#allocation2 + $0x28] sm:$0xff] }
 0x2c8   : > { %v3381_v35 = vpop.permute.xlu0 %3380  ;;  %v3383_v8 = vpop.permute.xlu1 %3382 }
 0x2c9   : > { %3456 = vst.msk [vmem:[#allocation3 + $0x64] sm:$0xf] %vm3426_vm2, %v3381_v35  ;;  %3457 = vst.msk [vmem:[#allocation3 + $0x68] sm:$0xf] %vm3426_vm2, %v3383_v8 }
 0x2cc   : > { %v3385_v1 = vpop.permute.xlu0 %3384  ;;  %v3387_v0 = vpop.permute.xlu1 %3386 }
 0x2cd   : > { %3458 = vst.msk [vmem:[#allocation3 + $0x6c] sm:$0xf] %vm3426_vm2, %v3385_v1  ;;  %3459 = vst.msk [vmem:[#allocation3 + $0x70] sm:$0xf] %vm3426_vm2, %v3387_v0 }
 0x2d0   : > { %v3389_v18 = vpop.permute.xlu0 %3388  ;;  %v3391_v34 = vpop.permute.xlu1 %3390 }
 0x2d1   : > { %3460 = vst.msk [vmem:[#allocation3 + $0x74] sm:$0xf] %vm3426_vm2, %v3389_v18  ;;  %3461 = vst.msk [vmem:[#allocation3 + $0x78] sm:$0xf] %vm3426_vm2, %v3391_v34  ;;  %v3476_v34 = vld [vmem:[#allocation2 + $0x40] sm:$0xff] }
 0x2d4   : > { %v3393_v61 = vpop.permute.xlu0 %3392 }
 0x2d5   : > { %3462 = vst.msk [vmem:[#allocation3 + $0x7c] sm:$0xf] %vm3426_vm2, %v3393_v61  ;;  %vm5789_vm2 = vcmask 142464  }
 0x2d6   : > { %vm5820_vm11 = vmand %vm5789_vm2, %vm2249_vm4  ;;  %vm4905_vm4 = vcmask 106592  }
 0x2dd   : > { %v3535_v17 = vpop.permute.xlu1 %3534 }
 0x2de   : > { %v3692_v51 = vmul.f32 %v3535_v17, %v3468_v60  ;;  %v3475_v60 = vld [vmem:[#allocation2 + $0x38] sm:$0xff] }
 0x2e0   : > { %v7049_v53 = vpack.c.bf16 %v3692_v51, %v3692_v51 }
 0x2e1   : > { %v3540_v25 = vpop.permute.xlu0 %3539  ;;  %v3545_v43 = vpop.permute.xlu1 %3544 }
 0x2e2   : > { %v3693_v14 = vmul.f32 %v3540_v25, %v3469_v28  ;;  %v3694_v11 = vmul.f32 %v3545_v43, %v3470_v22  ;;  %3820 = vrot.lane.b32.xlu0 %v7049_v53, %s7705_s14  ;;  %v3478_v22 = vld [vmem:[#allocation2 + $0x50] sm:$0xff] }
 0x2e4   : > { %v7050_v42 = vpack.c.bf16 %v3693_v14, %v3693_v14  ;;  %v7051_v16 = vpack.c.bf16 %v3694_v11, %v3694_v11  ;;  %v3477_v14 = vld [vmem:[#allocation2 + $0x48] sm:$0xff] }
 0x2e5   : > { %v3555_v20 = vpop.permute.xlu0 %3554  ;;  %v3550_v36 = vpop.permute.xlu1 %3549 }
 0x2e6   : > { %v3696_v48 = vmul.f32 %v3555_v20, %v3472_v50  ;;  %v3695_v44 = vmul.f32 %v3550_v36, %v3471_v56  ;;  %3822 = vrot.lane.b32.xlu1 %v7050_v42, %s7705_s14  ;;  %3824 = vrot.lane.b32.xlu0 %v7051_v16, %s7705_s14  ;;  %v3480_v56 = vld [vmem:[#allocation2 + $0x60] sm:$0xff] }
 0x2e8   : > { %v7053_v38 = vpack.c.bf16 %v3696_v48, %v3696_v48  ;;  %v7052_v57 = vpack.c.bf16 %v3695_v44, %v3695_v44  ;;  %v3479_v48 = vld [vmem:[#allocation2 + $0x58] sm:$0xff] }
 0x2e9   : > { %v3565_v49 = vpop.permute.xlu0 %3564  ;;  %v3560_v35 = vpop.permute.xlu1 %3559 }
 0x2ea   : > { %v3698_v8 = vmul.f32 %v3565_v49, %v3474_v2  ;;  %v3697_v1 = vmul.f32 %v3560_v35, %v3473_v31  ;;  %3828 = vrot.lane.b32.xlu0 %v7053_v38, %s7705_s14  ;;  %3826 = vrot.lane.b32.xlu1 %v7052_v57, %s7705_s14  ;;  %v3482_v31 = vld [vmem:[#allocation2 + $0x70] sm:$0xff] }
 0x2ec   : > { %v7055_v0 = vpack.c.bf16 %v3698_v8, %v3698_v8  ;;  %v7054_v18 = vpack.c.bf16 %v3697_v1, %v3697_v1  ;;  %v3481_v8 = vld [vmem:[#allocation2 + $0x68] sm:$0xff] }
 0x2ed   : > { %v3575_v61 = vpop.permute.xlu0 %3574  ;;  %v3570_v17 = vpop.permute.xlu1 %3569 }
 0x2ee   : > { %v3700_v51 = vmul.f32 %v3575_v61, %v3476_v34  ;;  %v3699_v53 = vmul.f32 %v3570_v17, %v3475_v60  ;;  %3832 = vrot.lane.b32.xlu0 %v7055_v0, %s7705_s14  ;;  %3830 = vrot.lane.b32.xlu1 %v7054_v18, %s7705_s14  ;;  %v3484_v60 = vld [vmem:[#allocation2 + $0x80] sm:$0xff] }
 0x2f0   : > { %v7057_v28 = vpack.c.bf16 %v3700_v51, %v3700_v51  ;;  %v7056_v25 = vpack.c.bf16 %v3699_v53, %v3699_v53  ;;  %v3483_v51 = vld [vmem:[#allocation2 + $0x78] sm:$0xff] }
 0x2f1   : > { %v3585_v43 = vpop.permute.xlu0 %3584  ;;  %v3580_v11 = vpop.permute.xlu1 %3579 }
 0x2f2   : > { %v3702_v42 = vmul.f32 %v3585_v43, %v3478_v22  ;;  %v3701_v16 = vmul.f32 %v3580_v11, %v3477_v14  ;;  %3836 = vrot.lane.b32.xlu0 %v7057_v28, %s7705_s14  ;;  %3834 = vrot.lane.b32.xlu1 %v7056_v25, %s7705_s14  ;;  %v3486_v14 = vld [vmem:[#allocation2 + $0x90] sm:$0xff] }
 0x2f4   : > { %v7059_v50 = vpack.c.bf16 %v3702_v42, %v3702_v42  ;;  %v7058_v20 = vpack.c.bf16 %v3701_v16, %v3701_v16  ;;  %v3485_v42 = vld [vmem:[#allocation2 + $0x88] sm:$0xff] }
 0x2f5   : > { %v3595_v36 = vpop.permute.xlu0 %3594  ;;  %v3590_v44 = vpop.permute.xlu1 %3589 }
 0x2f6   : > { %v3704_v38 = vmul.f32 %v3595_v36, %v3480_v56  ;;  %v3703_v57 = vmul.f32 %v3590_v44, %v3479_v48  ;;  %3840 = vrot.lane.b32.xlu0 %v7059_v50, %s7705_s14  ;;  %3838 = vrot.lane.b32.xlu1 %v7058_v20, %s7705_s14  ;;  %v3488_v48 = vld [vmem:[#allocation2 + $0xa0] sm:$0xff] }
 0x2f8   : > { %v7061_v2 = vpack.c.bf16 %v3704_v38, %v3704_v38  ;;  %v7060_v49 = vpack.c.bf16 %v3703_v57, %v3703_v57  ;;  %v3487_v38 = vld [vmem:[#allocation2 + $0x98] sm:$0xff] }
 0x2f9   : > { %v3605_v35 = vpop.permute.xlu0 %3604  ;;  %v3600_v1 = vpop.permute.xlu1 %3599 }
 0x2fa   : > { %v3706_v0 = vmul.f32 %v3605_v35, %v3482_v31  ;;  %v3705_v18 = vmul.f32 %v3600_v1, %v3481_v8  ;;  %3844 = vrot.lane.b32.xlu0 %v7061_v2, %s7705_s14  ;;  %3842 = vrot.lane.b32.xlu1 %v7060_v49, %s7705_s14  ;;  %v3490_v8 = vld [vmem:[#allocation2 + $0xb0] sm:$0xff] }
 0x2fc   : > { %v7063_v34 = vpack.c.bf16 %v3706_v0, %v3706_v0  ;;  %v7062_v61 = vpack.c.bf16 %v3705_v18, %v3705_v18  ;;  %v3489_v0 = vld [vmem:[#allocation2 + $0xa8] sm:$0xff] }
 0x2fd   : > { %v3615_v17 = vpop.permute.xlu0 %3614  ;;  %v3610_v53 = vpop.permute.xlu1 %3609 }
 0x2fe   : > { %v3708_v28 = vmul.f32 %v3615_v17, %v3484_v60  ;;  %v3707_v25 = vmul.f32 %v3610_v53, %v3483_v51  ;;  %3848 = vrot.lane.b32.xlu0 %v7063_v34, %s7705_s14  ;;  %3846 = vrot.lane.b32.xlu1 %v7062_v61, %s7705_s14  ;;  %v3492_v51 = vld [vmem:[#allocation2 + $0xc0] sm:$0xff] }
 0x300   : > { %v7065_v22 = vpack.c.bf16 %v3708_v28, %v3708_v28  ;;  %v7064_v43 = vpack.c.bf16 %v3707_v25, %v3707_v25  ;;  %v3491_v28 = vld [vmem:[#allocation2 + $0xb8] sm:$0xff] }
 0x301   : > { %v3625_v11 = vpop.permute.xlu0 %3624  ;;  %v3620_v16 = vpop.permute.xlu1 %3619 }
 0x302   : > { %v3710_v50 = vmul.f32 %v3625_v11, %v3486_v14  ;;  %v3709_v20 = vmul.f32 %v3620_v16, %v3485_v42  ;;  %3852 = vrot.lane.b32.xlu0 %v7065_v22, %s7705_s14  ;;  %3850 = vrot.lane.b32.xlu1 %v7064_v43, %s7705_s14  ;;  %v3494_v42 = vld [vmem:[#allocation2 + $0xd0] sm:$0xff] }
 0x304   : > { %v7067_v56 = vpack.c.bf16 %v3710_v50, %v3710_v50  ;;  %v7066_v36 = vpack.c.bf16 %v3709_v20, %v3709_v20  ;;  %v3493_v50 = vld [vmem:[#allocation2 + $0xc8] sm:$0xff] }
 0x305   : > { %v3635_v44 = vpop.permute.xlu0 %3634  ;;  %v3630_v57 = vpop.permute.xlu1 %3629 }
 0x306   : > { %v3712_v2 = vmul.f32 %v3635_v44, %v3488_v48  ;;  %v3711_v49 = vmul.f32 %v3630_v57, %v3487_v38  ;;  %3856 = vrot.lane.b32.xlu0 %v7067_v56, %s7705_s14  ;;  %3854 = vrot.lane.b32.xlu1 %v7066_v36, %s7705_s14  ;;  %v3496_v38 = vld [vmem:[#allocation2 + $0xe0] sm:$0xff] }
 0x308   : > { %v7069_v31 = vpack.c.bf16 %v3712_v2, %v3712_v2  ;;  %v7068_v35 = vpack.c.bf16 %v3711_v49, %v3711_v49  ;;  %v3495_v2 = vld [vmem:[#allocation2 + $0xd8] sm:$0xff] }
 0x309   : > { %v3645_v1 = vpop.permute.xlu0 %3644  ;;  %v3640_v18 = vpop.permute.xlu1 %3639 }
 0x30a   : > { %v3714_v34 = vmul.f32 %v3645_v1, %v3490_v8  ;;  %v3713_v61 = vmul.f32 %v3640_v18, %v3489_v0  ;;  %3860 = vrot.lane.b32.xlu0 %v7069_v31, %s7705_s14  ;;  %3858 = vrot.lane.b32.xlu1 %v7068_v35, %s7705_s14 }
 0x30c   : > { %v7071_v60 = vpack.c.bf16 %v3714_v34, %v3714_v34  ;;  %v7070_v17 = vpack.c.bf16 %v3713_v61, %v3713_v61 }
 0x30d   : > { %v3655_v53 = vpop.permute.xlu0 %3654  ;;  %v3650_v25 = vpop.permute.xlu1 %3649 }
 0x30e   : > { %v3716_v22 = vmul.f32 %v3655_v53, %v3492_v51  ;;  %v3715_v43 = vmul.f32 %v3650_v25, %v3491_v28  ;;  %3864 = vrot.lane.b32.xlu0 %v7071_v60, %s7705_s14  ;;  %3862 = vrot.lane.b32.xlu1 %v7070_v17, %s7705_s14  ;;  %v3499_v51 = vld [vmem:[#allocation2 + $0xf8] sm:$0xff] }
 0x310   : > { %v7073_v14 = vpack.c.bf16 %v3716_v22, %v3716_v22  ;;  %v7072_v11 = vpack.c.bf16 %v3715_v43, %v3715_v43  ;;  %v3949_v43 = vld [vmem:[#allocation2 + $0x1] sm:$0xff] }
 0x311   : > { %v3665_v16 = vpop.permute.xlu0 %3664  ;;  %v3660_v20 = vpop.permute.xlu1 %3659 }
 0x312   : > { %v3718_v56 = vmul.f32 %v3665_v16, %v3494_v42  ;;  %v3717_v36 = vmul.f32 %v3660_v20, %v3493_v50  ;;  %3868 = vrot.lane.b32.xlu0 %v7073_v14, %s7705_s14  ;;  %3866 = vrot.lane.b32.xlu1 %v7072_v11, %s7705_s14  ;;  %v3950_v50 = vld [vmem:[#allocation2 + $0x9] sm:$0xff] }
 0x314   : > { %v7075_v48 = vpack.c.bf16 %v3718_v56, %v3718_v56  ;;  %v7074_v44 = vpack.c.bf16 %v3717_v36, %v3717_v36  ;;  %v3952_v36 = vld [vmem:[#allocation2 + $0x19] sm:$0xff] }
 0x315   : > { %v3675_v57 = vpop.permute.xlu0 %3674  ;;  %v3670_v49 = vpop.permute.xlu1 %3669 }
 0x316   : > { %v3720_v31 = vmul.f32 %v3675_v57, %v3496_v38  ;;  %v3719_v35 = vmul.f32 %v3670_v49, %v3495_v2  ;;  %3872 = vrot.lane.b32.xlu0 %v7075_v48, %s7705_s14  ;;  %3870 = vrot.lane.b32.xlu1 %v7074_v44, %s7705_s14  ;;  %v3951_v57 = vld [vmem:[#allocation2 + $0x11] sm:$0xff] }
 0x318   : > { %v7077_v8 = vpack.c.bf16 %v3720_v31, %v3720_v31  ;;  %v7076_v1 = vpack.c.bf16 %v3719_v35, %v3719_v35  ;;  %v3954_v31 = vld [vmem:[#allocation2 + $0x29] sm:$0xff] }
 0x319   : > { %v3685_v0 = vpop.permute.xlu0 %3684  ;;  %v3680_v18 = vpop.permute.xlu1 %3679 }
 0x31a   : > { %v3722_v34 = vmul.f32 %v3685_v0, %v9505_v37  ;;  %v3721_v61 = vmul.f32 %v3680_v18, %v9507_v26  ;;  %3876 = vrot.lane.b32.xlu0 %v7077_v8, %s7705_s14  ;;  %3874 = vrot.lane.b32.xlu1 %v7076_v1, %s7705_s14  ;;  %v3953_v18 = vld [vmem:[#allocation2 + $0x21] sm:$0xff] }
 0x31c   : > { %v7079_v60 = vpack.c.bf16 %v3722_v34, %v3722_v34  ;;  %v7078_v17 = vpack.c.bf16 %v3721_v61, %v3721_v61 }
 0x31d   : > { %v3690_v53 = vpop.permute.xlu1 %3689 }
 0x31e   : > { %v3723_v28 = vmul.f32 %v3690_v53, %v3499_v51  ;;  %3880 = vrot.lane.b32.xlu0 %v7079_v60, %s7705_s14  ;;  %3878 = vrot.lane.b32.xlu1 %v7078_v17, %s7705_s14  ;;  %v3956_v60 = vld [vmem:[#allocation2 + $0x39] sm:$0xff] }
 0x320   : > { %v7080_v25 = vpack.c.bf16 %v3723_v28, %v3723_v28 }
 0x322   : > { %4015 = vperm.xlu0 %7346, %v9552_v12   ;;  %3882 = vrot.lane.b32.xlu1 %v7080_v25, %s7705_s14  ;;  %v3955_v25 = vld [vmem:[#allocation2 + $0x31] sm:$0xff] }
 0x326   : > { %4030 = vperm.xlu0 %7346, %v9578_v27   ;;  %4020 = vperm.xlu1 %7347, %v9561_v45   ;;  %v4012_v45 = vld [vmem:[%s10878_s5 + $0xf8] sm:$0x7f] }
 0x32a   : > { %4040 = vperm.xlu0 %7346, %v9590_v29   ;;  %4025 = vperm.xlu1 %7347, %v9566_v32   ;;  %v7706_v29 = vmov 6  }
 0x32e   : > { %4050 = vperm.xlu0 %7346, %v9602_v52   ;;  %4035 = vperm.xlu1 %7347, %v9573_v7  }
 0x332   : > { %4060 = vperm.xlu0 %7346, %v9614_v46   ;;  %4045 = vperm.xlu1 %7347, %v9585_v15  }
 0x336   : > { %4070 = vperm.xlu0 %7346, %v9626_v6   ;;  %4055 = vperm.xlu1 %7347, %v9597_v4  }
 0x33a   : > { %4080 = vperm.xlu0 %7346, %v9638_v55   ;;  %4065 = vperm.xlu1 %7347, %v9609_v24  }
 0x33e   : > { %4090 = vperm.xlu0 %7346, %v9650_v59   ;;  %4075 = vperm.xlu1 %7347, %v9621_v30  }
 0x342   : > { %4100 = vperm.xlu0 %7346, %v9662_v23   ;;  %4085 = vperm.xlu1 %7347, %v9633_v3  }
 0x346   : > { %4110 = vperm.xlu0 %7346, %v9674_v10   ;;  %4095 = vperm.xlu1 %7347, %v9645_v19  }
 0x34a   : > { %4120 = vperm.xlu0 %7346, %v9686_v40   ;;  %4105 = vperm.xlu1 %7347, %v9657_v62  }
 0x34e   : > { %4130 = vperm.xlu0 %7346, %v9698_v63   ;;  %4115 = vperm.xlu1 %7347, %v9669_v21  }
 0x352   : > { %4140 = vperm.xlu0 %7346, %v9710_v33   ;;  %4125 = vperm.xlu1 %7347, %v9681_v9  }
 0x354   : > { %v3821_v37 = vpop.permute.xlu0 %3820 }
 0x355   : > { %3917 = vst.msk [vmem:[#allocation3] sm:$0xf] %vm3916_vm12, %v3821_v37 }
 0x356   : > { %4150 = vperm.xlu0 %7346, %v9722_v39   ;;  %4135 = vperm.xlu1 %7347, %v9693_v41  }
 0x358   : > { %v3825_v26 = vpop.permute.xlu0 %3824  ;;  %v3823_v12 = vpop.permute.xlu1 %3822 }
 0x359   : > { %3919 = vst.msk [vmem:[#allocation3 + $0x8] sm:$0xf] %vm3916_vm12, %v3825_v26  ;;  %3918 = vst.msk [vmem:[#allocation3 + $0x4] sm:$0xf] %vm3916_vm12, %v3823_v12  ;;  %v3958_v12 = vld [vmem:[#allocation2 + $0x49] sm:$0xff] }
 0x35a   : > { %4160 = vperm.xlu0 %7346, %v9734_v47   ;;  %4145 = vperm.xlu1 %7347, %v9705_v13  }
 0x35c   : > { %v3829_v32 = vpop.permute.xlu0 %3828  ;;  %v3827_v7 = vpop.permute.xlu1 %3826 }
 0x35d   : > { %3921 = vst.msk [vmem:[#allocation3 + $0x10] sm:$0xf] %vm3916_vm12, %v3829_v32  ;;  %3920 = vst.msk [vmem:[#allocation3 + $0xc] sm:$0xf] %vm3916_vm12, %v3827_v7 }
 0x35e   : > { %4170 = vperm.xlu0 %7346, %v4012_v45   ;;  %4155 = vperm.xlu1 %7347, %v9717_v58  }
 0x360   : > { %v3833_v27 = vpop.permute.xlu0 %3832  ;;  %v3831_v15 = vpop.permute.xlu1 %3830 }
 0x361   : > { %3923 = vst.msk [vmem:[#allocation3 + $0x18] sm:$0xf] %vm3916_vm12, %v3833_v27  ;;  %3922 = vst.msk [vmem:[#allocation3 + $0x14] sm:$0xf] %vm3916_vm12, %v3831_v15  ;;  %v3957_v15 = vld [vmem:[#allocation2 + $0x41] sm:$0xff] }
 0x362   : > { %4165 = vperm.xlu1 %7347, %v9729_v54   ;;  %7349 = vset.pattern.permute.xlu0 %v7706_v29 }
 0x364   : > { %v3837_v4 = vpop.permute.xlu0 %3836  ;;  %v3835_v52 = vpop.permute.xlu1 %3834 }
 0x365   : > { %3925 = vst.msk [vmem:[#allocation3 + $0x20] sm:$0xf] %vm3916_vm12, %v3837_v4  ;;  %3924 = vst.msk [vmem:[#allocation3 + $0x1c] sm:$0xf] %vm3916_vm12, %v3835_v52 }
 0x366   : > { %7348 = vset.pattern.permute.xlu1 %v7706_v29 }
 0x368   : > { %v3841_v24 = vpop.permute.xlu0 %3840  ;;  %v3839_v46 = vpop.permute.xlu1 %3838 }
 0x369   : > { %3927 = vst.msk [vmem:[#allocation3 + $0x28] sm:$0xf] %vm3916_vm12, %v3841_v24  ;;  %3926 = vst.msk [vmem:[#allocation3 + $0x24] sm:$0xf] %vm3916_vm12, %v3839_v46  ;;  %v3960_v24 = vld [vmem:[#allocation2 + $0x59] sm:$0xff] }
 0x36c   : > { %v3845_v30 = vpop.permute.xlu0 %3844  ;;  %v3843_v6 = vpop.permute.xlu1 %3842 }
 0x36d   : > { %3929 = vst.msk [vmem:[#allocation3 + $0x30] sm:$0xf] %vm3916_vm12, %v3845_v30  ;;  %3928 = vst.msk [vmem:[#allocation3 + $0x2c] sm:$0xf] %vm3916_vm12, %v3843_v6 }
 0x370   : > { %v3849_v3 = vpop.permute.xlu0 %3848  ;;  %v3847_v55 = vpop.permute.xlu1 %3846 }
 0x371   : > { %3931 = vst.msk [vmem:[#allocation3 + $0x38] sm:$0xf] %vm3916_vm12, %v3849_v3  ;;  %3930 = vst.msk [vmem:[#allocation3 + $0x34] sm:$0xf] %vm3916_vm12, %v3847_v55  ;;  %v3959_v55 = vld [vmem:[#allocation2 + $0x51] sm:$0xff] }
 0x374   : > { %v3853_v19 = vpop.permute.xlu0 %3852  ;;  %v3851_v59 = vpop.permute.xlu1 %3850 }
 0x375   : > { %3933 = vst.msk [vmem:[#allocation3 + $0x40] sm:$0xf] %vm3916_vm12, %v3853_v19  ;;  %3932 = vst.msk [vmem:[#allocation3 + $0x3c] sm:$0xf] %vm3916_vm12, %v3851_v59 }
 0x378   : > { %v3857_v62 = vpop.permute.xlu0 %3856  ;;  %v3855_v23 = vpop.permute.xlu1 %3854 }
 0x379   : > { %3935 = vst.msk [vmem:[#allocation3 + $0x48] sm:$0xf] %vm3916_vm12, %v3857_v62  ;;  %3934 = vst.msk [vmem:[#allocation3 + $0x44] sm:$0xf] %vm3916_vm12, %v3855_v23  ;;  %v3962_v62 = vld [vmem:[#allocation2 + $0x69] sm:$0xff] }
 0x37c   : > { %v3861_v21 = vpop.permute.xlu0 %3860  ;;  %v3859_v10 = vpop.permute.xlu1 %3858 }
 0x37d   : > { %3937 = vst.msk [vmem:[#allocation3 + $0x50] sm:$0xf] %vm3916_vm12, %v3861_v21  ;;  %3936 = vst.msk [vmem:[#allocation3 + $0x4c] sm:$0xf] %vm3916_vm12, %v3859_v10 }
 0x380   : > { %v3865_v9 = vpop.permute.xlu0 %3864  ;;  %v3863_v40 = vpop.permute.xlu1 %3862 }
 0x381   : > { %3939 = vst.msk [vmem:[#allocation3 + $0x58] sm:$0xf] %vm3916_vm12, %v3865_v9  ;;  %3938 = vst.msk [vmem:[#allocation3 + $0x54] sm:$0xf] %vm3916_vm12, %v3863_v40  ;;  %v3961_v40 = vld [vmem:[#allocation2 + $0x61] sm:$0xff] }
 0x384   : > { %v3869_v41 = vpop.permute.xlu0 %3868  ;;  %v3867_v63 = vpop.permute.xlu1 %3866 }
 0x385   : > { %3941 = vst.msk [vmem:[#allocation3 + $0x60] sm:$0xf] %vm3916_vm12, %v3869_v41  ;;  %3940 = vst.msk [vmem:[#allocation3 + $0x5c] sm:$0xf] %vm3916_vm12, %v3867_v63 }
 0x388   : > { %v3873_v13 = vpop.permute.xlu0 %3872  ;;  %v3871_v33 = vpop.permute.xlu1 %3870 }
 0x389   : > { %3943 = vst.msk [vmem:[#allocation3 + $0x68] sm:$0xf] %vm3916_vm12, %v3873_v13  ;;  %3942 = vst.msk [vmem:[#allocation3 + $0x64] sm:$0xf] %vm3916_vm12, %v3871_v33  ;;  %v3964_v13 = vld [vmem:[#allocation2 + $0x79] sm:$0xff] }
 0x38c   : > { %v3877_v58 = vpop.permute.xlu0 %3876  ;;  %v3875_v39 = vpop.permute.xlu1 %3874 }
 0x38d   : > { %3945 = vst.msk [vmem:[#allocation3 + $0x70] sm:$0xf] %vm3916_vm12, %v3877_v58  ;;  %3944 = vst.msk [vmem:[#allocation3 + $0x6c] sm:$0xf] %vm3916_vm12, %v3875_v39 }
 0x390   : > { %v3881_v54 = vpop.permute.xlu0 %3880  ;;  %v3879_v47 = vpop.permute.xlu1 %3878 }
 0x391   : > { %3947 = vst.msk [vmem:[#allocation3 + $0x78] sm:$0xf] %vm3916_vm12, %v3881_v54  ;;  %3946 = vst.msk [vmem:[#allocation3 + $0x74] sm:$0xf] %vm3916_vm12, %v3879_v47  ;;  %v3963_v47 = vld [vmem:[#allocation2 + $0x71] sm:$0xff] }
 0x394   : > { %v3883_v22 = vpop.permute.xlu1 %3882 }
 0x395   : > { %3948 = vst.msk [vmem:[#allocation3 + $0x7c] sm:$0xf] %vm3916_vm12, %v3883_v22  ;;  %vm5824_vm12 = vcmask 142467  }
 0x39d   : > { %v4016_v14 = vpop.permute.xlu0 %4015 }
 0x39e   : > { %v4173_v11 = vmul.f32 %v4016_v14, %v3949_v43  ;;  %v3966_v14 = vld [vmem:[#allocation2 + $0x89] sm:$0xff] }
 0x3a0   : > { %v7081_v42 = vpack.c.bf16 %v4173_v11, %v4173_v11 }
 0x3a1   : > { %v4031_v16 = vpop.permute.xlu0 %4030  ;;  %v4021_v20 = vpop.permute.xlu1 %4020 }
 0x3a2   : > { %v4174_v56 = vmul.f32 %v4021_v20, %v3950_v50  ;;  %4301 = vrot.lane.b32.xlu1 %v7081_v42, %s7707_s17  ;;  %v4176_v48 = vmul.f32 %v4031_v16, %v3952_v36  ;;  %v3965_v20 = vld [vmem:[#allocation2 + $0x81] sm:$0xff] }
 0x3a4   : > { %v7082_v44 = vpack.c.bf16 %v4174_v56, %v4174_v56  ;;  %v7084_v35 = vpack.c.bf16 %v4176_v48, %v4176_v48  ;;  %v3968_v48 = vld [vmem:[#allocation2 + $0x99] sm:$0xff] }
 0x3a5   : > { %v4041_v38 = vpop.permute.xlu0 %4040  ;;  %v4026_v2 = vpop.permute.xlu1 %4025 }
 0x3a6   : > { %v4175_v49 = vmul.f32 %v4026_v2, %v3951_v57  ;;  %4303 = vrot.lane.b32.xlu0 %v7082_v44, %s7707_s17  ;;  %v4178_v8 = vmul.f32 %v4041_v38, %v3954_v31 }
 0x3a8   : > { %v7083_v1 = vpack.c.bf16 %v4175_v49, %v4175_v49  ;;  %v7086_v17 = vpack.c.bf16 %v4178_v8, %v4178_v8  ;;  %v3967_v49 = vld [vmem:[#allocation2 + $0x91] sm:$0xff]  ;;  %v3970_v8 = vld [vmem:[#allocation2 + $0xa9] sm:$0xff] }
 0x3a9   : > { %v4051_v0 = vpop.permute.xlu0 %4050  ;;  %v4036_v34 = vpop.permute.xlu1 %4035 }
 0x3aa   : > { %v4177_v61 = vmul.f32 %v4036_v34, %v3953_v18  ;;  %4307 = vrot.lane.b32.xlu0 %v7084_v35, %s7707_s17  ;;  %4305 = vrot.lane.b32.xlu1 %v7083_v1, %s7707_s17  ;;  %v4180_v51 = vmul.f32 %v4051_v0, %v3956_v60 }
 0x3ac   : > { %v7085_v53 = vpack.c.bf16 %v4177_v61, %v4177_v61  ;;  %v7088_v45 = vpack.c.bf16 %v4180_v51, %v4180_v51  ;;  %v3969_v61 = vld [vmem:[#allocation2 + $0xa1] sm:$0xff]  ;;  %v3972_v51 = vld [vmem:[#allocation2 + $0xb9] sm:$0xff] }
 0x3ad   : > { %v4061_v28 = vpop.permute.xlu0 %4060  ;;  %v4046_v37 = vpop.permute.xlu1 %4045 }
 0x3ae   : > { %v4179_v26 = vmul.f32 %v4046_v37, %v3955_v25  ;;  %4311 = vrot.lane.b32.xlu0 %v7086_v17, %s7707_s17  ;;  %4309 = vrot.lane.b32.xlu1 %v7085_v53, %s7707_s17  ;;  %v4182_v32 = vmul.f32 %v4061_v28, %v3958_v12 }
 0x3b0   : > { %v7087_v7 = vpack.c.bf16 %v4179_v26, %v4179_v26  ;;  %v7090_v46 = vpack.c.bf16 %v4182_v32, %v4182_v32  ;;  %v3971_v26 = vld [vmem:[#allocation2 + $0xb1] sm:$0xff]  ;;  %v3974_v32 = vld [vmem:[#allocation2 + $0xc9] sm:$0xff] }
 0x3b1   : > { %v4071_v27 = vpop.permute.xlu0 %4070  ;;  %v4056_v4 = vpop.permute.xlu1 %4055 }
 0x3b2   : > { %v4181_v52 = vmul.f32 %v4056_v4, %v3957_v15  ;;  %4315 = vrot.lane.b32.xlu0 %v7088_v45, %s7707_s17  ;;  %4313 = vrot.lane.b32.xlu1 %v7087_v7, %s7707_s17  ;;  %v4184_v30 = vmul.f32 %v4071_v27, %v3960_v24 }
 0x3b4   : > { %v7089_v6 = vpack.c.bf16 %v4181_v52, %v4181_v52  ;;  %v7092_v23 = vpack.c.bf16 %v4184_v30, %v4184_v30  ;;  %v3973_v52 = vld [vmem:[#allocation2 + $0xc1] sm:$0xff]  ;;  %v3976_v30 = vld [vmem:[#allocation2 + $0xd9] sm:$0xff] }
 0x3b5   : > { %v4081_v3 = vpop.permute.xlu0 %4080  ;;  %v4066_v19 = vpop.permute.xlu1 %4065 }
 0x3b6   : > { %v4183_v59 = vmul.f32 %v4066_v19, %v3959_v55  ;;  %4319 = vrot.lane.b32.xlu0 %v7090_v46, %s7707_s17  ;;  %4317 = vrot.lane.b32.xlu1 %v7089_v6, %s7707_s17  ;;  %v4186_v21 = vmul.f32 %v4081_v3, %v3962_v62 }
 0x3b8   : > { %v7091_v10 = vpack.c.bf16 %v4183_v59, %v4183_v59  ;;  %v7094_v33 = vpack.c.bf16 %v4186_v21, %v4186_v21  ;;  %v3975_v59 = vld [vmem:[#allocation2 + $0xd1] sm:$0xff]  ;;  %v3978_v21 = vld [vmem:[#allocation2 + $0xe9] sm:$0xff] }
 0x3b9   : > { %v4091_v9 = vpop.permute.xlu0 %4090  ;;  %v4076_v41 = vpop.permute.xlu1 %4075 }
 0x3ba   : > { %v4185_v63 = vmul.f32 %v4076_v41, %v3961_v40  ;;  %4323 = vrot.lane.b32.xlu0 %v7092_v23, %s7707_s17  ;;  %4321 = vrot.lane.b32.xlu1 %v7091_v10, %s7707_s17  ;;  %v4188_v58 = vmul.f32 %v4091_v9, %v3964_v13 }
 0x3bc   : > { %v7093_v39 = vpack.c.bf16 %v4185_v63, %v4185_v63  ;;  %v7096_v11 = vpack.c.bf16 %v4188_v58, %v4188_v58  ;;  %v3977_v63 = vld [vmem:[#allocation2 + $0xe1] sm:$0xff]  ;;  %v3980_v58 = vld [vmem:[#allocation2 + $0xf9] sm:$0x7f] }
 0x3bd   : > { %v4101_v54 = vpop.permute.xlu0 %4100  ;;  %v4086_v22 = vpop.permute.xlu1 %4085 }
 0x3be   : > { %v4187_v43 = vmul.f32 %v4086_v22, %v3963_v47  ;;  %4327 = vrot.lane.b32.xlu0 %v7094_v33, %s7707_s17  ;;  %4325 = vrot.lane.b32.xlu1 %v7093_v39, %s7707_s17  ;;  %v4190_v42 = vmul.f32 %v4101_v54, %v3966_v14  ;;  %v3979_v22 = vld [vmem:[#allocation2 + $0xf1] sm:$0xff] }
 0x3c0   : > { %v7095_v16 = vpack.c.bf16 %v4187_v43, %v4187_v43  ;;  %v7098_v44 = vpack.c.bf16 %v4190_v42, %v4190_v42 }
 0x3c1   : > { %v4111_v50 = vpop.permute.xlu0 %4110  ;;  %v4096_v56 = vpop.permute.xlu1 %4095 }
 0x3c2   : > { %v4189_v36 = vmul.f32 %v4096_v56, %v3965_v20  ;;  %4331 = vrot.lane.b32.xlu0 %v7096_v11, %s7707_s17  ;;  %4329 = vrot.lane.b32.xlu1 %v7095_v16, %s7707_s17  ;;  %v4192_v38 = vmul.f32 %v4111_v50, %v3968_v48  ;;  %v9905_v16 = vld [vmem:[%s10878_s5 + $0x8] sm:$0xff]  ;;  %v9910_v50 = vld [vmem:[%s10878_s5] sm:$0xff] }
 0x3c3   : > { %v9917_v20 = vld [vmem:[%s10878_s5 + $0x20] sm:$0xff]  ;;  %v9922_v56 = vld [vmem:[%s10878_s5 + $0x10] sm:$0xff]  ;;  %v9934_v48 = vld [vmem:[%s10878_s5 + $0x18] sm:$0xff] }
 0x3c4   : > { %v7097_v57 = vpack.c.bf16 %v4189_v36, %v4189_v36  ;;  %v7100_v1 = vpack.c.bf16 %v4192_v38, %v4192_v38  ;;  %v9929_v36 = vld [vmem:[%s10878_s5 + $0x30] sm:$0xff]  ;;  %v9946_v38 = vld [vmem:[%s10878_s5 + $0x28] sm:$0xff] }
 0x3c5   : > { %v4121_v2 = vpop.permute.xlu0 %4120  ;;  %v4106_v31 = vpop.permute.xlu1 %4105 }
 0x3c6   : > { %v4191_v35 = vmul.f32 %v4106_v31, %v3967_v49  ;;  %4335 = vrot.lane.b32.xlu0 %v7098_v44, %s7707_s17  ;;  %4333 = vrot.lane.b32.xlu1 %v7097_v57, %s7707_s17  ;;  %v4194_v0 = vmul.f32 %v4121_v2, %v3970_v8  ;;  %v9941_v44 = vld [vmem:[%s10878_s5 + $0x40] sm:$0xff]  ;;  %v9953_v57 = vld [vmem:[%s10878_s5 + $0x50] sm:$0xff] }
 0x3c7   : > { %v9958_v2 = vld [vmem:[%s10878_s5 + $0x38] sm:$0xff]  ;;  %v9965_v49 = vld [vmem:[%s10878_s5 + $0x60] sm:$0xff]  ;;  %v9970_v31 = vld [vmem:[%s10878_s5 + $0x48] sm:$0xff] }
 0x3c8   : > { %v7099_v18 = vpack.c.bf16 %v4191_v35, %v4191_v35  ;;  %v7102_v53 = vpack.c.bf16 %v4194_v0, %v4194_v0  ;;  %v9977_v35 = vld [vmem:[%s10878_s5 + $0x70] sm:$0xff]  ;;  %v9982_v8 = vld [vmem:[%s10878_s5 + $0x58] sm:$0xff]  ;;  %v9994_v0 = vld [vmem:[%s10878_s5 + $0x68] sm:$0xff] }
 0x3c9   : > { %v4131_v34 = vpop.permute.xlu0 %4130  ;;  %v4116_v60 = vpop.permute.xlu1 %4115 }
 0x3ca   : > { %v4193_v17 = vmul.f32 %v4116_v60, %v3969_v61  ;;  %4339 = vrot.lane.b32.xlu0 %v7100_v1, %s7707_s17  ;;  %4337 = vrot.lane.b32.xlu1 %v7099_v18, %s7707_s17  ;;  %v4196_v28 = vmul.f32 %v4131_v34, %v3972_v51  ;;  %v9989_v1 = vld [vmem:[%s10878_s5 + $0x80] sm:$0xff]  ;;  %v10001_v18 = vld [vmem:[%s10878_s5 + $0x90] sm:$0xff] }
 0x3cb   : > { %v10006_v34 = vld [vmem:[%s10878_s5 + $0x78] sm:$0xff]  ;;  %v10013_v61 = vld [vmem:[%s10878_s5 + $0xa0] sm:$0xff]  ;;  %v10018_v60 = vld [vmem:[%s10878_s5 + $0x88] sm:$0xff] }
 0x3cc   : > { %v7101_v25 = vpack.c.bf16 %v4193_v17, %v4193_v17  ;;  %v7104_v7 = vpack.c.bf16 %v4196_v28, %v4196_v28  ;;  %v10025_v17 = vld [vmem:[%s10878_s5 + $0xb0] sm:$0xff]  ;;  %v10030_v51 = vld [vmem:[%s10878_s5 + $0x98] sm:$0xff]  ;;  %v10042_v28 = vld [vmem:[%s10878_s5 + $0xa8] sm:$0xff] }
 0x3cd   : > { %v4141_v37 = vpop.permute.xlu0 %4140  ;;  %v4126_v12 = vpop.permute.xlu1 %4125 }
 0x3ce   : > { %v4195_v45 = vmul.f32 %v4126_v12, %v3971_v26  ;;  %4343 = vrot.lane.b32.xlu0 %v7102_v53, %s7707_s17  ;;  %4341 = vrot.lane.b32.xlu1 %v7101_v25, %s7707_s17  ;;  %v4198_v27 = vmul.f32 %v4141_v37, %v3974_v32  ;;  %v10037_v53 = vld [vmem:[%s10878_s5 + $0xc0] sm:$0xff]  ;;  %v10049_v25 = vld [vmem:[%s10878_s5 + $0xd0] sm:$0xff] }
 0x3cf   : > { %v10054_v37 = vld [vmem:[%s10878_s5 + $0xb8] sm:$0xff]  ;;  %v10062_v12 = vld [vmem:[%s10878_s5 + $0xe0] sm:$0xff] }
 0x3d0   : > { %v7103_v15 = vpack.c.bf16 %v4195_v45, %v4195_v45  ;;  %v7106_v6 = vpack.c.bf16 %v4198_v27, %v4198_v27  ;;  %v10067_v45 = vld [vmem:[%s10878_s5 + $0xc8] sm:$0xff] }
 0x3d1   : > { %v4151_v4 = vpop.permute.xlu0 %4150  ;;  %v4136_v24 = vpop.permute.xlu1 %4135 }
 0x3d2   : > { %v4197_v46 = vmul.f32 %v4136_v24, %v3973_v52  ;;  %4347 = vrot.lane.b32.xlu0 %v7104_v7, %s7707_s17  ;;  %4345 = vrot.lane.b32.xlu1 %v7103_v15, %s7707_s17  ;;  %v4200_v3 = vmul.f32 %v4151_v4, %v3976_v30  ;;  %v10075_v7 = vld [vmem:[%s10878_s5 + $0xd8] sm:$0xff]  ;;  %v7708_v4 = vmov 7  }
 0x3d4   : > { %v7105_v55 = vpack.c.bf16 %v4197_v46, %v4197_v46  ;;  %v7108_v10 = vpack.c.bf16 %v4200_v3, %v4200_v3 }
 0x3d5   : > { %v4161_v19 = vpop.permute.xlu0 %4160  ;;  %v4146_v62 = vpop.permute.xlu1 %4145 }
 0x3d6   : > { %v4199_v23 = vmul.f32 %v4146_v62, %v3975_v59  ;;  %4351 = vrot.lane.b32.xlu0 %v7106_v6, %s7707_s17  ;;  %4349 = vrot.lane.b32.xlu1 %v7105_v55, %s7707_s17  ;;  %v4202_v9 = vmul.f32 %v4161_v19, %v3978_v21  ;;  %v7709_v59 = vmov 8   ;;  %v10103_v21 = vld [vmem:[%s10878_s5 + $0xe8] sm:$0xff] }
 0x3d8   : > { %v7107_v40 = vpack.c.bf16 %v4199_v23, %v4199_v23  ;;  %v7110_v39 = vpack.c.bf16 %v4202_v9, %v4202_v9 }
 0x3d9   : > { %v4171_v41 = vpop.permute.xlu0 %4170  ;;  %v4156_v13 = vpop.permute.xlu1 %4155 }
 0x3da   : > { %v4201_v33 = vmul.f32 %v4156_v13, %v3977_v63  ;;  %4355 = vrot.lane.b32.xlu0 %v7108_v10, %s7707_s17  ;;  %4353 = vrot.lane.b32.xlu1 %v7107_v40, %s7707_s17  ;;  %v4204_v54 = vmul.f32 %v4171_v41, %v3980_v58 }
 0x3dc   : > { %v7109_v47 = vpack.c.bf16 %v4201_v33, %v4201_v33  ;;  %v7112_v11 = vpack.c.bf16 %v4204_v54, %v4204_v54 }
 0x3dd   : > { %v4166_v43 = vpop.permute.xlu1 %4165 }
 0x3de   : > { %v4203_v14 = vmul.f32 %v4166_v43, %v3979_v22  ;;  %4359 = vrot.lane.b32.xlu0 %v7110_v39, %s7707_s17  ;;  %4357 = vrot.lane.b32.xlu1 %v7109_v47, %s7707_s17 }
 0x3e0   : > { %v7111_v42 = vpack.c.bf16 %v4203_v14, %v4203_v14 }
 0x3e2   : > { %4363 = vrot.lane.b32.xlu0 %v7112_v11, %s7707_s17  ;;  %4361 = vrot.lane.b32.xlu1 %v7111_v42, %s7707_s17 }
 0x3e6   : > { %4508 = vperm.xlu0 %7349, %v9905_v16   ;;  %4503 = vperm.xlu1 %7348, %v9910_v50  }
 0x3ea   : > { %4523 = vperm.xlu0 %7349, %v9917_v20   ;;  %4513 = vperm.xlu1 %7348, %v9922_v56  }
 0x3ee   : > { %4533 = vperm.xlu0 %7349, %v9929_v36   ;;  %4518 = vperm.xlu1 %7348, %v9934_v48  }
 0x3f2   : > { %4543 = vperm.xlu0 %7349, %v9941_v44   ;;  %4528 = vperm.xlu1 %7348, %v9946_v38  }
 0x3f6   : > { %4553 = vperm.xlu0 %7349, %v9953_v57   ;;  %4538 = vperm.xlu1 %7348, %v9958_v2  }
 0x3fa   : > { %4563 = vperm.xlu0 %7349, %v9965_v49   ;;  %4548 = vperm.xlu1 %7348, %v9970_v31  }
 0x3fe   : > { %4573 = vperm.xlu0 %7349, %v9977_v35   ;;  %4558 = vperm.xlu1 %7348, %v9982_v8  }
 0x402   : > { %4583 = vperm.xlu0 %7349, %v9989_v1   ;;  %4568 = vperm.xlu1 %7348, %v9994_v0  }
 0x406   : > { %4593 = vperm.xlu0 %7349, %v10001_v18   ;;  %4578 = vperm.xlu1 %7348, %v10006_v34  }
 0x40a   : > { %4603 = vperm.xlu0 %7349, %v10013_v61   ;;  %4588 = vperm.xlu1 %7348, %v10018_v60  }
 0x40e   : > { %4613 = vperm.xlu0 %7349, %v10025_v17   ;;  %4598 = vperm.xlu1 %7348, %v10030_v51  }
 0x412   : > { %4623 = vperm.xlu0 %7349, %v10037_v53   ;;  %4608 = vperm.xlu1 %7348, %v10042_v28  }
 0x414   : > { %v4302_v26 = vpop.permute.xlu1 %4301 }
 0x415   : > { %4398 = vst.msk [vmem:[#allocation3] sm:$0xf] %vm4397_vm13, %v4302_v26 }
 0x416   : > { %4633 = vperm.xlu0 %7349, %v10049_v25   ;;  %4618 = vperm.xlu1 %7348, %v10054_v37  }
 0x418   : > { %v4304_v32 = vpop.permute.xlu0 %4303 }
 0x419   : > { %4399 = vst.msk [vmem:[#allocation3 + $0x4] sm:$0xf] %vm4397_vm13, %v4304_v32 }
 0x41a   : > { %4643 = vperm.xlu0 %7349, %v10062_v12   ;;  %4628 = vperm.xlu1 %7348, %v10067_v45  }
 0x41c   : > { %v4308_v27 = vpop.permute.xlu0 %4307  ;;  %v4306_v15 = vpop.permute.xlu1 %4305 }
 0x41d   : > { %4401 = vst.msk [vmem:[#allocation3 + $0xc] sm:$0xf] %vm4397_vm13, %v4308_v27  ;;  %4400 = vst.msk [vmem:[#allocation3 + $0x8] sm:$0xf] %vm4397_vm13, %v4306_v15 }
 0x41e   : > { %7351 = vset.pattern.permute.xlu0 %v7708_v4  ;;  %4638 = vperm.xlu1 %7348, %v10075_v7  }
 0x41f   : > { %4983 = vperm.xlu0 %7351, %v9905_v16  }
 0x420   : > { %v4312_v52 = vpop.permute.xlu0 %4311  ;;  %v4310_v24 = vpop.permute.xlu1 %4309 }
 0x421   : > { %4403 = vst.msk [vmem:[#allocation3 + $0x14] sm:$0xf] %vm4397_vm13, %v4312_v52  ;;  %4402 = vst.msk [vmem:[#allocation3 + $0x10] sm:$0xf] %vm4397_vm13, %v4310_v24  ;;  %v4440_v24 = vld [vmem:[#allocation2 + $0x17] sm:$0xff] }
 0x422   : > { %7350 = vset.pattern.permute.xlu1 %v7708_v4 }
 0x423   : > { %5003 = vperm.xlu0 %7351, %v9946_v38   ;;  %4978 = vperm.xlu1 %7350, %v9910_v50  }
 0x424   : > { %v4316_v46 = vpop.permute.xlu0 %4315  ;;  %v4314_v30 = vpop.permute.xlu1 %4313 }
 0x425   : > { %4405 = vst.msk [vmem:[#allocation3 + $0x1c] sm:$0xf] %vm4397_vm13, %v4316_v46  ;;  %4404 = vst.msk [vmem:[#allocation3 + $0x18] sm:$0xf] %vm4397_vm13, %v4314_v30 }
 0x427   : > { %5023 = vperm.xlu0 %7351, %v9970_v31   ;;  %4988 = vperm.xlu1 %7350, %v9922_v56  }
 0x428   : > { %v4320_v6 = vpop.permute.xlu0 %4319  ;;  %v4318_v3 = vpop.permute.xlu1 %4317 }
 0x429   : > { %4407 = vst.msk [vmem:[#allocation3 + $0x24] sm:$0xf] %vm4397_vm13, %v4320_v6  ;;  %4406 = vst.msk [vmem:[#allocation3 + $0x20] sm:$0xf] %vm4397_vm13, %v4318_v3 }
 0x42b   : > { %5043 = vperm.xlu0 %7351, %v9994_v0   ;;  %4993 = vperm.xlu1 %7350, %v9934_v48  }
 0x42c   : > { %v4324_v55 = vpop.permute.xlu0 %4323  ;;  %v4322_v19 = vpop.permute.xlu1 %4321 }
 0x42d   : > { %4409 = vst.msk [vmem:[#allocation3 + $0x2c] sm:$0xf] %vm4397_vm13, %v4324_v55  ;;  %4408 = vst.msk [vmem:[#allocation3 + $0x28] sm:$0xf] %vm4397_vm13, %v4322_v19 }
 0x42f   : > { %5063 = vperm.xlu0 %7351, %v10018_v60   ;;  %7352 = vset.pattern.permute.xlu1 %v7709_v59 }
 0x430   : > { %v4328_v62 = vpop.permute.xlu0 %4327  ;;  %5436 = vperm.xlu1 %7352, %v9905_v16   ;;  %v4326_v23 = vpop.permute.xlu1 %4325  ;;  %v4431_v16 = vld [vmem:[#allocation3 + $0x7c] sm:$0xf] }
 0x431   : > { %4411 = vst.msk [vmem:[#allocation3 + $0x34] sm:$0xf] %vm4397_vm13, %v4328_v62  ;;  %4410 = vst.msk [vmem:[#allocation3 + $0x30] sm:$0xf] %vm4397_vm13, %v4326_v23 }
 0x433   : > { %5123 = vperm.xlu0 %7351, %v10103_v21  }
 0x434   : > { %v4332_v10 = vpop.permute.xlu0 %4331  ;;  %5441 = vperm.xlu1 %7352, %v9922_v56   ;;  %v4330_v9 = vpop.permute.xlu1 %4329 }
 0x435   : > { %4413 = vst.msk [vmem:[#allocation3 + $0x3c] sm:$0xf] %vm4397_vm13, %v4332_v10  ;;  %4412 = vst.msk [vmem:[#allocation3 + $0x38] sm:$0xf] %vm4397_vm13, %v4330_v9 }
 0x437   : > { %5088 = vperm.xlu0 %7351, %v10025_v17  }
 0x438   : > { %v4336_v40 = vpop.permute.xlu0 %4335  ;;  %7353 = vset.pattern.permute.xlu1 %v7708_v4  ;;  %v4334_v41 = vpop.permute.xlu1 %4333 }
 0x439   : > { %4415 = vst.msk [vmem:[#allocation3 + $0x44] sm:$0xf] %vm4397_vm13, %v4336_v40  ;;  %4414 = vst.msk [vmem:[#allocation3 + $0x40] sm:$0xf] %vm4397_vm13, %v4334_v41  ;;  %4998 = vperm.xlu1 %7353, %v9917_v20  }
 0x43b   : > { %5103 = vperm.xlu0 %7351, %v10067_v45  }
 0x43c   : > { %v4340_v63 = vpop.permute.xlu0 %4339  ;;  %v4338_v13 = vpop.permute.xlu1 %4337 }
 0x43d   : > { %4417 = vst.msk [vmem:[#allocation3 + $0x4c] sm:$0xf] %vm4397_vm13, %v4340_v63  ;;  %4416 = vst.msk [vmem:[#allocation3 + $0x48] sm:$0xf] %vm4397_vm13, %v4338_v13  ;;  %5008 = vperm.xlu1 %7353, %v9929_v36  }
 0x43f   : > { %7366 = vset.pattern.permute.xlu0 %v7709_v59 }
 0x440   : > { %5431 = vperm.xlu0 %7366, %v9910_v50   ;;  %v4344_v33 = vpop.permute.xlu0 %4343  ;;  %v4342_v58 = vpop.permute.xlu1 %4341 }
 0x441   : > { %4419 = vst.msk [vmem:[#allocation3 + $0x54] sm:$0xf] %vm4397_vm13, %v4344_v33  ;;  %4418 = vst.msk [vmem:[#allocation3 + $0x50] sm:$0xf] %vm4397_vm13, %v4342_v58  ;;  %5013 = vperm.xlu1 %7353, %v9958_v2  }
 0x444   : > { %5446 = vperm.xlu0 %7366, %v9934_v48   ;;  %v4348_v39 = vpop.permute.xlu0 %4347  ;;  %v4346_v54 = vpop.permute.xlu1 %4345 }
 0x445   : > { %4421 = vst.msk [vmem:[#allocation3 + $0x5c] sm:$0xf] %vm4397_vm13, %v4348_v39  ;;  %4420 = vst.msk [vmem:[#allocation3 + $0x58] sm:$0xf] %vm4397_vm13, %v4346_v54  ;;  %7354 = vset.pattern.permute.xlu1 %v7709_v59  ;;  %v4917_v39 = vld [vmem:[#allocation2 + $0x18] sm:$0xff] }
 0x446   : > { %5456 = vperm.xlu1 %7354, %v9946_v38  }
 0x448   : > { %5451 = vperm.xlu0 %7366, %v9917_v20   ;;  %v4352_v47 = vpop.permute.xlu0 %4351  ;;  %v4350_v22 = vpop.permute.xlu1 %4349 }
 0x449   : > { %4423 = vst.msk [vmem:[#allocation3 + $0x64] sm:$0xf] %vm4397_vm13, %v4352_v47  ;;  %4422 = vst.msk [vmem:[#allocation3 + $0x60] sm:$0xf] %vm4397_vm13, %v4350_v22 }
 0x44a   : > { %5461 = vperm.xlu1 %7354, %v9929_v36  }
 0x44c   : > { %5466 = vperm.xlu0 %7366, %v9958_v2   ;;  %v4356_v43 = vpop.permute.xlu0 %4355  ;;  %v4354_v14 = vpop.permute.xlu1 %4353 }
 0x44d   : > { %4425 = vst.msk [vmem:[#allocation3 + $0x6c] sm:$0xf] %vm4397_vm13, %v4356_v43  ;;  %4424 = vst.msk [vmem:[#allocation3 + $0x68] sm:$0xf] %vm4397_vm13, %v4354_v14 }
 0x44e   : > { %7355 = vset.pattern.permute.xlu1 %v7708_v4 }
 0x44f   : > { %5018 = vperm.xlu1 %7355, %v9941_v44  }
 0x450   : > { %5471 = vperm.xlu0 %7366, %v9941_v44   ;;  %v4360_v11 = vpop.permute.xlu0 %4359  ;;  %v4358_v42 = vpop.permute.xlu1 %4357 }
 0x451   : > { %4427 = vst.msk [vmem:[#allocation3 + $0x74] sm:$0xf] %vm4397_vm13, %v4360_v11  ;;  %4426 = vst.msk [vmem:[#allocation3 + $0x70] sm:$0xf] %vm4397_vm13, %v4358_v42  ;;  %v4919_v42 = vld [vmem:[#allocation2 + $0x28] sm:$0xff] }
 0x453   : > { %5028 = vperm.xlu1 %7355, %v9953_v57  }
 0x454   : > { %5486 = vperm.xlu0 %7366, %v9982_v8   ;;  %v4364_v50 = vpop.permute.xlu0 %4363  ;;  %v4362_v20 = vpop.permute.xlu1 %4361 }
 0x455   : > { %v4432_v56 = vsel %vm4430_vm14, %v4364_v50, %v4431_v16  ;;  %4428 = vst.msk [vmem:[#allocation3 + $0x78] sm:$0xf] %vm4397_vm13, %v4362_v20  ;;  %v4500_v20 = vld [vmem:[%s10878_s5 + $0xf0] sm:$0x1]  ;;  %vm5825_vm13 = vmand %vm5824_vm12, %vm2650_vm3 }
 0x456   : > { %4433 = vst [vmem:[#allocation3 + $0x7c] sm:$0xf] %v4432_v56  ;;  %vm4906_vm14 = vmand %vm4905_vm4, %vm1110_vm8 }
 0x457   : > { %5033 = vperm.xlu1 %7355, %v9982_v8   ;;  %vm4911_vm3 = vmand %vm4874_vm5, %vm1412_vm10 }
 0x458   : > { %5491 = vperm.xlu0 %7366, %v9965_v49  }
 0x45b   : > { %7356 = vset.pattern.permute.xlu1 %v7709_v59 }
 0x45c   : > { %5506 = vperm.xlu0 %7366, %v10006_v34   ;;  %5476 = vperm.xlu1 %7356, %v9970_v31  }
 0x45d   : > { %v4436_v36 = vld [vmem:[#allocation3 + $0x7c] sm:$0x8] }
 0x45e   : > { %v4437_v48 = vsel %vm4435_vm0, 0, %v4436_v36  ;;  %v5370_v36 = vld [vmem:[#allocation2 + $0x19] sm:$0xff] }
 0x45f   : > { %4438 = vst [vmem:[#allocation3 + $0x7c] sm:$0x8] %v4437_v48 }
 0x460   : > { %4915 = vst.msk [vmem:[#allocation3 + $0x7c] sm:$0xf] %vm4874_vm5, %v10938_v5  ;;  %5511 = vperm.xlu0 %7366, %v9989_v1   ;;  %5481 = vperm.xlu1 %7356, %v9953_v57  }
 0x461   : > { %5368 = vst.msk [vmem:[#allocation3 + $0x7c] sm:$0xf] %vm5336_vm9, %v10938_v5  ;;  %v4509_v44 = vpop.permute.xlu0 %4508  ;;  %v10159_v38 = vpop.permute.xlu1 %4503 }
 0x462   : > { %5830 = vst.msk [vmem:[#allocation3 + $0x7c] sm:$0xf] %vm5789_vm2, %v10938_v5  ;;  %v4657_v6 = vmul.f32 %v4509_v44, %v4440_v24 }
 0x464   : > { %5526 = vperm.xlu0 %7366, %v10030_v51   ;;  %7357 = vset.pattern.permute.xlu1 %v7708_v4 }
 0x465   : > { %v10165_v2 = vpop.permute.xlu0 %4523  ;;  %5038 = vperm.xlu1 %7357, %v9965_v49   ;;  %v10168_v31 = vpop.permute.xlu1 %4513  ;;  %v5428_v49 = vld [vmem:[%s10878_s5 + $0xe8] sm:$0x7f] }
 0x468   : > { %5531 = vperm.xlu0 %7366, %v10013_v61  }
 0x469   : > { %v10171_v57 = vpop.permute.xlu0 %4533  ;;  %5048 = vperm.xlu1 %7357, %v9977_v35   ;;  %v4519_v8 = vpop.permute.xlu1 %4518 }
 0x46c   : > { %5546 = vperm.xlu0 %7366, %v10054_v37  }
 0x46d   : > { %v10175_v26 = vpop.permute.xlu0 %4543  ;;  %5053 = vperm.xlu1 %7357, %v10006_v34   ;;  %v10178_v32 = vpop.permute.xlu1 %4528 }
 0x470   : > { %5576 = vperm.xlu0 %7366, %v5428_v49  }
 0x471   : > { %v10183_v27 = vpop.permute.xlu0 %4553  ;;  %7358 = vset.pattern.permute.xlu1 %v7709_v59  ;;  %v10186_v15 = vpop.permute.xlu1 %4538 }
 0x472   : > { %5496 = vperm.xlu1 %7358, %v9994_v0   ;;  %v4442_v0 = vld [vmem:[#allocation2 + $0x27] sm:$0xff] }
 0x473   : > { %v4659_v19 = vmul.f32 %v4519_v8, %v4442_v0 }
 0x474   : > { %5551 = vperm.xlu0 %7366, %v10037_v53  }
 0x475   : > { %v10190_v52 = vpop.permute.xlu0 %4563  ;;  %v10192_v34 = vpop.permute.xlu1 %4548  ;;  %v7116_v10 = vpack.c.bf16 %v4659_v19, %v4659_v19  ;;  %v5372_v19 = vld [vmem:[#allocation2 + $0x29] sm:$0xff] }
 0x476   : > { %5501 = vperm.xlu1 %7358, %v9977_v35   ;;  %v7114_v35 = vpack.c.bf16 %v4657_v6, %v4657_v6 }
 0x478   : > { %5566 = vperm.xlu0 %7366, %v10075_v7  }
 0x479   : > { %v10196_v46 = vpop.permute.xlu0 %4573  ;;  %v10198_v30 = vpop.permute.xlu1 %4558 }
 0x47a   : > { %7359 = vset.pattern.permute.xlu1 %v7708_v4 }
 0x47b   : > { %5058 = vperm.xlu1 %7359, %v9989_v1  }
 0x47c   : > { %5571 = vperm.xlu0 %7366, %v10062_v12  }
 0x47d   : > { %v10203_v3 = vpop.permute.xlu0 %4583  ;;  %v10205_v55 = vpop.permute.xlu1 %4568 }
 0x47f   : > { %5068 = vperm.xlu1 %7359, %v10001_v18  }
 0x480   : > { %4783 = vrot.lane.b32.xlu0 %v7114_v35, %s7710_s20 }
 0x481   : > { %v10209_v62 = vpop.permute.xlu0 %4593  ;;  %v10211_v23 = vpop.permute.xlu1 %4578 }
 0x483   : > { %5073 = vperm.xlu1 %7359, %v10030_v51  }
 0x484   : > { %4787 = vrot.lane.b32.xlu0 %v7116_v10, %s7710_s20 }
 0x485   : > { %v10215_v1 = vpop.permute.xlu0 %4603  ;;  %v10217_v9 = vpop.permute.xlu1 %4588 }
 0x487   : > { %7360 = vset.pattern.permute.xlu1 %v7709_v59 }
 0x488   : > { %5516 = vperm.xlu1 %7360, %v10018_v60  }
 0x489   : > { %v10221_v40 = vpop.permute.xlu0 %4613  ;;  %v10223_v41 = vpop.permute.xlu1 %4598 }
 0x48c   : > { %5521 = vperm.xlu1 %7360, %v10001_v18  }
 0x48d   : > { %v10226_v63 = vpop.permute.xlu0 %4623  ;;  %v10228_v13 = vpop.permute.xlu1 %4608 }
 0x490   : > { %7361 = vset.pattern.permute.xlu1 %v7706_v29 }
 0x491   : > { %v10231_v51 = vpop.permute.xlu0 %4633  ;;  %4648 = vperm.xlu1 %7361, %v10103_v21   ;;  %v10234_v33 = vpop.permute.xlu1 %4618 }
 0x495   : > { %v10236_v58 = vpop.permute.xlu0 %4643  ;;  %7362 = vset.pattern.permute.xlu1 %v7708_v4  ;;  %v10239_v60 = vpop.permute.xlu1 %4628 }
 0x496   : > { %5078 = vperm.xlu1 %7362, %v10013_v61  }
 0x499   : > { %v10242_v18 = vpop.permute.xlu1 %4638 }
 0x49a   : > { %v4984_v54 = vpop.permute.xlu0 %4983  ;;  %5083 = vperm.xlu1 %7362, %v10042_v28  }
 0x49b   : > { %v5127_v47 = vmul.f32 %v4984_v54, %v4917_v39  ;;  %v4444_v39 = vld [vmem:[#allocation2 + $0x37] sm:$0xff] }
 0x49d   : > { %v7145_v22 = vpack.c.bf16 %v5127_v47, %v5127_v47  ;;  %v4661_v47 = vmul.f32 %v10178_v32, %v4444_v39  ;;  %v4441_v32 = vld [vmem:[#allocation2 + $0x1f] sm:$0xff] }
 0x49e   : > { %v10245_v43 = vpop.permute.xlu0 %5003  ;;  %5093 = vperm.xlu1 %7362, %v10054_v37   ;;  %v10248_v21 = vpop.permute.xlu1 %4978 }
 0x49f   : > { %5248 = vrot.lane.b32.xlu0 %v7145_v22, %s7711_s23 }
 0x4a2   : > { %v10251_v14 = vpop.permute.xlu0 %5023  ;;  %7363 = vset.pattern.permute.xlu1 %v7709_v59  ;;  %v10254_v61 = vpop.permute.xlu1 %4988 }
 0x4a3   : > { %5536 = vperm.xlu1 %7363, %v10042_v28  }
 0x4a6   : > { %v10257_v11 = vpop.permute.xlu0 %5043  ;;  %v4994_v16 = vpop.permute.xlu1 %4993 }
 0x4a7   : > { %v5129_v50 = vmul.f32 %v4994_v16, %v4919_v42  ;;  %5541 = vperm.xlu1 %7363, %v10025_v17   ;;  %v4439_v16 = vld [vmem:[#allocation2 + $0xf] sm:$0xff] }
 0x4a9   : > { %v7147_v37 = vpack.c.bf16 %v5129_v50, %v5129_v50 }
 0x4aa   : > { %v10263_v56 = vpop.permute.xlu0 %5063 }
 0x4ab   : > { %7364 = vset.pattern.permute.xlu1 %v7706_v29  ;;  %5252 = vrot.lane.b32.xlu0 %v7147_v37, %s7711_s23  ;;  %v5437_v28 = vpop.permute.xlu1 %5436 }
 0x4ac   : > { %v5580_v48 = vmul.f32 %v5437_v28, %v5370_v36  ;;  %4653 = vperm.xlu1 %7364, %v4500_v20   ;;  %v4658_v36 = vmul.f32 %v10168_v31, %v4441_v32  ;;  %v4921_v28 = vld [vmem:[#allocation2 + $0x38] sm:$0xff] }
 0x4ae   : > { %v7175_v44 = vpack.c.bf16 %v5580_v48, %v5580_v48  ;;  %v10267_v8 = vpop.permute.xlu0 %5123 }
 0x4af   : > { %v10269_v49 = vpop.permute.xlu1 %5441 }
 0x4b0   : > { %7365 = vset.pattern.permute.xlu1 %v7708_v4  ;;  %5701 = vrot.lane.b32.xlu0 %v7175_v44, %s7712_s26 }
 0x4b1   : > { %5098 = vperm.xlu1 %7365, %v10037_v53  }
 0x4b2   : > { %v10274_v17 = vpop.permute.xlu0 %5088 }
 0x4b4   : > { %v10276_v29 = vpop.permute.xlu1 %4998 }
 0x4b5   : > { %5108 = vperm.xlu1 %7365, %v10049_v25  }
 0x4b6   : > { %v10279_v24 = vpop.permute.xlu0 %5103 }
 0x4b8   : > { %v10281_v6 = vpop.permute.xlu1 %5008 }
 0x4b9   : > { %5113 = vperm.xlu1 %7365, %v10075_v7   ;;  %v4656_v7 = vmul.f32 %v10159_v38, %v4439_v16  ;;  %v5131_v38 = vmul.f32 %v10245_v43, %v4921_v28  ;;  %v4918_v43 = vld [vmem:[#allocation2 + $0x20] sm:$0xff] }
 0x4ba   : > { %v5128_v16 = vmul.f32 %v10254_v61, %v4918_v43  ;;  %v7369_v43 = vld [vmem:[%s10876_s3 + $0x8] ss:$0 sps:$4 sm:$0x11]  }
 0x4bb   : > { %v5432_v0 = vpop.permute.xlu0 %5431  ;;  %7310 = vmatprep.subr.msk.bf16.mxu1 %vm6011_vm6, %v7369_v43 }
 0x4bc   : > { %v5014_v35 = vpop.permute.xlu1 %5013  ;;  %v7146_v32 = vpack.c.bf16 %v5128_v16, %v5128_v16 }
 0x4bd   : > { %7367 = vset.pattern.permute.xlu1 %v7709_v59  ;;  %v4446_v59 = vld [vmem:[#allocation2 + $0x47] sm:$0xff] }
 0x4be   : > { %5556 = vperm.xlu1 %7367, %v10067_v45   ;;  %v7118_v45 = vpack.c.bf16 %v4661_v47, %v4661_v47  ;;  %v4663_v37 = vmul.f32 %v10186_v15, %v4446_v59 }
 0x4bf   : > { %v5447_v53 = vpop.permute.xlu0 %5446 }
 0x4c0   : > { %v5582_v10 = vmul.f32 %v5447_v53, %v5372_v19  ;;  %v7120_v48 = vpack.c.bf16 %v4663_v37, %v4663_v37  ;;  %v4923_v53 = vld [vmem:[#allocation2 + $0x48] sm:$0xff] }
 0x4c1   : > { %v5457_v54 = vpop.permute.xlu1 %5456  ;;  %v5133_v39 = vmul.f32 %v5014_v35, %v4923_v53  ;;  %v5369_v35 = vld [vmem:[#allocation2 + $0x11] sm:$0xff] }
 0x4c2   : > { %v7177_v22 = vpack.c.bf16 %v5582_v10, %v5582_v10  ;;  %5561 = vperm.xlu1 %7367, %v10049_v25   ;;  %v7113_v25 = vpack.c.bf16 %v4656_v7, %v4656_v7  ;;  %v7149_v10 = vpack.c.bf16 %v5131_v38, %v5131_v38  ;;  %v5374_v7 = vld [vmem:[#allocation2 + $0x39] sm:$0xff] }
 0x4c3   : > { %v10288_v42 = vpop.permute.xlu0 %5451  ;;  %v7151_v59 = vpack.c.bf16 %v5133_v39, %v5133_v39 }
 0x4c4   : > { %5705 = vrot.lane.b32.xlu0 %v7177_v22, %s7712_s26 }
 0x4c5   : > { %v10292_v50 = vpop.permute.xlu1 %5461 }
 0x4c6   : > { %7368 = vset.pattern.permute.xlu1 %v7708_v4  ;;  %v4916_v4 = vld [vmem:[#allocation2 + $0x10] sm:$0xff] }
 0x4c7   : > { %v5467_v20 = vpop.permute.xlu0 %5466  ;;  %5118 = vperm.xlu1 %7368, %v10062_v12   ;;  %v7115_v12 = vpack.c.bf16 %v4658_v36, %v4658_v36  ;;  %v5126_v15 = vmul.f32 %v10248_v21, %v4916_v4  ;;  %v5376_v36 = vld [vmem:[#allocation2 + $0x49] sm:$0xff]  ;;  %v5371_v4 = vld [vmem:[#allocation2 + $0x21] sm:$0xff] }
 0x4c8   : > { %4791 = vrot.lane.b32.xlu0 %v7118_v45, %s7710_s20  ;;  %v5584_v45 = vmul.f32 %v5457_v54, %v5374_v7  ;;  %v4448_v54 = vld [vmem:[#allocation2 + $0x57] sm:$0xff] }
 0x4c9   : > { %v7144_v22 = vpack.c.bf16 %v5126_v15, %v5126_v15  ;;  %v4665_v53 = vmul.f32 %v10192_v34, %v4448_v54  ;;  %v4920_v54 = vld [vmem:[#allocation2 + $0x30] sm:$0xff] }
 0x4ca   : > { %v10300_v44 = vpop.permute.xlu1 %5018  ;;  %v7179_v28 = vpack.c.bf16 %v5584_v45, %v5584_v45 }
 0x4cb   : > { %v10302_v19 = vpop.permute.xlu0 %5471  ;;  %4781 = vrot.lane.b32.xlu1 %v7113_v25, %s7710_s20  ;;  %v5579_v25 = vmul.f32 %v5432_v0, %v5369_v35  ;;  %v7122_v34 = vpack.c.bf16 %v4665_v53, %v4665_v53  ;;  %v4445_v35 = vld [vmem:[#allocation2 + $0x3f] sm:$0xff]  ;;  %v5130_v53 = vmul.f32 %v10276_v29, %v4920_v54  ;;  %v5373_v29 = vld [vmem:[#allocation2 + $0x31] sm:$0xff] }
 0x4cc   : > { %4795 = vrot.lane.b32.xlu0 %v7120_v48, %s7710_s20  ;;  %v5586_v48 = vmul.f32 %v5467_v20, %v5376_v36  ;;  %v4443_v20 = vld [vmem:[#allocation2 + $0x2f] sm:$0xff]  ;;  %v4662_v36 = vmul.f32 %v10171_v57, %v4445_v35 }
 0x4cd   : > { %v7174_v15 = vpack.c.bf16 %v5579_v25, %v5579_v25 }
 0x4ce   : > { %v10307_v31 = vpop.permute.xlu1 %5028 }
 0x4cf   : > { %v10309_v47 = vpop.permute.xlu0 %5486  ;;  %4785 = vrot.lane.b32.xlu1 %v7115_v12, %s7710_s20  ;;  %v5581_v12 = vmul.f32 %v10269_v49, %v5371_v4  ;;  %v4660_v49 = vmul.f32 %v10165_v2, %v4443_v20  ;;  %v7370_v2 = vld [vmem:[%s10876_s3] sm:$0xff]  }
 0x4d0   : > { %5256 = vrot.lane.b32.xlu0 %v7149_v10, %s7711_s23  ;;  %v7181_v10 = vpack.c.bf16 %v5586_v48, %v5586_v48 }
 0x4d1   : > { %v7176_v16 = vpack.c.bf16 %v5581_v12, %v5581_v12  ;;  %v7117_v25 = vpack.c.bf16 %v4660_v49, %v4660_v49 }
 0x4d2   : > { %v5034_v37 = vpop.permute.xlu1 %5033 }
 0x4d3   : > { %v10314_v21 = vpop.permute.xlu0 %5491  ;;  %5246 = vrot.lane.b32.xlu1 %v7144_v22, %s7711_s23  ;;  %v4450_v22 = vld [vmem:[#allocation2 + $0x67] sm:$0xff] }
 0x4d4   : > { %5260 = vrot.lane.b32.xlu0 %v7151_v59, %s7711_s23  ;;  %v4667_v7 = vmul.f32 %v10198_v30, %v4450_v22  ;;  %v6013_v59 = vsel %vm6011_vm6, %v7369_v43, 0  ;;  %v4925_v30 = vld [vmem:[#allocation2 + $0x58] sm:$0xff]  ;;  %v7148_v22 = vpack.c.bf16 %v5130_v53, %v5130_v53 }
 0x4d5   : > { %7274 = vmatpush3.bf16.msra.mxu1 %v6013_v59  ;;  %v5135_v48 = vmul.f32 %v10251_v14, %v4925_v30  ;;  %v4922_v14 = vld [vmem:[#allocation2 + $0x40] sm:$0xff] }
 0x4d6   : > { %7275 = vmatprep.subr.bf16.mxu1 %v7370_v2 }
 0x4d7   : > { %v10318_v38 = vpop.permute.xlu0 %5506  ;;  %5250 = vrot.lane.b32.xlu1 %v7146_v32, %s7711_s23  ;;  %v5477_v61 = vpop.permute.xlu1 %5476  ;;  %v7153_v57 = vpack.c.bf16 %v5135_v48, %v5135_v48 }
 0x4d8   : > { %5709 = vrot.lane.b32.xlu0 %v7179_v28, %s7712_s26  ;;  %v7124_v28 = vpack.c.bf16 %v4667_v7, %v4667_v7 }
 0x4d9   : > { %7276 = vmatpush3.bf16.msra.mxu1 %v7370_v2  ;;  %v5583_v2 = vmul.f32 %v10288_v42, %v5373_v29 }
 0x4db   : > { %v10324_v39 = vpop.permute.xlu0 %5511  ;;  %5699 = vrot.lane.b32.xlu1 %v7174_v15, %s7712_s26  ;;  %v10327_v0 = vpop.permute.xlu1 %5481  ;;  %v7119_v15 = vpack.c.bf16 %v4662_v36, %v4662_v36  ;;  %v7178_v54 = vpack.c.bf16 %v5583_v2, %v5583_v2 }
 0x4dc   : > { %5713 = vrot.lane.b32.xlu0 %v7181_v10, %s7712_s26  ;;  %v4927_v10 = vld [vmem:[#allocation2 + $0x68] sm:$0xff] }
 0x4dd   : > { %v5137_v20 = vmul.f32 %v5034_v37, %v4927_v10 }
 0x4df   : > { %v10335_v45 = vpop.permute.xlu0 %5526  ;;  %5703 = vrot.lane.b32.xlu1 %v7176_v16, %s7712_s26  ;;  %v5132_v16 = vmul.f32 %v10281_v6, %v4922_v14  ;;  %v7155_v7 = vpack.c.bf16 %v5137_v20, %v5137_v20  ;;  %v5375_v6 = vld [vmem:[#allocation2 + $0x41] sm:$0xff] }
 0x4e0   : > { %4799 = vrot.lane.b32.xlu0 %v7122_v34, %s7710_s20  ;;  %v10339_v32 = vpop.permute.xlu1 %5038  ;;  %v5378_v34 = vld [vmem:[#allocation2 + $0x59] sm:$0xff]  ;;  %v4454_v14 = vld [vmem:[#allocation2 + $0x87] sm:$0xff] }
 0x4e1   : > { %v5588_v59 = vmul.f32 %v5477_v61, %v5378_v34  ;;  %v7150_v37 = vpack.c.bf16 %v5132_v16, %v5132_v16  ;;  %v4452_v61 = vld [vmem:[#allocation2 + $0x77] sm:$0xff]  ;;  %v4671_v34 = vmul.f32 %v10211_v23, %v4454_v14 }
 0x4e2   : > { %v4669_v42 = vmul.f32 %v10205_v55, %v4452_v61  ;;  %v4449_v55 = vld [vmem:[#allocation2 + $0x5f] sm:$0xff]  ;;  %v4924_v23 = vld [vmem:[#allocation2 + $0x50] sm:$0xff]  ;;  %v4931_v61 = vld [vmem:[#allocation2 + $0x88] sm:$0xff] }
 0x4e3   : > { %v10346_v4 = vpop.permute.xlu0 %5531  ;;  %4789 = vrot.lane.b32.xlu1 %v7117_v25, %s7710_s20  ;;  %v5380_v25 = vld [vmem:[#allocation2 + $0x69] sm:$0xff]  ;;  %v4666_v29 = vmul.f32 %v10183_v27, %v4449_v55  ;;  %v7128_v2 = vpack.c.bf16 %v4671_v34, %v4671_v34 }
 0x4e4   : > { %4803 = vrot.lane.b32.xlu0 %v7124_v28, %s7710_s20  ;;  %v10350_v12 = vpop.permute.xlu1 %5048  ;;  %v5590_v30 = vmul.f32 %v10309_v47, %v5380_v25  ;;  %v7183_v28 = vpack.c.bf16 %v5588_v59, %v5588_v59  ;;  %v4447_v47 = vld [vmem:[#allocation2 + $0x4f] sm:$0xff]  ;;  %v7126_v16 = vpack.c.bf16 %v4669_v42, %v4669_v42 }
 0x4e5   : > { %v4664_v20 = vmul.f32 %v10175_v26, %v4447_v47  ;;  %v5384_v55 = vld [vmem:[#allocation2 + $0x89] sm:$0xff] }
 0x4e6   : > { %v7185_v10 = vpack.c.bf16 %v5590_v30, %v5590_v30 }
 0x4e7   : > { %v10353_v43 = vpop.permute.xlu0 %5546  ;;  %4793 = vrot.lane.b32.xlu1 %v7119_v15, %s7710_s20  ;;  %v5585_v15 = vmul.f32 %v10292_v50, %v5375_v6  ;;  %v7121_v59 = vpack.c.bf16 %v4664_v20, %v4664_v20  ;;  %v5134_v6 = vmul.f32 %v10300_v44, %v4924_v23  ;;  %v5382_v20 = vld [vmem:[#allocation2 + $0x79] sm:$0xff] }
 0x4e8   : > { %5264 = vrot.lane.b32.xlu0 %v7153_v57, %s7711_s23  ;;  %v5054_v49 = vpop.permute.xlu1 %5053 }
 0x4e9   : > { %v5141_v27 = vmul.f32 %v5054_v49, %v4931_v61 }
 0x4eb   : > { %v10358_v35 = vpop.permute.xlu0 %5576  ;;  %5254 = vrot.lane.b32.xlu1 %v7148_v22, %s7711_s23  ;;  %v7180_v22 = vpack.c.bf16 %v5585_v15, %v5585_v15  ;;  %v7159_v14 = vpack.c.bf16 %v5141_v27, %v5141_v27 }
 0x4ec   : > { %5268 = vrot.lane.b32.xlu0 %v7155_v7, %s7711_s23 }
 0x4ed   : > { %v5497_v36 = vpop.permute.xlu1 %5496 }
 0x4ef   : > { %v10364_v48 = vpop.permute.xlu0 %5551  ;;  %5258 = vrot.lane.b32.xlu1 %v7150_v37, %s7711_s23  ;;  %v4929_v37 = vld [vmem:[#allocation2 + $0x78] sm:$0xff] }
 0x4f0   : > { %5717 = vrot.lane.b32.xlu0 %v7183_v28, %s7712_s26  ;;  %v5139_v26 = vmul.f32 %v10257_v11, %v4929_v37  ;;  %v7123_v28 = vpack.c.bf16 %v4666_v29, %v4666_v29  ;;  %v4926_v11 = vld [vmem:[#allocation2 + $0x60] sm:$0xff] }
 0x4f1   : > { %v10369_v53 = vpop.permute.xlu1 %5501  ;;  %v5136_v47 = vmul.f32 %v10307_v31, %v4926_v11  ;;  %v5379_v31 = vld [vmem:[#allocation2 + $0x61] sm:$0xff]  ;;  %v4933_v11 = vld [vmem:[#allocation2 + $0x98] sm:$0xff] }
 0x4f3   : > { %v10372_v57 = vpop.permute.xlu0 %5566  ;;  %5707 = vrot.lane.b32.xlu1 %v7178_v54, %s7712_s26  ;;  %v7157_v54 = vpack.c.bf16 %v5139_v26, %v5139_v26  ;;  %v7154_v34 = vpack.c.bf16 %v5136_v47, %v5136_v47  ;;  %v5589_v26 = vmul.f32 %v10327_v0, %v5379_v31  ;;  %v4453_v0 = vld [vmem:[#allocation2 + $0x7f] sm:$0xff] }
 0x4f4   : > { %5721 = vrot.lane.b32.xlu0 %v7185_v10, %s7712_s26  ;;  %v7152_v10 = vpack.c.bf16 %v5134_v6, %v5134_v6  ;;  %v4458_v6 = vld [vmem:[#allocation2 + $0xa7] sm:$0xff] }
 0x4f5   : > { %v7184_v61 = vpack.c.bf16 %v5589_v26, %v5589_v26  ;;  %v4675_v27 = vmul.f32 %v10223_v41, %v4458_v6  ;;  %v4928_v41 = vld [vmem:[#allocation2 + $0x70] sm:$0xff]  ;;  %v5383_v6 = vld [vmem:[#allocation2 + $0x81] sm:$0xff] }
 0x4f6   : > { %v10378_v50 = vpop.permute.xlu1 %5058  ;;  %v5381_v26 = vld [vmem:[#allocation2 + $0x71] sm:$0xff] }
 0x4f7   : > { %v10380_v7 = vpop.permute.xlu0 %5571  ;;  %5711 = vrot.lane.b32.xlu1 %v7180_v22, %s7712_s26  ;;  %v5592_v22 = vmul.f32 %v5497_v36, %v5382_v20  ;;  %v4456_v36 = vld [vmem:[#allocation2 + $0x97] sm:$0xff]  ;;  %v7132_v20 = vpack.c.bf16 %v4675_v27, %v4675_v27 }
 0x4f8   : > { %4807 = vrot.lane.b32.xlu0 %v7126_v16, %s7710_s20  ;;  %v5377_v16 = vld [vmem:[#allocation2 + $0x51] sm:$0xff] }
 0x4f9   : > { %v5587_v49 = vmul.f32 %v10302_v19, %v5377_v16  ;;  %v7187_v29 = vpack.c.bf16 %v5592_v22, %v5592_v22  ;;  %v4451_v19 = vld [vmem:[#allocation2 + $0x6f] sm:$0xff]  ;;  %v5138_v22 = vmul.f32 %v10339_v32, %v4928_v41  ;;  %v5591_v32 = vmul.f32 %v10314_v21, %v5381_v26 }
 0x4fa   : > { %v10386_v25 = vpop.permute.xlu1 %5068  ;;  %v4935_v16 = vld [vmem:[#allocation2 + $0xa8] sm:$0xff] }
 0x4fb   : > { %v4784_v30 = vpop.permute.xlu0 %4783  ;;  %4797 = vrot.lane.b32.xlu1 %v7121_v59, %s7710_s20  ;;  %v5594_v59 = vmul.f32 %v10318_v38, %v5384_v55  ;;  %v4930_v55 = vld [vmem:[#allocation2 + $0x80] sm:$0xff]  ;;  %v4939_v26 = vld [vmem:[#allocation2 + $0xc8] sm:$0xff] }
 0x4fc   : > { %4876 = vst.msk [vmem:[#allocation3 + $0x4] sm:$0xf] %vm4874_vm5, %v4784_v30  ;;  %4811 = vrot.lane.b32.xlu0 %v7128_v2, %s7710_s20  ;;  %v7182_v2 = vpack.c.bf16 %v5587_v49, %v5587_v49  ;;  %v4673_v30 = vmul.f32 %v10217_v9, %v4456_v36 }
 0x4fd   : > { %v7189_v23 = vpack.c.bf16 %v5594_v59, %v5594_v59  ;;  %v5140_v59 = vmul.f32 %v10350_v12, %v4930_v55 }
 0x4fe   : > { %v5074_v15 = vpop.permute.xlu1 %5073 }
 0x4ff   : > { %v4788_v42 = vpop.permute.xlu0 %4787  ;;  %4801 = vrot.lane.b32.xlu1 %v7123_v28, %s7710_s20  ;;  %v4668_v28 = vmul.f32 %v10190_v52, %v4451_v19  ;;  %v5143_v52 = vmul.f32 %v10263_v56, %v4933_v11  ;;  %v7156_v56 = vpack.c.bf16 %v5138_v22, %v5138_v22  ;;  %v4945_v11 = vld [vmem:[#allocation2 + $0xf8] sm:$0xff]  ;;  %v4462_v22 = vld [vmem:[#allocation2 + $0xc7] sm:$0xff] }
 0x500   : > { %4878 = vst.msk [vmem:[#allocation3 + $0xc] sm:$0xf] %vm4874_vm5, %v4788_v42  ;;  %5272 = vrot.lane.b32.xlu0 %v7157_v54, %s7711_s23  ;;  %v7130_v54 = vpack.c.bf16 %v4673_v30, %v4673_v30  ;;  %v4670_v42 = vmul.f32 %v10196_v46, %v4453_v0  ;;  %v7158_v30 = vpack.c.bf16 %v5140_v59, %v5140_v59 }
 0x501   : > { %v7125_v9 = vpack.c.bf16 %v4668_v28, %v4668_v28  ;;  %v7161_v46 = vpack.c.bf16 %v5143_v52, %v5143_v52  ;;  %v4457_v52 = vld [vmem:[#allocation2 + $0x9f] sm:$0xff] }
 0x503   : > { %5262 = vrot.lane.b32.xlu1 %v7152_v10, %s7711_s23  ;;  %v5517_v44 = vpop.permute.xlu1 %5516 }
 0x504   : > { %5276 = vrot.lane.b32.xlu0 %v7159_v14, %s7711_s23  ;;  %v7127_v14 = vpack.c.bf16 %v4670_v42, %v4670_v42 }
 0x507   : > { %5266 = vrot.lane.b32.xlu1 %v7154_v34, %s7711_s23  ;;  %v10401_v37 = vpop.permute.xlu1 %5521  ;;  %v5145_v34 = vmul.f32 %v5074_v15, %v4935_v16  ;;  %v5388_v15 = vld [vmem:[#allocation2 + $0xa9] sm:$0xff]  ;;  %v4679_v16 = vmul.f32 %v10234_v33, %v4462_v22 }
 0x508   : > { %5725 = vrot.lane.b32.xlu0 %v7187_v29, %s7712_s26  ;;  %v5386_v29 = vld [vmem:[#allocation2 + $0x99] sm:$0xff]  ;;  %v5598_v19 = vmul.f32 %v10335_v45, %v5388_v15  ;;  %v4455_v45 = vld [vmem:[#allocation2 + $0x8f] sm:$0xff] }
 0x509   : > { %v7163_v36 = vpack.c.bf16 %v5145_v34, %v5145_v34  ;;  %v4672_v42 = vmul.f32 %v10203_v3, %v4455_v45  ;;  %v4932_v3 = vld [vmem:[#allocation2 + $0x90] sm:$0xff]  ;;  %v7136_v59 = vpack.c.bf16 %v4679_v16, %v4679_v16 }
 0x50a   : > { %v7193_v27 = vpack.c.bf16 %v5598_v19, %v5598_v19  ;;  %v5142_v55 = vmul.f32 %v10378_v50, %v4932_v3  ;;  %v5390_v19 = vld [vmem:[#allocation2 + $0xb9] sm:$0xff]  ;;  %v4463_v45 = vld [vmem:[#allocation2 + $0xcf] sm:$0xff] }
 0x50b   : > { %5715 = vrot.lane.b32.xlu1 %v7182_v2, %s7712_s26  ;;  %v5596_v2 = vmul.f32 %v5517_v44, %v5386_v29  ;;  %v4459_v44 = vld [vmem:[#allocation2 + $0xaf] sm:$0xff]  ;;  %v7129_v41 = vpack.c.bf16 %v4672_v42, %v4672_v42 }
 0x50c   : > { %5729 = vrot.lane.b32.xlu0 %v7189_v23, %s7712_s26  ;;  %v10408_v38 = vpop.permute.xlu1 %4648  ;;  %v4676_v21 = vmul.f32 %v10215_v1, %v4459_v44 }
 0x50d   : > { %v7191_v28 = vpack.c.bf16 %v5596_v2, %v5596_v2 }
 0x50f   : > { %5719 = vrot.lane.b32.xlu1 %v7184_v61, %s7712_s26  ;;  %v7186_v61 = vpack.c.bf16 %v5591_v32, %v5591_v32 }
 0x510   : > { %4815 = vrot.lane.b32.xlu0 %v7130_v54, %s7710_s20  ;;  %v5593_v54 = vmul.f32 %v10369_v53, %v5383_v6  ;;  %v5155_v53 = vmul.f32 %v10267_v8, %v4945_v11 }
 0x511   : > { %v5249_v10 = vpop.permute.xlu0 %5248  ;;  %v10415_v47 = vpop.permute.xlu1 %5078 }
 0x512   : > { %5338 = vst.msk [vmem:[#allocation3 + $0x4] sm:$0xf] %vm5336_vm9, %v5249_v10  ;;  %v7188_v10 = vpack.c.bf16 %v5593_v54, %v5593_v54 }
 0x513   : > { %4805 = vrot.lane.b32.xlu1 %v7125_v9, %s7710_s20 }
 0x514   : > { %4819 = vrot.lane.b32.xlu0 %v7132_v20, %s7710_s20  ;;  %v7133_v20 = vpack.c.bf16 %v4676_v21, %v4676_v21 }
 0x515   : > { %v5084_v49 = vpop.permute.xlu1 %5083 }
 0x517   : > { %4809 = vrot.lane.b32.xlu1 %v7127_v14, %s7710_s20  ;;  %v4674_v14 = vmul.f32 %v10209_v62, %v4457_v52  ;;  %v4934_v62 = vld [vmem:[#allocation2 + $0xa0] sm:$0xff] }
 0x518   : > { %5280 = vrot.lane.b32.xlu0 %v7161_v46, %s7711_s23  ;;  %v7173_v46 = vpack.c.bf16 %v5155_v53, %v5155_v53  ;;  %v5144_v2 = vmul.f32 %v10386_v25, %v4934_v62  ;;  %v5387_v25 = vld [vmem:[#allocation2 + $0xa1] sm:$0xff] }
 0x519   : > { %v5094_v31 = vpop.permute.xlu1 %5093  ;;  %v7131_v34 = vpack.c.bf16 %v4674_v14, %v4674_v14  ;;  %v5597_v54 = vmul.f32 %v10401_v37, %v5387_v25  ;;  %v4680_v37 = vmul.f32 %v10226_v63, %v4463_v45  ;;  %v4461_v63 = vld [vmem:[#allocation2 + $0xbf] sm:$0xff] }
 0x51a   : > { %v5149_v15 = vmul.f32 %v5094_v31, %v4939_v26  ;;  %v4678_v3 = vmul.f32 %v10221_v40, %v4461_v63 }
 0x51b   : > { %5270 = vrot.lane.b32.xlu1 %v7156_v56, %s7711_s23  ;;  %v4937_v56 = vld [vmem:[#allocation2 + $0xb8] sm:$0xff]  ;;  %v7192_v42 = vpack.c.bf16 %v5597_v54, %v5597_v54  ;;  %v7137_v22 = vpack.c.bf16 %v4680_v37, %v4680_v37 }
 0x51c   : > { %5284 = vrot.lane.b32.xlu0 %v7163_v36, %s7711_s23  ;;  %v5147_v29 = vmul.f32 %v5084_v49, %v4937_v56  ;;  %v7160_v36 = vpack.c.bf16 %v5142_v55, %v5142_v55  ;;  %v4466_v55 = vld [vmem:[#allocation2 + $0xe7] sm:$0xff]  ;;  %v7135_v62 = vpack.c.bf16 %v4678_v3, %v4678_v3 }
 0x51d   : > { %v5253_v23 = vpop.permute.xlu0 %5252 }
 0x51e   : > { %5340 = vst.msk [vmem:[#allocation3 + $0xc] sm:$0xf] %vm5336_vm9, %v5253_v23  ;;  %v5537_v12 = vpop.permute.xlu1 %5536  ;;  %v7165_v32 = vpack.c.bf16 %v5147_v29, %v5147_v29  ;;  %v7162_v23 = vpack.c.bf16 %v5144_v2, %v5144_v2 }
 0x51f   : > { %5274 = vrot.lane.b32.xlu1 %v7158_v30, %s7711_s23  ;;  %v5385_v30 = vld [vmem:[#allocation2 + $0x91] sm:$0xff]  ;;  %v5600_v6 = vmul.f32 %v5537_v12, %v5390_v19 }
 0x520   : > { %5733 = vrot.lane.b32.xlu0 %v7191_v28, %s7712_s26  ;;  %v5595_v49 = vmul.f32 %v10324_v39, %v5385_v30  ;;  %v7167_v28 = vpack.c.bf16 %v5149_v15, %v5149_v15  ;;  %v4468_v12 = vld [vmem:[#allocation2 + $0xf7] sm:$0xff]  ;;  %v4938_v15 = vld [vmem:[#allocation2 + $0xc0] sm:$0xff] }
 0x521   : > { %v4685_v11 = vmul.f32 %v10408_v38, %v4468_v12  ;;  %v5148_v30 = vmul.f32 %v10274_v17, %v4938_v15  ;;  %v5394_v17 = vld [vmem:[#allocation2 + $0xd9] sm:$0xff] }
 0x522   : > { %v5702_v0 = vpop.permute.xlu0 %5701  ;;  %v10434_v9 = vpop.permute.xlu1 %5541  ;;  %v7190_v31 = vpack.c.bf16 %v5595_v49, %v5595_v49 }
 0x523   : > { %5791 = vst.msk [vmem:[#allocation3 + $0x4] sm:$0xf] %vm5789_vm2, %v5702_v0  ;;  %5723 = vrot.lane.b32.xlu1 %v7186_v61, %s7712_s26  ;;  %v5392_v61 = vld [vmem:[#allocation2 + $0xc9] sm:$0xff]  ;;  %v7142_v14 = vpack.c.bf16 %v4685_v11, %v4685_v11  ;;  %v4469_v11 = vld [vmem:[#allocation2 + $0xff] sm:$0x1] }
 0x524   : > { %5737 = vrot.lane.b32.xlu0 %v7193_v27, %s7712_s26  ;;  %v5602_v39 = vmul.f32 %v10353_v43, %v5392_v61  ;;  %v7195_v27 = vpack.c.bf16 %v5600_v6, %v5600_v6  ;;  %v4460_v43 = vld [vmem:[#allocation2 + $0xb7] sm:$0xff] }
 0x525   : > { %v4677_v52 = vmul.f32 %v10228_v13, %v4460_v43  ;;  %v4683_v13 = vmul.f32 %v10242_v18, %v4466_v55  ;;  %v5389_v6 = vld [vmem:[#allocation2 + $0xb1] sm:$0xff] }
 0x526   : > { %v5599_v25 = vmul.f32 %v10346_v4, %v5389_v6 }
 0x527   : > { %5727 = vrot.lane.b32.xlu1 %v7188_v10, %s7712_s26  ;;  %v10442_v1 = vpop.permute.xlu1 %4653  ;;  %v7140_v2 = vpack.c.bf16 %v4683_v13, %v4683_v13 }
 0x528   : > { %4821 = vrot.lane.b32.xlu0 %v7133_v20, %s7710_s20  ;;  %v7197_v20 = vpack.c.bf16 %v5602_v39, %v5602_v39  ;;  %v5391_v39 = vld [vmem:[#allocation2 + $0xc1] sm:$0xff] }
 0x529   : > { %v5601_v12 = vmul.f32 %v10434_v9, %v5391_v39 }
 0x52b   : > { %4813 = vrot.lane.b32.xlu1 %v7129_v41, %s7710_s20  ;;  %v5398_v41 = vld [vmem:[#allocation2 + $0xf9] sm:$0x7f]  ;;  %v7196_v37 = vpack.c.bf16 %v5601_v12, %v5601_v12 }
 0x52c   : > { %5304 = vrot.lane.b32.xlu0 %v7173_v46, %s7711_s23  ;;  %v10449_v8 = vpop.permute.xlu1 %5098  ;;  %v5608_v38 = vmul.f32 %v10358_v35, %v5398_v41  ;;  %v4936_v35 = vld [vmem:[#allocation2 + $0xb0] sm:$0xff] }
 0x52d   : > { %v5146_v40 = vmul.f32 %v10415_v47, %v4936_v35  ;;  %v4464_v41 = vld [vmem:[#allocation2 + $0xd7] sm:$0xff] }
 0x52e   : > { %v7203_v56 = vpack.c.bf16 %v5608_v38, %v5608_v38 }
 0x52f   : > { %4817 = vrot.lane.b32.xlu1 %v7131_v34, %s7710_s20  ;;  %v7134_v34 = vpack.c.bf16 %v4677_v52, %v4677_v52  ;;  %v7164_v49 = vpack.c.bf16 %v5146_v40, %v5146_v40 }
 0x530   : > { %4827 = vrot.lane.b32.xlu0 %v7136_v59, %s7710_s20  ;;  %v10454_v33 = vpop.permute.xlu1 %5108 }
 0x533   : > { %5278 = vrot.lane.b32.xlu1 %v7160_v36, %s7711_s23  ;;  %v4941_v36 = vld [vmem:[#allocation2 + $0xd8] sm:$0xff] }
 0x534   : > { %5288 = vrot.lane.b32.xlu0 %v7165_v32, %s7711_s23  ;;  %v10459_v50 = vpop.permute.xlu1 %5113  ;;  %v5151_v26 = vmul.f32 %v10279_v24, %v4941_v36 }
 0x536   : > { %v5706_v44 = vpop.permute.xlu0 %5705  ;;  %v7169_v19 = vpack.c.bf16 %v5151_v26, %v5151_v26 }
 0x537   : > { %5793 = vst.msk [vmem:[#allocation3 + $0xc] sm:$0xf] %vm5789_vm2, %v5706_v44  ;;  %5282 = vrot.lane.b32.xlu1 %v7162_v23, %s7711_s23  ;;  %v4943_v23 = vld [vmem:[#allocation2 + $0xe8] sm:$0xff]  ;;  %v7166_v44 = vpack.c.bf16 %v5148_v30, %v5148_v30 }
 0x538   : > { %5292 = vrot.lane.b32.xlu0 %v7167_v28, %s7711_s23  ;;  %v5153_v47 = vmul.f32 %v10459_v50, %v4943_v23 }
 0x539   : > { %v10466_v21 = vpop.permute.xlu1 %5556 }
 0x53a   : > { %v4792_v0 = vpop.permute.xlu0 %4791  ;;  %v5604_v61 = vmul.f32 %v10466_v21, %v5394_v17 }
 0x53b   : > { %4880 = vst.msk [vmem:[#allocation3 + $0x14] sm:$0xf] %vm4874_vm5, %v4792_v0  ;;  %5731 = vrot.lane.b32.xlu1 %v7190_v31, %s7712_s26  ;;  %v7171_v31 = vpack.c.bf16 %v5153_v47, %v5153_v47  ;;  %v5396_v0 = vld [vmem:[#allocation2 + $0xe9] sm:$0xff] }
 0x53c   : > { %5741 = vrot.lane.b32.xlu0 %v7195_v27, %s7712_s26  ;;  %v7194_v27 = vpack.c.bf16 %v5599_v25, %v5599_v25  ;;  %v5606_v4 = vmul.f32 %v10372_v57, %v5396_v0  ;;  %v7199_v45 = vpack.c.bf16 %v5604_v61, %v5604_v61 }
 0x53d   : > { %v10473_v10 = vpop.permute.xlu1 %5561 }
 0x53e   : > { %v4796_v53 = vpop.permute.xlu0 %4795  ;;  %v7201_v43 = vpack.c.bf16 %v5606_v4, %v5606_v4 }
 0x53f   : > { %4882 = vst.msk [vmem:[#allocation3 + $0x1c] sm:$0xf] %vm4874_vm5, %v4796_v53  ;;  %5735 = vrot.lane.b32.xlu1 %v7192_v42, %s7712_s26  ;;  %v4944_v53 = vld [vmem:[#allocation2 + $0xf0] sm:$0xff] }
 0x540   : > { %5745 = vrot.lane.b32.xlu0 %v7197_v20, %s7712_s26  ;;  %v4686_v20 = vmul.f32 %v10442_v1, %v4469_v11 }
 0x542   : > { %v5257_v16 = vpop.permute.xlu0 %5256  ;;  %v10481_v46 = vpop.permute.xlu1 %5118 }
 0x543   : > { %5342 = vst.msk [vmem:[#allocation3 + $0x14] sm:$0xf] %vm5336_vm9, %v5257_v16  ;;  %4839 = vrot.lane.b32.xlu1 %v7142_v14, %s7710_s20  ;;  %v5154_v9 = vmul.f32 %v10481_v46, %v4944_v53  ;;  %v4681_v14 = vmul.f32 %v10239_v60, %v4464_v41  ;;  %v4465_v46 = vld [vmem:[#allocation2 + $0xdf] sm:$0xff] }
 0x544   : > { %4829 = vrot.lane.b32.xlu0 %v7137_v22, %s7710_s20  ;;  %v7143_v22 = vpack.c.bf16 %v4686_v20, %v4686_v20  ;;  %v4682_v3 = vmul.f32 %v10231_v51, %v4465_v46  ;;  %v4942_v51 = vld [vmem:[#allocation2 + $0xe0] sm:$0xff] }
 0x545   : > { %v7172_v1 = vpack.c.bf16 %v5154_v9, %v5154_v9  ;;  %v7138_v60 = vpack.c.bf16 %v4681_v14, %v4681_v14  ;;  %v5152_v40 = vmul.f32 %v10454_v33, %v4942_v51  ;;  %v5395_v33 = vld [vmem:[#allocation2 + $0xe1] sm:$0xff] }
 0x546   : > { %v5261_v59 = vpop.permute.xlu0 %5260  ;;  %v4782_v29 = vpop.permute.xlu1 %4781  ;;  %v5605_v23 = vmul.f32 %v10473_v10, %v5395_v33  ;;  %v5397_v10 = vld [vmem:[#allocation2 + $0xf1] sm:$0xff] }
 0x547   : > { %5344 = vst.msk [vmem:[#allocation3 + $0x1c] sm:$0xf] %vm5336_vm9, %v5261_v59  ;;  %4823 = vrot.lane.b32.xlu1 %v7134_v34, %s7710_s20  ;;  %v7139_v59 = vpack.c.bf16 %v4682_v3, %v4682_v3 }
 0x548   : > { %4875 = vst.msk [vmem:[#allocation3] sm:$0xf] %vm4874_vm5, %v4782_v29  ;;  %5757 = vrot.lane.b32.xlu0 %v7203_v56, %s7712_s26  ;;  %v4940_v56 = vld [vmem:[#allocation2 + $0xd0] sm:$0xff] }
 0x549   : > { %v5150_v29 = vmul.f32 %v10449_v8, %v4940_v56  ;;  %v5393_v8 = vld [vmem:[#allocation2 + $0xd1] sm:$0xff] }
 0x54a   : > { %v5710_v18 = vpop.permute.xlu0 %5709  ;;  %v4786_v32 = vpop.permute.xlu1 %4785 }
 0x54b   : > { %5795 = vst.msk [vmem:[#allocation3 + $0x14] sm:$0xf] %vm5789_vm2, %v5710_v18  ;;  %4825 = vrot.lane.b32.xlu1 %v7135_v62, %s7710_s20  ;;  %v7168_v36 = vpack.c.bf16 %v5150_v29, %v5150_v29  ;;  %v5603_v18 = vmul.f32 %v10364_v48, %v5393_v8  ;;  %v4467_v48 = vld [vmem:[#allocation2 + $0xef] sm:$0xff] }
 0x54c   : > { %4877 = vst.msk [vmem:[#allocation3 + $0x8] sm:$0xf] %vm4874_vm5, %v4786_v32  ;;  %4835 = vrot.lane.b32.xlu0 %v7140_v2, %s7710_s20  ;;  %v7170_v32 = vpack.c.bf16 %v5152_v40, %v5152_v40 }
 0x54e   : > { %v5714_v28 = vpop.permute.xlu0 %5713  ;;  %v5247_v24 = vpop.permute.xlu1 %5246 }
 0x54f   : > { %5797 = vst.msk [vmem:[#allocation3 + $0x1c] sm:$0xf] %vm5789_vm2, %v5714_v28  ;;  %5286 = vrot.lane.b32.xlu1 %v7164_v49, %s7711_s23  ;;  %v7198_v49 = vpack.c.bf16 %v5603_v18, %v5603_v18  ;;  %v4684_v28 = vmul.f32 %v10236_v58, %v4467_v48 }
 0x550   : > { %5337 = vst.msk [vmem:[#allocation3] sm:$0xf] %vm5336_vm9, %v5247_v24  ;;  %5296 = vrot.lane.b32.xlu0 %v7169_v19, %s7711_s23  ;;  %v7200_v24 = vpack.c.bf16 %v5605_v23, %v5605_v23 }
 0x551   : > { %v7141_v17 = vpack.c.bf16 %v4684_v28, %v4684_v28 }
 0x552   : > { %v4800_v54 = vpop.permute.xlu0 %4799  ;;  %v5251_v50 = vpop.permute.xlu1 %5250 }
 0x553   : > { %4884 = vst.msk [vmem:[#allocation3 + $0x24] sm:$0xf] %vm4874_vm5, %v4800_v54  ;;  %5290 = vrot.lane.b32.xlu1 %v7166_v44, %s7711_s23 }
 0x554   : > { %5339 = vst.msk [vmem:[#allocation3 + $0x8] sm:$0xf] %vm5336_vm9, %v5251_v50  ;;  %5300 = vrot.lane.b32.xlu0 %v7171_v31, %s7711_s23  ;;  %v5607_v31 = vmul.f32 %v10380_v7, %v5397_v10 }
 0x556   : > { %v4804_v42 = vpop.permute.xlu0 %4803  ;;  %v5700_v21 = vpop.permute.xlu1 %5699  ;;  %v7202_v58 = vpack.c.bf16 %v5607_v31, %v5607_v31 }
 0x557   : > { %4886 = vst.msk [vmem:[#allocation3 + $0x2c] sm:$0xf] %vm4874_vm5, %v4804_v42  ;;  %5739 = vrot.lane.b32.xlu1 %v7194_v27, %s7712_s26 }
 0x558   : > { %5790 = vst.msk [vmem:[#allocation3] sm:$0xf] %vm5789_vm2, %v5700_v21  ;;  %5749 = vrot.lane.b32.xlu0 %v7199_v45, %s7712_s26 }
 0x55a   : > { %v5265_v57 = vpop.permute.xlu0 %5264  ;;  %v5704_v52 = vpop.permute.xlu1 %5703 }
 0x55b   : > { %5346 = vst.msk [vmem:[#allocation3 + $0x24] sm:$0xf] %vm5336_vm9, %v5265_v57  ;;  %5743 = vrot.lane.b32.xlu1 %v7196_v37, %s7712_s26 }
 0x55c   : > { %5792 = vst.msk [vmem:[#allocation3 + $0x8] sm:$0xf] %vm5789_vm2, %v5704_v52  ;;  %5753 = vrot.lane.b32.xlu0 %v7201_v43, %s7712_s26 }
 0x55e   : > { %v5269_v38 = vpop.permute.xlu0 %5268  ;;  %v4790_v16 = vpop.permute.xlu1 %4789 }
 0x55f   : > { %v7371_v63 = vld [vmem:[#allocation3] sm:$0xff]   ;;  %5348 = vst.msk [vmem:[#allocation3 + $0x2c] sm:$0xf] %vm5336_vm9, %v5269_v38  ;;  %4841 = vrot.lane.b32.xlu1 %v7143_v22, %s7710_s20 }
 0x560   : > { %4879 = vst.msk [vmem:[#allocation3 + $0x10] sm:$0xf] %vm4874_vm5, %v4790_v16  ;;  %5302 = vrot.lane.b32.xlu0 %v7172_v1, %s7711_s23  ;;  %7277 = vmatprep.mubr.msk.bf16.mxu1 %vm5962_vm7, %v7371_v63 }
 0x562   : > { %v5718_v34 = vpop.permute.xlu0 %5717  ;;  %v4794_v55 = vpop.permute.xlu1 %4793 }
 0x563   : > { %v7372_v13 = vld [vmem:[#allocation3 + $0x8] sm:$0xff]   ;;  %5799 = vst.msk [vmem:[#allocation3 + $0x24] sm:$0xf] %vm5789_vm2, %v5718_v34  ;;  %4831 = vrot.lane.b32.xlu1 %v7138_v60, %s7710_s20 }
 0x564   : > { %4881 = vst.msk [vmem:[#allocation3 + $0x18] sm:$0xf] %vm4874_vm5, %v4794_v55  ;;  %7278 = vmatmul.mubr.msk.bf16.vlgmr.msra.gmra.mxu1 %vm5962_vm7, %v7372_v13 }
 0x566   : > { %v5722_v35 = vpop.permute.xlu0 %5721  ;;  %v5255_v62 = vpop.permute.xlu1 %5254 }
 0x567   : > { %5801 = vst.msk [vmem:[#allocation3 + $0x2c] sm:$0xf] %vm5789_vm2, %v5722_v35  ;;  %4833 = vrot.lane.b32.xlu1 %v7139_v59, %s7710_s20 }
 0x568   : > { %5341 = vst.msk [vmem:[#allocation3 + $0x10] sm:$0xf] %vm5336_vm9, %v5255_v62 }
 0x56a   : > { %v4808_v2 = vpop.permute.xlu0 %4807  ;;  %v5259_v26 = vpop.permute.xlu1 %5258 }
 0x56b   : > { %4888 = vst.msk [vmem:[#allocation3 + $0x34] sm:$0xf] %vm4874_vm5, %v4808_v2  ;;  %5294 = vrot.lane.b32.xlu1 %v7168_v36, %s7711_s23 }
 0x56c   : > { %5343 = vst.msk [vmem:[#allocation3 + $0x18] sm:$0xf] %vm5336_vm9, %v5259_v26 }
 0x56e   : > { %v4812_v15 = vpop.permute.xlu0 %4811  ;;  %v5708_v30 = vpop.permute.xlu1 %5707 }
 0x56f   : > { %4890 = vst.msk [vmem:[#allocation3 + $0x3c] sm:$0xf] %vm4874_vm5, %v4812_v15  ;;  %5298 = vrot.lane.b32.xlu1 %v7170_v32, %s7711_s23 }
 0x570   : > { %5794 = vst.msk [vmem:[#allocation3 + $0x10] sm:$0xf] %vm5789_vm2, %v5708_v30 }
 0x572   : > { %v5273_v19 = vpop.permute.xlu0 %5272  ;;  %v5712_v47 = vpop.permute.xlu1 %5711 }
 0x573   : > { %5350 = vst.msk [vmem:[#allocation3 + $0x34] sm:$0xf] %vm5336_vm9, %v5273_v19  ;;  %5747 = vrot.lane.b32.xlu1 %v7198_v49, %s7712_s26 }
 0x574   : > { %5796 = vst.msk [vmem:[#allocation3 + $0x18] sm:$0xf] %vm5789_vm2, %v5712_v47 }
 0x576   : > { %v5277_v6 = vpop.permute.xlu0 %5276  ;;  %v4798_v44 = vpop.permute.xlu1 %4797 }
 0x577   : > { %v7373_v25 = vld [vmem:[#allocation3 + $0x10] sm:$0xff]   ;;  %5352 = vst.msk [vmem:[#allocation3 + $0x3c] sm:$0xf] %vm5336_vm9, %v5277_v6  ;;  %5751 = vrot.lane.b32.xlu1 %v7200_v24, %s7712_s26 }
 0x578   : > { %4883 = vst.msk [vmem:[#allocation3 + $0x20] sm:$0xf] %vm4874_vm5, %v4798_v44  ;;  %7281 = vmatprep.mubr.msk.bf16.mxu1 %vm5962_vm7, %v7373_v25  ;;  %v4907_v44 = vld [vmem:[#allocation3 + $0x78] sm:$0x1] }
 0x57a   : > { %v5726_v61 = vpop.permute.xlu0 %5725  ;;  %v4802_v54 = vpop.permute.xlu1 %4801 }
 0x57b   : > { %v7374_v50 = vld [vmem:[#allocation3 + $0x18] sm:$0xff]   ;;  %5803 = vst.msk [vmem:[#allocation3 + $0x34] sm:$0xf] %vm5789_vm2, %v5726_v61  ;;  %4837 = vrot.lane.b32.xlu1 %v7141_v17, %s7710_s20 }
 0x57c   : > { %4885 = vst.msk [vmem:[#allocation3 + $0x28] sm:$0xf] %vm4874_vm5, %v4802_v54  ;;  %7282 = vmatmul.mubr.msk.bf16.gmra.mxu1 %vm5962_vm7, %v7374_v50 }
 0x57e   : > { %v5730_v39 = vpop.permute.xlu0 %5729  ;;  %v5263_v27 = vpop.permute.xlu1 %5262 }
 0x57f   : > { %5805 = vst.msk [vmem:[#allocation3 + $0x3c] sm:$0xf] %vm5789_vm2, %v5730_v39  ;;  %5755 = vrot.lane.b32.xlu1 %v7202_v58, %s7712_s26 }
 0x580   : > { %5345 = vst.msk [vmem:[#allocation3 + $0x20] sm:$0xf] %vm5336_vm9, %v5263_v27 }
 0x582   : > { %v4816_v7 = vpop.permute.xlu0 %4815  ;;  %v5267_v0 = vpop.permute.xlu1 %5266 }
 0x583   : > { %4892 = vst.msk [vmem:[#allocation3 + $0x44] sm:$0xf] %vm4874_vm5, %v4816_v7 }
 0x584   : > { %5347 = vst.msk [vmem:[#allocation3 + $0x28] sm:$0xf] %vm5336_vm9, %v5267_v0 }
 0x586   : > { %v4820_v12 = vpop.permute.xlu0 %4819  ;;  %v5716_v4 = vpop.permute.xlu1 %5715 }
 0x587   : > { %4894 = vst.msk [vmem:[#allocation3 + $0x4c] sm:$0xf] %vm4874_vm5, %v4820_v12 }
 0x588   : > { %5798 = vst.msk [vmem:[#allocation3 + $0x20] sm:$0xf] %vm5789_vm2, %v5716_v4 }
 0x58a   : > { %v5281_v45 = vpop.permute.xlu0 %5280  ;;  %v5720_v42 = vpop.permute.xlu1 %5719 }
 0x58b   : > { %5354 = vst.msk [vmem:[#allocation3 + $0x44] sm:$0xf] %vm5336_vm9, %v5281_v45 }
 0x58c   : > { %5800 = vst.msk [vmem:[#allocation3 + $0x28] sm:$0xf] %vm5789_vm2, %v5720_v42 }
 0x58e   : > { %v5285_v21 = vpop.permute.xlu0 %5284  ;;  %v4806_v11 = vpop.permute.xlu1 %4805 }
 0x58f   : > { %v7375_v37 = vld [vmem:[#allocation3 + $0x20] sm:$0xff]   ;;  %5356 = vst.msk [vmem:[#allocation3 + $0x4c] sm:$0xf] %vm5336_vm9, %v5285_v21 }
 0x590   : > { %4887 = vst.msk [vmem:[#allocation3 + $0x30] sm:$0xf] %vm4874_vm5, %v4806_v11  ;;  %7285 = vmatprep.mubr.msk.bf16.mxu1 %vm5962_vm7, %v7375_v37  ;;  %v10637_v37 = vld [vmem:[%s10877_s4] ss:$0 sm:$0xff] }
 0x592   : > { %v5734_v20 = vpop.permute.xlu0 %5733  ;;  %v4810_v53 = vpop.permute.xlu1 %4809 }
 0x593   : > { %v7376_v43 = vld [vmem:[#allocation3 + $0x28] sm:$0xff]   ;;  %5807 = vst.msk [vmem:[#allocation3 + $0x44] sm:$0xf] %vm5789_vm2, %v5734_v20 }
 0x594   : > { %4889 = vst.msk [vmem:[#allocation3 + $0x38] sm:$0xf] %vm4874_vm5, %v4810_v53  ;;  %7286 = vmatmul.mubr.msk.bf16.gmra.mxu1 %vm5962_vm7, %v7376_v43 }
 0x596   : > { %v5738_v9 = vpop.permute.xlu0 %5737  ;;  %v5271_v57 = vpop.permute.xlu1 %5270 }
 0x597   : > { %5809 = vst.msk [vmem:[#allocation3 + $0x4c] sm:$0xf] %vm5789_vm2, %v5738_v9 }
 0x598   : > { %5349 = vst.msk [vmem:[#allocation3 + $0x30] sm:$0xf] %vm5336_vm9, %v5271_v57 }
 0x59a   : > { %v4822_v52 = vpop.permute.xlu0 %4821  ;;  %v5275_v41 = vpop.permute.xlu1 %5274 }
 0x59b   : > { %4895 = vst.msk [vmem:[#allocation3 + $0x50] sm:$0xf] %vm4874_vm5, %v4822_v52 }
 0x59c   : > { %5351 = vst.msk [vmem:[#allocation3 + $0x38] sm:$0xf] %vm5336_vm9, %v5275_v41 }
 0x59e   : > { %v5305_v14 = vpop.permute.xlu0 %5304  ;;  %v5724_v22 = vpop.permute.xlu1 %5723 }
 0x59f   : > { %5802 = vst.msk [vmem:[#allocation3 + $0x30] sm:$0xf] %vm5789_vm2, %v5724_v22 }
 0x5a2   : > { %v4828_v1 = vpop.permute.xlu0 %4827  ;;  %v5728_v38 = vpop.permute.xlu1 %5727 }
 0x5a3   : > { %4898 = vst.msk [vmem:[#allocation3 + $0x5c] sm:$0xf] %vm4874_vm5, %v4828_v1 }
 0x5a4   : > { %5804 = vst.msk [vmem:[#allocation3 + $0x38] sm:$0xf] %vm5789_vm2, %v5728_v38 }
 0x5a6   : > { %v5289_v16 = vpop.permute.xlu0 %5288  ;;  %v4814_v63 = vpop.permute.xlu1 %4813  ;;  %v7377_v46 = vld [vmem:[#allocation3 + $0x30] sm:$0xff]  }
 0x5a7   : > { %4891 = vst.msk [vmem:[#allocation3 + $0x40] sm:$0xf] %vm4874_vm5, %v4814_v63  ;;  %7289 = vmatprep.mubr.msk.bf16.mxu1 %vm5962_vm7, %v7377_v46 }
 0x5aa   : > { %v5293_v3 = vpop.permute.xlu0 %5292  ;;  %v4818_v60 = vpop.permute.xlu1 %4817 }
 0x5ab   : > { %v7378_v34 = vld [vmem:[#allocation3 + $0x38] sm:$0xff]   ;;  %5360 = vst.msk [vmem:[#allocation3 + $0x5c] sm:$0xf] %vm5336_vm9, %v5293_v3 }
 0x5ac   : > { %4893 = vst.msk [vmem:[#allocation3 + $0x48] sm:$0xf] %vm4874_vm5, %v4818_v60  ;;  %7290 = vmatmul.mubr.msk.bf16.gmra.mxu1 %vm5962_vm7, %v7378_v34 }
 0x5ae   : > { %v5742_v55 = vpop.permute.xlu0 %5741  ;;  %v5279_v13 = vpop.permute.xlu1 %5278 }
 0x5af   : > { %5353 = vst.msk [vmem:[#allocation3 + $0x40] sm:$0xf] %vm5336_vm9, %v5279_v13 }
 0x5b2   : > { %v5746_v56 = vpop.permute.xlu0 %5745  ;;  %v5283_v59 = vpop.permute.xlu1 %5282 }
 0x5b3   : > { %5813 = vst.msk [vmem:[#allocation3 + $0x5c] sm:$0xf] %vm5789_vm2, %v5746_v56 }
 0x5b4   : > { %5355 = vst.msk [vmem:[#allocation3 + $0x48] sm:$0xf] %vm5336_vm9, %v5283_v59 }
 0x5b6   : > { %v4830_v29 = vpop.permute.xlu0 %4829  ;;  %v5732_v35 = vpop.permute.xlu1 %5731 }
 0x5b7   : > { %4899 = vst.msk [vmem:[#allocation3 + $0x60] sm:$0xf] %vm4874_vm5, %v4830_v29 }
 0x5b8   : > { %5806 = vst.msk [vmem:[#allocation3 + $0x40] sm:$0xf] %vm5789_vm2, %v5732_v35 }
 0x5ba   : > { %v5758_v62 = vpop.permute.xlu0 %5757  ;;  %v5736_v51 = vpop.permute.xlu1 %5735 }
 0x5bb   : > { %5808 = vst.msk [vmem:[#allocation3 + $0x48] sm:$0xf] %vm5789_vm2, %v5736_v51 }
 0x5be   : > { %v4836_v36 = vpop.permute.xlu0 %4835  ;;  %v4840_v40 = vpop.permute.xlu1 %4839 }
 0x5bf   : > { %v7379_v2 = vld [vmem:[#allocation3 + $0x40] sm:$0xff]   ;;  %4902 = vst.msk [vmem:[#allocation3 + $0x6c] sm:$0xf] %vm4874_vm5, %v4836_v36  ;;  %4904 = vst.msk [vmem:[#allocation3 + $0x74] sm:$0xf] %vm4874_vm5, %v4840_v40 }
 0x5c0   : > { %5366 = vst.msk [vmem:[#allocation3 + $0x74] sm:$0xf] %vm5336_vm9, %v5305_v14  ;;  %7293 = vmatprep.mubr.msk.bf16.mxu1 %vm5962_vm7, %v7379_v2 }
 0x5c2   : > { %v5297_v26 = vpop.permute.xlu0 %5296  ;;  %v4824_v8 = vpop.permute.xlu1 %4823  ;;  %v7380_v18 = vld [vmem:[#allocation3 + $0x48] sm:$0xff]  }
 0x5c3   : > { %4896 = vst.msk [vmem:[#allocation3 + $0x54] sm:$0xf] %vm4874_vm5, %v4824_v8  ;;  %7294 = vmatmul.mubr.msk.bf16.gmra.mxu1 %vm5962_vm7, %v7380_v18 }
 0x5c4   : > { %5358 = vst.msk [vmem:[#allocation3 + $0x54] sm:$0xf] %vm5336_vm9, %v5289_v16 }
 0x5c5   : > { %5811 = vst.msk [vmem:[#allocation3 + $0x54] sm:$0xf] %vm5789_vm2, %v5742_v55 }
 0x5c6   : > { %v5301_v32 = vpop.permute.xlu0 %5300  ;;  %v4826_v15 = vpop.permute.xlu1 %4825 }
 0x5c7   : > { %v5821_v30 = vld [vmem:[#allocation3 + $0x74] sm:$0xf]  ;;  %5364 = vst.msk [vmem:[#allocation3 + $0x6c] sm:$0xf] %vm5336_vm9, %v5301_v32 }
 0x5c8   : > { %4897 = vst.msk [vmem:[#allocation3 + $0x58] sm:$0xf] %vm4874_vm5, %v4826_v15  ;;  %v5822_v33 = vsel %vm5820_vm11, %v5758_v62, %v5821_v30 }
 0x5c9   : > { %5823 = vst [vmem:[#allocation3 + $0x74] sm:$0xf] %v5822_v33 }
 0x5ca   : > { %v5750_v49 = vpop.permute.xlu0 %5749  ;;  %v5287_v23 = vpop.permute.xlu1 %5286 }
 0x5cb   : > { %5357 = vst.msk [vmem:[#allocation3 + $0x50] sm:$0xf] %vm5336_vm9, %v5287_v23 }
 0x5ce   : > { %v5754_v19 = vpop.permute.xlu0 %5753  ;;  %v5291_v47 = vpop.permute.xlu1 %5290 }
 0x5cf   : > { %5817 = vst.msk [vmem:[#allocation3 + $0x6c] sm:$0xf] %vm5789_vm2, %v5754_v19 }
 0x5d0   : > { %5359 = vst.msk [vmem:[#allocation3 + $0x58] sm:$0xf] %vm5336_vm9, %v5291_v47  ;;  %v5826_v48 = vld [vmem:[#allocation3 + $0x74] sm:$0x8] }
 0x5d1   : > { %v5827_v28 = vsel %vm5825_vm13, 0, %v5826_v48  ;;  %v7657_v48 = vld [vmem:[%s7789_s12] sm:$0xff] }
 0x5d2   : > { %5828 = vst [vmem:[#allocation3 + $0x74] sm:$0x8] %v5827_v28  ;;  %v5740_v24 = vpop.permute.xlu1 %5739  ;;  %v5303_v45 = vpop.permute.xlu0 %5302 }
 0x5d3   : > { %5810 = vst.msk [vmem:[#allocation3 + $0x50] sm:$0xf] %vm5789_vm2, %v5740_v24 }
 0x5d6   : > { %v5744_v6 = vpop.permute.xlu1 %5743 }
 0x5d7   : > { %5812 = vst.msk [vmem:[#allocation3 + $0x58] sm:$0xf] %vm5789_vm2, %v5744_v6 }
 0x5da   : > { %v4842_v25 = vpop.permute.xlu1 %4841  ;;  %v7381_v10 = vld [vmem:[#allocation3 + $0x50] sm:$0xff]  }
 0x5db   : > { %v4908_v17 = vsel %vm4906_vm14, %v4842_v25, %v4907_v44  ;;  %7297 = vmatprep.mubr.msk.bf16.mxu1 %vm5962_vm7, %v7381_v10  ;;  %v7658_v44 = vld [vmem:[%s7789_s12 + $0x18] sm:$0xff] }
 0x5dc   : > { %4909 = vst [vmem:[#allocation3 + $0x78] sm:$0x1] %v4908_v17 }
 0x5de   : > { %v4832_v31 = vpop.permute.xlu1 %4831  ;;  %v7382_v61 = vld [vmem:[#allocation3 + $0x58] sm:$0xff]  }
 0x5df   : > { %4900 = vst.msk [vmem:[#allocation3 + $0x64] sm:$0xf] %vm4874_vm5, %v4832_v31  ;;  %7298 = vmatmul.mubr.msk.bf16.gmra.mxu1 %vm5962_vm7, %v7382_v61  ;;  %v7659_v31 = vld [vmem:[%s7789_s12 + $0x8] sm:$0xff] }
 0x5e0   : > { %5362 = vst.msk [vmem:[#allocation3 + $0x64] sm:$0xf] %vm5336_vm9, %v5297_v26 }
 0x5e1   : > { %5815 = vst.msk [vmem:[#allocation3 + $0x64] sm:$0xf] %vm5789_vm2, %v5750_v49  ;;  %v7656_v49 = vld [vmem:[%s7789_s12 + $0x10] sm:$0xff] }
 0x5e2   : > { %v4834_v54 = vpop.permute.xlu1 %4833 }
 0x5e3   : > { %v4912_v50 = vld [vmem:[#allocation3 + $0x78] sm:$0xf]  ;;  %4901 = vst.msk [vmem:[#allocation3 + $0x68] sm:$0xf] %vm4874_vm5, %v4834_v54 }
 0x5e4   : > { %v4913_v58 = vsel %vm4911_vm3, 0, %v4912_v50 }
 0x5e5   : > { %4914 = vst [vmem:[#allocation3 + $0x78] sm:$0xf] %v4913_v58 }
 0x5e6   : > { %5367 = vst.msk [vmem:[#allocation3 + $0x78] sm:$0xf] %vm5336_vm9, %v10938_v5  ;;  %v5295_v39 = vpop.permute.xlu1 %5294 }
 0x5e7   : > { %5829 = vst.msk [vmem:[#allocation3 + $0x78] sm:$0xf] %vm5789_vm2, %v10938_v5 }
 0x5e8   : > { %5361 = vst.msk [vmem:[#allocation3 + $0x60] sm:$0xf] %vm5336_vm9, %v5295_v39 }
 0x5ea   : > { %v5299_v27 = vpop.permute.xlu1 %5298 }
 0x5eb   : > { %5363 = vst.msk [vmem:[#allocation3 + $0x68] sm:$0xf] %vm5336_vm9, %v5299_v27 }
 0x5ee   : > { %v5748_v7 = vpop.permute.xlu1 %5747  ;;  %v7386_v21 = vld [vmem:[#allocation3 + $0x78] sm:$0xff]  }
 0x5ef   : > { %5814 = vst.msk [vmem:[#allocation3 + $0x60] sm:$0xf] %vm5789_vm2, %v5748_v7 }
 0x5f2   : > { %v5752_v0 = vpop.permute.xlu1 %5751 }
 0x5f3   : > { %5816 = vst.msk [vmem:[#allocation3 + $0x68] sm:$0xf] %vm5789_vm2, %v5752_v0 }
 0x5f6   : > { %v4838_v12 = vpop.permute.xlu1 %4837  ;;  %v7383_v4 = vld [vmem:[#allocation3 + $0x60] sm:$0xff]  }
 0x5f7   : > { %4903 = vst.msk [vmem:[#allocation3 + $0x70] sm:$0xf] %vm4874_vm5, %v4838_v12  ;;  %7301 = vmatprep.mubr.msk.bf16.mxu1 %vm5962_vm7, %v7383_v4 }
 0x5f8   : > { %5365 = vst.msk [vmem:[#allocation3 + $0x70] sm:$0xf] %vm5336_vm9, %v5303_v45 }
 0x5fa   : > { %v5756_v5 = vpop.permute.xlu1 %5755  ;;  %v7384_v42 = vld [vmem:[#allocation3 + $0x68] sm:$0xff]  }
 0x5fb   : > { %5818 = vst.msk [vmem:[#allocation3 + $0x70] sm:$0xf] %vm5789_vm2, %v5756_v5  ;;  %7302 = vmatmul.mubr.msk.bf16.gmra.mxu1 %vm5962_vm7, %v7384_v42 }
 0x602   : > { %v7385_v11 = vld [vmem:[#allocation3 + $0x70] sm:$0xff]  }
 0x603   : > { %7305 = vmatprep.mubr.msk.bf16.mxu1 %vm5962_vm7, %v7385_v11 }
 0x604   : > { %7306 = vmatmul.mubr.msk.bf16.gmra.mxu1 %vm5962_vm7, %v7386_v21 }
 0x624   : > { %v7279_v20 = vpop.f32.mrf.mxu1 }
 0x625   : > { %v6058_v53 = vadd.f32 %v7279_v20, %v10637_v37 }
 0x626   : > { %v6049_v43 = vpop.f32.mrf.mxu1 }
 0x627   : > { %v6892_v9 = vmul.f32 -1.442695, %v6058_v53  ;;  %v6050_v57 = vadd.f32 %v10637_v37, %v6049_v43 }
 0x628   : > { %v7280_v52 = vpop.f32.mrf.mxu1 }
 0x629   : > { %7515 = vpow2.f32 %v6892_v9  ;;  %v6890_v41 = vmul.f32 -1.442695, %v6050_v57  ;;  %v6061_v14 = vadd.f32 %v7280_v52, %v10637_v37 }
 0x62a   : > { %v6052_v22 = vpop.f32.mrf.mxu1 }
 0x62b   : > { %7517 = vpow2.f32 %v6890_v41  ;;  %v6893_v1 = vmul.f32 -1.442695, %v6061_v14  ;;  %v6053_v38 = vadd.f32 %v10637_v37, %v6052_v22  ;;  %v7660_v22 = vld [vmem:[%s7789_s12 + $0x30] sm:$0xff] }
 0x62d   : > { %7519 = vpow2.f32 %v6893_v1  ;;  %v6891_v16 = vmul.f32 -1.442695, %v6053_v38 }
 0x62f   : > { %7521 = vpow2.f32 %v6891_v16 }
 0x636   : > { %v7516_v63 = vpop.eup %7515 }
 0x637   : > { %v6274_v46 = vadd.f32 1.0, %v7516_v63  ;;  %v7661_v63 = vld [vmem:[%s7789_s12 + $0x20] sm:$0xff] }
 0x638   : > { %v7518_v3 = vpop.eup %7517 }
 0x639   : > { %7523 = vrcp.f32 %v6274_v46  ;;  %v6272_v60 = vadd.f32 1.0, %v7518_v3 }
 0x63a   : > { %v7520_v34 = vpop.eup %7519 }
 0x63b   : > { %7525 = vrcp.f32 %v6272_v60  ;;  %v6275_v55 = vadd.f32 1.0, %v7520_v34  ;;  %v7662_v34 = vld [vmem:[%s7789_s12 + $0x38] sm:$0xff] }
 0x63c   : > { %v7522_v13 = vpop.eup %7521  ;;  %v7283_v56 = vpop.f32.mrf.mxu1 }
 0x63d   : > { %7527 = vrcp.f32 %v6275_v55  ;;  %v6273_v59 = vadd.f32 1.0, %v7522_v13  ;;  %v10644_v29 = vadd.f32 %v7283_v56, %v10637_v37 }
 0x63e   : > { %v6065_v35 = vpop.f32.mrf.mxu1 }
 0x63f   : > { %7529 = vrcp.f32 %v6273_v59  ;;  %v6896_v62 = vmul.f32 -1.442695, %v10644_v29  ;;  %v10648_v51 = vadd.f32 %v10637_v37, %v6065_v35  ;;  %v7663_v59 = vld [vmem:[%s7789_s12 + $0x28] sm:$0xff] }
 0x640   : > { %v7284_v36 = vpop.f32.mrf.mxu1 }
 0x641   : > { %7531 = vpow2.f32 %v6896_v62  ;;  %v6894_v40 = vmul.f32 -1.442695, %v10648_v51  ;;  %v10652_v2 = vadd.f32 %v7284_v36, %v10637_v37 }
 0x642   : > { %v6068_v26 = vpop.f32.mrf.mxu1 }
 0x643   : > { %7533 = vpow2.f32 %v6894_v40  ;;  %v6897_v8 = vmul.f32 -1.442695, %v10652_v2  ;;  %v10656_v18 = vadd.f32 %v10637_v37, %v6068_v26 }
 0x645   : > { %7535 = vpow2.f32 %v6897_v8  ;;  %v6895_v32 = vmul.f32 -1.442695, %v10656_v18 }
 0x646   : > { %v7524_v15 = vpop.eup %7523 }
 0x647   : > { %v6370_v30 = vmul.f32 %v7524_v15, %v6058_v53  ;;  %7537 = vpow2.f32 %v6895_v32 }
 0x648   : > { %v7526_v33 = vpop.eup %7525 }
 0x649   : > { %v6402_v23 = vadd.f32 %v7656_v49, %v6370_v30  ;;  %v6368_v19 = vmul.f32 %v7526_v33, %v6050_v57 }
 0x64a   : > { %v7528_v47 = vpop.eup %7527 }
 0x64b   : > { %6434 = vst.msk [vmem:[%s10664_s13 + $0x10] sm:$0xff] %vm309_vm1, %v6402_v23  ;;  %v6400_v28 = vadd.f32 %v7657_v48, %v6368_v19  ;;  %v6371_v24 = vmul.f32 %v7528_v47, %v6061_v14 }
 0x64c   : > { %v7530_v6 = vpop.eup %7529 }
 0x64d   : > { %6432 = vst.msk [vmem:[%s10664_s13] sm:$0xff] %vm309_vm1, %v6400_v28  ;;  %v6403_v25 = vadd.f32 %v7658_v44, %v6371_v24  ;;  %v6369_v10 = vmul.f32 %v7530_v6, %v6053_v38 }
 0x64e   : > { %v7532_v17 = vpop.eup %7531 }
 0x64f   : > { %6435 = vst.msk [vmem:[%s10664_s13 + $0x18] sm:$0xff] %vm309_vm1, %v6403_v25  ;;  %v6401_v61 = vadd.f32 %v7659_v31, %v6369_v10  ;;  %v6278_v54 = vadd.f32 1.0, %v7532_v17  ;;  %v7664_v25 = vld [vmem:[%s7789_s12 + $0x50] sm:$0xff] }
 0x650   : > { %v7534_v50 = vpop.eup %7533 }
 0x651   : > { %6433 = vst.msk [vmem:[%s10664_s13 + $0x8] sm:$0xff] %vm309_vm1, %v6401_v61  ;;  %7539 = vrcp.f32 %v6278_v54  ;;  %v6276_v58 = vadd.f32 1.0, %v7534_v50  ;;  %v7665_v61 = vld [vmem:[%s7789_s12 + $0x40] sm:$0xff] }
 0x652   : > { %v7536_v39 = vpop.eup %7535 }
 0x653   : > { %7541 = vrcp.f32 %v6276_v58  ;;  %v6279_v27 = vadd.f32 1.0, %v7536_v39  ;;  %v7666_v39 = vld [vmem:[%s7789_s12 + $0x58] sm:$0xff] }
 0x654   : > { %v7538_v7 = vpop.eup %7537  ;;  %v7287_v0 = vpop.f32.mrf.mxu1 }
 0x655   : > { %7543 = vrcp.f32 %v6279_v27  ;;  %v6277_v12 = vadd.f32 1.0, %v7538_v7  ;;  %v10679_v4 = vadd.f32 %v7287_v0, %v10637_v37 }
 0x656   : > { %v6081_v45 = vpop.f32.mrf.mxu1 }
 0x657   : > { %7545 = vrcp.f32 %v6277_v12  ;;  %v6900_v5 = vmul.f32 -1.442695, %v10679_v4  ;;  %v10683_v42 = vadd.f32 %v10637_v37, %v6081_v45  ;;  %v7667_v12 = vld [vmem:[%s7789_s12 + $0x48] sm:$0xff] }
 0x658   : > { %v7288_v21 = vpop.f32.mrf.mxu1 }
 0x659   : > { %7547 = vpow2.f32 %v6900_v5  ;;  %v6898_v11 = vmul.f32 -1.442695, %v10683_v42  ;;  %v10687_v20 = vadd.f32 %v7288_v21, %v10637_v37 }
 0x65a   : > { %v6084_v53 = vpop.f32.mrf.mxu1 }
 0x65b   : > { %7549 = vpow2.f32 %v6898_v11  ;;  %v6901_v43 = vmul.f32 -1.442695, %v10687_v20  ;;  %v10691_v9 = vadd.f32 %v10637_v37, %v6084_v53 }
 0x65d   : > { %7551 = vpow2.f32 %v6901_v43  ;;  %v6899_v57 = vmul.f32 -1.442695, %v10691_v9 }
 0x65e   : > { %v7540_v52 = vpop.eup %7539 }
 0x65f   : > { %v6374_v41 = vmul.f32 %v7540_v52, %v10644_v29  ;;  %7553 = vpow2.f32 %v6899_v57 }
 0x660   : > { %v7542_v14 = vpop.eup %7541 }
 0x661   : > { %v6406_v1 = vadd.f32 %v7660_v22, %v6374_v41  ;;  %v6372_v38 = vmul.f32 %v7542_v14, %v10648_v51 }
 0x662   : > { %v7544_v16 = vpop.eup %7543 }
 0x663   : > { %6438 = vst.msk [vmem:[%s10664_s13 + $0x30] sm:$0xff] %vm309_vm1, %v6406_v1  ;;  %v6404_v46 = vadd.f32 %v7661_v63, %v6372_v38  ;;  %v6375_v3 = vmul.f32 %v7544_v16, %v10652_v2 }
 0x664   : > { %v7546_v60 = vpop.eup %7545 }
 0x665   : > { %6436 = vst.msk [vmem:[%s10664_s13 + $0x20] sm:$0xff] %vm309_vm1, %v6404_v46  ;;  %v6407_v55 = vadd.f32 %v7662_v34, %v6375_v3  ;;  %v6373_v13 = vmul.f32 %v7546_v60, %v10656_v18 }
 0x666   : > { %v7548_v56 = vpop.eup %7547 }
 0x667   : > { %6439 = vst.msk [vmem:[%s10664_s13 + $0x38] sm:$0xff] %vm309_vm1, %v6407_v55  ;;  %v6405_v29 = vadd.f32 %v7663_v59, %v6373_v13  ;;  %v6282_v35 = vadd.f32 1.0, %v7548_v56  ;;  %v7668_v55 = vld [vmem:[%s7789_s12 + $0x70] sm:$0xff] }
 0x668   : > { %v7550_v62 = vpop.eup %7549 }
 0x669   : > { %6437 = vst.msk [vmem:[%s10664_s13 + $0x28] sm:$0xff] %vm309_vm1, %v6405_v29  ;;  %7555 = vrcp.f32 %v6282_v35  ;;  %v6280_v51 = vadd.f32 1.0, %v7550_v62  ;;  %v7669_v29 = vld [vmem:[%s7789_s12 + $0x60] sm:$0xff] }
 0x66a   : > { %v7552_v36 = vpop.eup %7551 }
 0x66b   : > { %7557 = vrcp.f32 %v6280_v51  ;;  %v6283_v40 = vadd.f32 1.0, %v7552_v36  ;;  %v7670_v36 = vld [vmem:[%s7789_s12 + $0x78] sm:$0xff] }
 0x66c   : > { %v7554_v2 = vpop.eup %7553  ;;  %v7291_v26 = vpop.f32.mrf.mxu1 }
 0x66d   : > { %7559 = vrcp.f32 %v6283_v40  ;;  %v6281_v8 = vadd.f32 1.0, %v7554_v2  ;;  %v10711_v18 = vadd.f32 %v7291_v26, %v10637_v37 }
 0x66e   : > { %v6097_v32 = vpop.f32.mrf.mxu1 }
 0x66f   : > { %7561 = vrcp.f32 %v6281_v8  ;;  %v6904_v15 = vmul.f32 -1.442695, %v10711_v18  ;;  %v10715_v30 = vadd.f32 %v10637_v37, %v6097_v32  ;;  %v7671_v8 = vld [vmem:[%s7789_s12 + $0x68] sm:$0xff] }
 0x670   : > { %v7292_v33 = vpop.f32.mrf.mxu1 }
 0x671   : > { %7563 = vpow2.f32 %v6904_v15  ;;  %v6902_v49 = vmul.f32 -1.442695, %v10715_v30  ;;  %v10719_v23 = vadd.f32 %v7292_v33, %v10637_v37 }
 0x672   : > { %v6100_v19 = vpop.f32.mrf.mxu1 }
 0x673   : > { %7565 = vpow2.f32 %v6902_v49  ;;  %v6905_v47 = vmul.f32 -1.442695, %v10719_v23  ;;  %v10723_v48 = vadd.f32 %v10637_v37, %v6100_v19 }
 0x675   : > { %7567 = vpow2.f32 %v6905_v47  ;;  %v6903_v28 = vmul.f32 -1.442695, %v10723_v48 }
 0x676   : > { %v7556_v24 = vpop.eup %7555 }
 0x677   : > { %v6378_v6 = vmul.f32 %v7556_v24, %v10679_v4  ;;  %7569 = vpow2.f32 %v6903_v28 }
 0x678   : > { %v7558_v44 = vpop.eup %7557 }
 0x679   : > { %v6410_v10 = vadd.f32 %v7664_v25, %v6378_v6  ;;  %v6376_v17 = vmul.f32 %v7558_v44, %v10683_v42 }
 0x67a   : > { %v7560_v31 = vpop.eup %7559 }
 0x67b   : > { %6442 = vst.msk [vmem:[%s10664_s13 + $0x50] sm:$0xff] %vm309_vm1, %v6410_v10  ;;  %v6408_v54 = vadd.f32 %v7665_v61, %v6376_v17  ;;  %v6379_v50 = vmul.f32 %v7560_v31, %v10687_v20 }
 0x67c   : > { %v7562_v58 = vpop.eup %7561 }
 0x67d   : > { %6440 = vst.msk [vmem:[%s10664_s13 + $0x40] sm:$0xff] %vm309_vm1, %v6408_v54  ;;  %v6411_v27 = vadd.f32 %v7666_v39, %v6379_v50  ;;  %v6377_v7 = vmul.f32 %v7562_v58, %v10691_v9  ;;  %v7672_v39 = vld [vmem:[%s7789_s12 + $0x90] sm:$0xff] }
 0x67e   : > { %v7564_v0 = vpop.eup %7563 }
 0x67f   : > { %6443 = vst.msk [vmem:[%s10664_s13 + $0x58] sm:$0xff] %vm309_vm1, %v6411_v27  ;;  %v6409_v4 = vadd.f32 %v7667_v12, %v6377_v7  ;;  %v6286_v45 = vadd.f32 1.0, %v7564_v0 }
 0x680   : > { %v7566_v5 = vpop.eup %7565 }
 0x681   : > { %6441 = vst.msk [vmem:[%s10664_s13 + $0x48] sm:$0xff] %vm309_vm1, %v6409_v4  ;;  %7571 = vrcp.f32 %v6286_v45  ;;  %v6284_v42 = vadd.f32 1.0, %v7566_v5  ;;  %v7673_v4 = vld [vmem:[%s7789_s12 + $0x80] sm:$0xff] }
 0x682   : > { %v7568_v21 = vpop.eup %7567 }
 0x683   : > { %7573 = vrcp.f32 %v6284_v42  ;;  %v6287_v11 = vadd.f32 1.0, %v7568_v21  ;;  %v7295_v53 = vpop.f32.mrf.mxu1  ;;  %v7674_v21 = vld [vmem:[%s7789_s12 + $0x98] sm:$0xff] }
 0x684   : > { %v7570_v20 = vpop.eup %7569  ;;  %v6122_v9 = vadd.f32 %v7295_v53, %v10637_v37  ;;  %v7675_v53 = vld [vmem:[%s7789_s12 + $0x88] sm:$0xff] }
 0x685   : > { %7575 = vrcp.f32 %v6287_v11  ;;  %v6285_v43 = vadd.f32 1.0, %v7570_v20  ;;  %v6113_v57 = vpop.f32.mrf.mxu1 }
 0x686   : > { %v6908_v52 = vmul.f32 -1.442695, %v6122_v9  ;;  %v6114_v41 = vadd.f32 %v10637_v37, %v6113_v57 }
 0x687   : > { %7577 = vrcp.f32 %v6285_v43  ;;  %v7296_v14 = vpop.f32.mrf.mxu1 }
 0x688   : > { %7579 = vpow2.f32 %v6908_v52  ;;  %v6906_v22 = vmul.f32 -1.442695, %v6114_v41  ;;  %v10745_v1 = vadd.f32 %v7296_v14, %v10637_v37 }
 0x689   : > { %v6116_v38 = vpop.f32.mrf.mxu1 }
 0x68a   : > { %7581 = vpow2.f32 %v6906_v22  ;;  %v6909_v16 = vmul.f32 -1.442695, %v10745_v1  ;;  %v10749_v63 = vadd.f32 %v10637_v37, %v6116_v38 }
 0x68c   : > { %7583 = vpow2.f32 %v6909_v16  ;;  %v6907_v46 = vmul.f32 -1.442695, %v10749_v63 }
 0x68e   : > { %v7572_v3 = vpop.eup %7571  ;;  %7585 = vpow2.f32 %v6907_v46 }
 0x68f   : > { %v6382_v60 = vmul.f32 %v7572_v3, %v10711_v18 }
 0x690   : > { %v7574_v34 = vpop.eup %7573 }
 0x691   : > { %v6414_v13 = vadd.f32 %v7668_v55, %v6382_v60  ;;  %v6380_v56 = vmul.f32 %v7574_v34, %v10715_v30 }
 0x692   : > { %v7576_v59 = vpop.eup %7575 }
 0x693   : > { %6446 = vst.msk [vmem:[%s10664_s13 + $0x70] sm:$0xff] %vm309_vm1, %v6414_v13  ;;  %v6412_v35 = vadd.f32 %v7669_v29, %v6380_v56  ;;  %v6383_v62 = vmul.f32 %v7576_v59, %v10719_v23 }
 0x694   : > { %v7578_v51 = vpop.eup %7577 }
 0x695   : > { %6444 = vst.msk [vmem:[%s10664_s13 + $0x60] sm:$0xff] %vm309_vm1, %v6412_v35  ;;  %v6415_v40 = vadd.f32 %v7670_v36, %v6383_v62  ;;  %v6381_v2 = vmul.f32 %v7578_v51, %v10723_v48  ;;  %v7580_v26 = vpop.eup %7579  ;;  %v7676_v36 = vld [vmem:[%s7789_s12 + $0xb0] sm:$0xff] }
 0x696   : > { %v6290_v32 = vadd.f32 1.0, %v7580_v26 }
 0x697   : > { %6447 = vst.msk [vmem:[%s10664_s13 + $0x78] sm:$0xff] %vm309_vm1, %v6415_v40  ;;  %v6413_v18 = vadd.f32 %v7671_v8, %v6381_v2  ;;  %v7582_v15 = vpop.eup %7581 }
 0x698   : > { %7587 = vrcp.f32 %v6290_v32  ;;  %v6288_v30 = vadd.f32 1.0, %v7582_v15  ;;  %v7677_v15 = vld [vmem:[%s7789_s12 + $0xa0] sm:$0xff] }
 0x699   : > { %6445 = vst.msk [vmem:[%s10664_s13 + $0x68] sm:$0xff] %vm309_vm1, %v6413_v18  ;;  %v7584_v33 = vpop.eup %7583 }
 0x69a   : > { %7589 = vrcp.f32 %v6288_v30  ;;  %v6291_v49 = vadd.f32 1.0, %v7584_v33 }
 0x69b   : > { %v7586_v23 = vpop.eup %7585 }
 0x69c   : > { %7591 = vrcp.f32 %v6291_v49  ;;  %v6289_v19 = vadd.f32 1.0, %v7586_v23 }
 0x69e   : > { %7593 = vrcp.f32 %v6289_v19 }
 0x69f   : > { %v7299_v47 = vpop.f32.mrf.mxu1 }
 0x6a0   : > { %v6138_v48 = vadd.f32 %v7299_v47, %v10637_v37 }
 0x6a1   : > { %v6129_v28 = vpop.f32.mrf.mxu1 }
 0x6a2   : > { %v6912_v24 = vmul.f32 -1.442695, %v6138_v48  ;;  %v6130_v6 = vadd.f32 %v10637_v37, %v6129_v28 }
 0x6a3   : > { %v7300_v44 = vpop.f32.mrf.mxu1 }
 0x6a4   : > { %7595 = vpow2.f32 %v6912_v24  ;;  %v6910_v25 = vmul.f32 -1.442695, %v6130_v6  ;;  %v10771_v10 = vadd.f32 %v7300_v44, %v10637_v37 }
 0x6a5   : > { %v7588_v17 = vpop.eup %7587  ;;  %v6132_v31 = vpop.f32.mrf.mxu1 }
 0x6a6   : > { %v6386_v61 = vmul.f32 %v7588_v17, %v6122_v9  ;;  %7597 = vpow2.f32 %v6910_v25  ;;  %v6913_v54 = vmul.f32 -1.442695, %v10771_v10  ;;  %v10775_v50 = vadd.f32 %v10637_v37, %v6132_v31 }
 0x6a7   : > { %v7590_v58 = vpop.eup %7589 }
 0x6a8   : > { %v6418_v27 = vadd.f32 %v7672_v39, %v6386_v61  ;;  %v6384_v7 = vmul.f32 %v7590_v58, %v6114_v41  ;;  %7599 = vpow2.f32 %v6913_v54  ;;  %v6911_v0 = vmul.f32 -1.442695, %v10775_v50 }
 0x6a9   : > { %v7592_v12 = vpop.eup %7591 }
 0x6aa   : > { %6450 = vst.msk [vmem:[%s10664_s13 + $0x90] sm:$0xff] %vm309_vm1, %v6418_v27  ;;  %v6416_v45 = vadd.f32 %v7673_v4, %v6384_v7  ;;  %v6387_v5 = vmul.f32 %v7592_v12, %v10745_v1  ;;  %7601 = vpow2.f32 %v6911_v0 }
 0x6ab   : > { %v7594_v42 = vpop.eup %7593 }
 0x6ac   : > { %6448 = vst.msk [vmem:[%s10664_s13 + $0x80] sm:$0xff] %vm309_vm1, %v6416_v45  ;;  %v6419_v11 = vadd.f32 %v7674_v21, %v6387_v5  ;;  %v6385_v20 = vmul.f32 %v7594_v42, %v10749_v63 }
 0x6ae   : > { %6451 = vst.msk [vmem:[%s10664_s13 + $0x98] sm:$0xff] %vm309_vm1, %v6419_v11  ;;  %v6417_v43 = vadd.f32 %v7675_v53, %v6385_v20 }
 0x6b0   : > { %6449 = vst.msk [vmem:[%s10664_s13 + $0x88] sm:$0xff] %vm309_vm1, %v6417_v43 }
 0x6b1   : > { %v7596_v9 = vpop.eup %7595 }
 0x6b2   : > { %v6294_v57 = vadd.f32 1.0, %v7596_v9 }
 0x6b3   : > { %v7598_v52 = vpop.eup %7597 }
 0x6b4   : > { %7603 = vrcp.f32 %v6294_v57  ;;  %v6292_v41 = vadd.f32 1.0, %v7598_v52 }
 0x6b5   : > { %v7600_v14 = vpop.eup %7599 }
 0x6b6   : > { %7605 = vrcp.f32 %v6292_v41  ;;  %v6295_v22 = vadd.f32 1.0, %v7600_v14  ;;  %v7680_v41 = vld [vmem:[%s7789_s12 + $0xd0] sm:$0xff] }
 0x6b7   : > { %v7602_v1 = vpop.eup %7601 }
 0x6b8   : > { %7607 = vrcp.f32 %v6295_v22  ;;  %v6293_v38 = vadd.f32 1.0, %v7602_v1 }
 0x6ba   : > { %7609 = vrcp.f32 %v6293_v38  ;;  %v7681_v38 = vld [vmem:[%s7789_s12 + $0xc0] sm:$0xff] }
 0x6bb   : > { %v7303_v16 = vpop.f32.mrf.mxu1 }
 0x6bc   : > { %v10793_v63 = vadd.f32 %v7303_v16, %v10637_v37 }
 0x6bd   : > { %v6145_v46 = vpop.f32.mrf.mxu1 }
 0x6be   : > { %v6916_v3 = vmul.f32 -1.442695, %v10793_v63  ;;  %v10797_v60 = vadd.f32 %v10637_v37, %v6145_v46 }
 0x6bf   : > { %v7304_v34 = vpop.f32.mrf.mxu1 }
 0x6c0   : > { %7611 = vpow2.f32 %v6916_v3  ;;  %v6914_v55 = vmul.f32 -1.442695, %v10797_v60  ;;  %v10801_v13 = vadd.f32 %v7304_v34, %v10637_v37 }
 0x6c1   : > { %v7604_v56 = vpop.eup %7603  ;;  %v6148_v59 = vpop.f32.mrf.mxu1 }
 0x6c2   : > { %v6390_v29 = vmul.f32 %v7604_v56, %v6138_v48  ;;  %7613 = vpow2.f32 %v6914_v55  ;;  %v6917_v35 = vmul.f32 -1.442695, %v10801_v13  ;;  %v10805_v62 = vadd.f32 %v10637_v37, %v6148_v59  ;;  %v7678_v48 = vld [vmem:[%s7789_s12 + $0xb8] sm:$0xff] }
 0x6c3   : > { %v7606_v51 = vpop.eup %7605 }
 0x6c4   : > { %v6422_v40 = vadd.f32 %v7676_v36, %v6390_v29  ;;  %v6388_v2 = vmul.f32 %v7606_v51, %v6130_v6  ;;  %7615 = vpow2.f32 %v6917_v35  ;;  %v6915_v26 = vmul.f32 -1.442695, %v10805_v62  ;;  %v7307_v8 = vpop.f32.mrf.mxu1  ;;  %v7684_v35 = vld [vmem:[%s7789_s12 + $0xf0] sm:$0xff] }
 0x6c5   : > { %v7608_v18 = vpop.eup %7607  ;;  %v10810_v32 = vadd.f32 %v7307_v8, %v10637_v37 }
 0x6c6   : > { %6454 = vst.msk [vmem:[%s10664_s13 + $0xb0] sm:$0xff] %vm309_vm1, %v6422_v40  ;;  %v6420_v30 = vadd.f32 %v7677_v15, %v6388_v2  ;;  %v6391_v33 = vmul.f32 %v7608_v18, %v10771_v10  ;;  %7617 = vpow2.f32 %v6915_v26  ;;  %v6161_v49 = vpop.f32.mrf.mxu1  ;;  %v7679_v10 = vld [vmem:[%s7789_s12 + $0xa8] sm:$0xff]  ;;  %v7685_v40 = vld [vmem:[%s7789_s12 + $0xe0] sm:$0xff]  ;;  %v7686_v18 = vld [vmem:[%s7789_s12 + $0xf8] sm:$0xff] }
 0x6c7   : > { %v7610_v23 = vpop.eup %7609  ;;  %v6920_v19 = vmul.f32 -1.442695, %v10810_v32  ;;  %v10818_v47 = vadd.f32 %v10637_v37, %v6161_v49 }
 0x6c8   : > { %6452 = vst.msk [vmem:[%s10664_s13 + $0xa0] sm:$0xff] %vm309_vm1, %v6420_v30  ;;  %v6423_v28 = vadd.f32 %v7678_v48, %v6391_v33  ;;  %v6389_v24 = vmul.f32 %v7610_v23, %v10775_v50  ;;  %v7308_v6 = vpop.f32.mrf.mxu1  ;;  %v7687_v30 = vld [vmem:[%s7789_s12 + $0xe8] sm:$0xff] }
 0x6c9   : > { %7619 = vpow2.f32 %v6920_v19  ;;  %v6918_v44 = vmul.f32 -1.442695, %v10818_v47  ;;  %v10826_v25 = vadd.f32 %v7308_v6, %v10637_v37 }
 0x6ca   : > { %6455 = vst.msk [vmem:[%s10664_s13 + $0xb8] sm:$0xff] %vm309_vm1, %v6423_v28  ;;  %v6421_v17 = vadd.f32 %v7679_v10, %v6389_v24  ;;  %v6164_v31 = vpop.f32.mrf.mxu1 }
 0x6cb   : > { %7621 = vpow2.f32 %v6918_v44  ;;  %v6921_v61 = vmul.f32 -1.442695, %v10826_v25  ;;  %v10833_v54 = vadd.f32 %v10637_v37, %v6164_v31 }
 0x6cc   : > { %6453 = vst.msk [vmem:[%s10664_s13 + $0xa8] sm:$0xff] %vm309_vm1, %v6421_v17 }
 0x6cd   : > { %v7612_v50 = vpop.eup %7611  ;;  %7623 = vpow2.f32 %v6921_v61  ;;  %v6919_v58 = vmul.f32 -1.442695, %v10833_v54 }
 0x6ce   : > { %v6298_v39 = vadd.f32 1.0, %v7612_v50 }
 0x6cf   : > { %v7614_v27 = vpop.eup %7613  ;;  %7625 = vpow2.f32 %v6919_v58 }
 0x6d0   : > { %7627 = vrcp.f32 %v6298_v39  ;;  %v6296_v7 = vadd.f32 1.0, %v7614_v27 }
 0x6d1   : > { %v7616_v0 = vpop.eup %7615 }
 0x6d2   : > { %7629 = vrcp.f32 %v6296_v7  ;;  %v6299_v12 = vadd.f32 1.0, %v7616_v0 }
 0x6d3   : > { %v7618_v4 = vpop.eup %7617 }
 0x6d4   : > { %7631 = vrcp.f32 %v6299_v12  ;;  %v6297_v45 = vadd.f32 1.0, %v7618_v4 }
 0x6d6   : > { %v7620_v5 = vpop.eup %7619  ;;  %7633 = vrcp.f32 %v6297_v45 }
 0x6d7   : > { %v6302_v37 = vadd.f32 1.0, %v7620_v5 }
 0x6d8   : > { %v7622_v42 = vpop.eup %7621 }
 0x6d9   : > { %7635 = vrcp.f32 %v6302_v37  ;;  %v6300_v21 = vadd.f32 1.0, %v7622_v42 }
 0x6da   : > { %v7624_v11 = vpop.eup %7623 }
 0x6db   : > { %7637 = vrcp.f32 %v6300_v21  ;;  %v6303_v20 = vadd.f32 1.0, %v7624_v11 }
 0x6dc   : > { %v7626_v53 = vpop.eup %7625 }
 0x6dd   : > { %v7628_v43 = vpop.eup %7627  ;;  %7639 = vrcp.f32 %v6303_v20  ;;  %v6301_v9 = vadd.f32 1.0, %v7626_v53 }
 0x6de   : > { %v6394_v57 = vmul.f32 %v7628_v43, %v10793_v63  ;;  %v7682_v63 = vld [vmem:[%s7789_s12 + $0xd8] sm:$0xff] }
 0x6df   : > { %v7630_v52 = vpop.eup %7629  ;;  %7641 = vrcp.f32 %v6301_v9 }
 0x6e0   : > { %v6426_v14 = vadd.f32 %v7680_v41, %v6394_v57  ;;  %v6392_v22 = vmul.f32 %v7630_v52, %v10797_v60  ;;  %v7683_v60 = vld [vmem:[%s7789_s12 + $0xc8] sm:$0xff] }
 0x6e1   : > { %v7632_v1 = vpop.eup %7631 }
 0x6e2   : > { %6458 = vst.msk [vmem:[%s10664_s13 + $0xd0] sm:$0xff] %vm309_vm1, %v6426_v14  ;;  %v6424_v16 = vadd.f32 %v7681_v38, %v6392_v22  ;;  %v6395_v46 = vmul.f32 %v7632_v1, %v10801_v13 }
 0x6e3   : > { %v7634_v3 = vpop.eup %7633 }
 0x6e4   : > { %6456 = vst.msk [vmem:[%s10664_s13 + $0xc0] sm:$0xff] %vm309_vm1, %v6424_v16  ;;  %v6427_v34 = vadd.f32 %v7682_v63, %v6395_v46  ;;  %v6393_v55 = vmul.f32 %v7634_v3, %v10805_v62 }
 0x6e6   : > { %v7636_v56 = vpop.eup %7635  ;;  %6459 = vst.msk [vmem:[%s10664_s13 + $0xd8] sm:$0xff] %vm309_vm1, %v6427_v34  ;;  %v6425_v59 = vadd.f32 %v7683_v60, %v6393_v55 }
 0x6e7   : > { %v6398_v29 = vmul.f32 %v7636_v56, %v10810_v32 }
 0x6e8   : > { %v7638_v13 = vpop.eup %7637  ;;  %6457 = vst.msk [vmem:[%s10664_s13 + $0xc8] sm:$0xff] %vm309_vm1, %v6425_v59 }
 0x6e9   : > { %v6430_v51 = vadd.f32 %v7684_v35, %v6398_v29  ;;  %v6396_v36 = vmul.f32 %v7638_v13, %v10818_v47 }
 0x6ea   : > { %v7640_v62 = vpop.eup %7639 }
 0x6eb   : > { %6462 = vst.msk [vmem:[%s10664_s13 + $0xf0] sm:$0xff] %vm309_vm1, %v6430_v51  ;;  %v6428_v2 = vadd.f32 %v7685_v40, %v6396_v36  ;;  %v6399_v26 = vmul.f32 %v7640_v62, %v10826_v25 }
 0x6ec   : > { %v7642_v8 = vpop.eup %7641 }
 0x6ed   : > { %6460 = vst.msk [vmem:[%s10664_s13 + $0xe0] sm:$0xff] %vm309_vm1, %v6428_v2  ;;  %v6431_v32 = vadd.f32 %v7686_v18, %v6399_v26  ;;  %v6397_v15 = vmul.f32 %v7642_v8, %v10833_v54 }
 0x6ef   : > { %6463 = vst.msk [vmem:[%s10664_s13 + $0xf8] sm:$0xff] %vm309_vm1, %v6431_v32  ;;  %v6429_v33 = vadd.f32 %v7687_v30, %v6397_v15 }
 0x6f1   : > { %6461 = vst.msk [vmem:[%s10664_s13 + $0xe8] sm:$0xff] %vm309_vm1, %v6429_v33 }
 0x6f2 PF: > { %s16_s21 = sadd.s32 1, %s7694_s21  }
 0x6f3   : > { %p13_p4 = scmp.ge.s32.totalorder %s16_s21, 4  }
 0x6f5   :  { %15 = sbr.rel (!%p13_p4) target bundleno = 1 (0x1), region = 74 }

</bundles_post_ra>
